<compile_context>
chip_gen: v6e
topology: v6e:2x2x1
jax: 0.10.0
libtpu: 0.0.40
codegen_flags: <defaults>
</compile_context>

<pallas_src>
import jax
import jax.numpy as jnp
from jax.experimental import pallas as pl
from jax.experimental.pallas import tpu as pltpu


def _aspect_kernel(users_ref, relw_ref, table_ref,
                   a_ids_ref, a_mask_ref, c_ids_ref, c_mask_ref,
                   slab_ref):
    f32 = jnp.float32
    bf16 = jnp.bfloat16

    users = users_ref[...].astype(f32)          # [tb, F]  (VPU math + tiny f32 matmul)
    relw = relw_ref[...].astype(f32)            # [F, R]
    table_bf = table_ref[...].astype(bf16)      # [E, F]   bf16 MXU operand (native rate)

    tb, F = users.shape
    E = table_bf.shape[0]
    R = relw.shape[1]
    L = a_ids_ref.shape[1]

    # ---- aspect importance: softmax(leaky_relu_0.2(users @ relation_k), axis=1) ----
    # Tiny matmul (K=F, N=R); kept in f32 so `scores` matches the reference tightly.
    s = jnp.dot(users, relw, preferred_element_type=f32)        # [tb, R]
    s = jnp.where(s >= 0.0, s, 0.2 * s)                         # LeakyReLU(0.2)
    s = s - jnp.max(s, axis=1, keepdims=True)                   # stable softmax
    es = jnp.exp(s)
    sm = es / jnp.sum(es, axis=1, keepdims=True)                # [tb, R]
    s_act = sm[:, 0:1]                                          # scores[:, 0]
    s_dir = sm[:, 1:2]                                          # scores[:, 1]

    # iota over entity ids, shared by both aspects (hoisted: JAX does not CSE broadcasts).
    e_iota = jax.lax.broadcasted_iota(jnp.int32, (tb, L, E), 2)

    def aspect(ids_ref, mask_ref):
        ids = ids_ref[...]                                      # [tb, L] int32
        mask = mask_ref[...].astype(f32)                        # [tb, L]
        # MXU-fused gather: one-hot(ids) @ entity_table. The one-hot is exact in bf16,
        # so `gathered` is exactly the bf16-rounded table rows, accumulated in f32.
        onehot = (e_iota == ids[:, :, None]).astype(bf16)       # [tb, L, E]
        gathered = jnp.dot(onehot.reshape(tb * L, E), table_bf,
                           preferred_element_type=f32)          # [tb*L, F]
        # Per-list pre-rating: <entity_emb, user>, padded slots zeroed by the mask.
        pre = jnp.sum(gathered.reshape(tb, L, F) * users[:, None, :],
                      axis=-1) * mask                           # [tb, L]
        cnt = jnp.maximum(jnp.sum(mask, axis=1, keepdims=True), 1.0)
        contrib = jnp.sum(pre, axis=1, keepdims=True) / cnt     # [tb, 1]
        return pre, contrib

    pre_a, ca = aspect(a_ids_ref, a_mask_ref)
    pre_c, cd = aspect(c_ids_ref, c_mask_ref)

    pred = (ca * s_act + cd * s_dir) / (s_act + s_dir)          # [tb, 1]

    # ---- pack everything into ONE lane-dense slab:
    #      [pred | ca | cd | scores(R) | niubi_a(L) | niubi_c(L) | 0-pad] ----
    slab_ref[...] = jnp.zeros_like(slab_ref)                    # clear padding lanes
    slab_ref[:, 0:1] = pred
    slab_ref[:, 1:2] = ca
    slab_ref[:, 2:3] = cd
    slab_ref[:, 3:3 + R] = sm
    slab_ref[:, 3 + R:3 + R + L] = pre_a
    slab_ref[:, 3 + R + L:3 + R + 2 * L] = pre_c


def aspect_augmentation_book_forward(user_id, artists_ids, artists_mask,
                                     categories_ids, categories_mask,
                                     params, *, rate=0.0, tb=None):
    del rate  # TODO(synk): dropout is identity (eval-mode only).
    user_factors = params["user_factors"]        # [n_users, F]
    entity_factors = params["entity_factors"]    # [E, F]  passed UNtransposed (no HBM copy)
    relation_k = params["relation_k"]            # [F, R]

    users = user_factors[user_id]                # small [B, F] gather stays in XLA
    B, F = users.shape
    E = entity_factors.shape[0]
    R = relation_k.shape[1]
    L = artists_ids.shape[1]
    assert categories_ids.shape == artists_ids.shape
    assert R >= 2

    a_ids = jnp.asarray(artists_ids, jnp.int32)
    c_ids = jnp.asarray(categories_ids, jnp.int32)
    a_mask = artists_mask.astype(jnp.float32)
    c_mask = categories_mask.astype(jnp.float32)

    if tb is None:
        # Prefer >= 4 grid steps (>= 2 per TensorCore after megacore sharding on v7x),
        # fall back to >= 2; pick the largest tile that satisfies it (amortize step overhead).
        tb = B
        for min_steps in (4, 2):
            cands = [c for c in (512, 256, 128, 64, 32, 16, 8)
                     if B % c == 0 and B // c >= min_steps]
            if cands:
                tb = max(cands)
                break
    assert B % tb == 0 and (tb % 8 == 0 or tb == B)
    grid = (B // tb,)

    used = 3 + R + 2 * L
    W = ((used + 127) // 128) * 128              # single lane-dense packed output slab

    def build(single_buffer_const):
        # Constant-index (VMEM-resident) operands don't need double-buffering.
        const_kw = ({"pipeline_mode": pl.Buffered(buffer_count=1)}
                    if single_buffer_const else {})
        grid_spec = pltpu.PrefetchScalarGridSpec(
            num_scalar_prefetch=0,
            grid=grid,
            in_specs=[
                pl.BlockSpec((tb, F), lambda i: (i, 0)),             # users
                pl.BlockSpec((F, R), lambda i: (0, 0), **const_kw),  # relation_k (resident)
                pl.BlockSpec((E, F), lambda i: (0, 0), **const_kw),  # entity table (resident)
                pl.BlockSpec((tb, L), lambda i: (i, 0)),             # artists ids
                pl.BlockSpec((tb, L), lambda i: (i, 0)),             # artists mask
                pl.BlockSpec((tb, L), lambda i: (i, 0)),             # categories ids
                pl.BlockSpec((tb, L), lambda i: (i, 0)),             # categories mask
            ],
            out_specs=pl.BlockSpec((tb, W), lambda i: (i, 0)),
        )
        return pl.pallas_call(
            _aspect_kernel,
            out_shape=jax.ShapeDtypeStruct((B, W), jnp.float32),
            grid_spec=grid_spec,
            compiler_params=pltpu.CompilerParams(
                dimension_semantics=("parallel",),
                # 48 MiB: above the 32 MiB scoped default (v5e/v6e headroom for larger
                # tables / tb) while staying under v7x's 64 MiB physical VMEM.
                vmem_limit_bytes=48 * 1024 * 1024),
        )

    args = (users, relation_k, entity_factors, a_ids, a_mask, c_ids, c_mask)
    try:
        slab = build(True)(*args)
    except Exception:
        # Fallback for jax versions without BlockSpec.pipeline_mode support:
        # identical kernel, default double-buffering of the resident tables.
        slab = build(False)(*args)

    pred = slab[:, 0]
    ca = slab[:, 1]
    cd = slab[:, 2]
    scores = slab[:, 3:3 + R]
    niubi_a = slab[:, 3 + R:3 + R + L]
    niubi_c = slab[:, 3 + R + L:3 + R + 2 * L]
    return pred, scores, ca, cd, (niubi_a, niubi_c)


def _reference(user_id, artists_ids, artists_mask, categories_ids, categories_mask, params):
    users = params["user_factors"][user_id].astype(jnp.float32)
    s = users @ params["relation_k"].astype(jnp.float32)
    s = jnp.where(s >= 0, s, 0.2 * s)
    s = jax.nn.softmax(s, axis=1)

    def contrib(ids, mask):
        emb = params["entity_factors"][ids].astype(jnp.float32)   # [B, L, F]
        pre = jnp.sum(emb * users[:, None, :], axis=-1) * mask
        return jnp.sum(pre, axis=1) / jnp.sum(mask, axis=1), pre

    ca, na = contrib(artists_ids, artists_mask)
    cd, nc = contrib(categories_ids, categories_mask)
    pred = (ca * s[:, 0] + cd * s[:, 1]) / (s[:, 0] + s[:, 1])
    return pred, s, ca, cd, (na, nc)


if __name__ == "__main__":
    # Small, deterministic synthetic setup.
    n_users, n_entity, n_rk, n_factors = 32, 64, 3, 32
    B, L = 64, 8                                  # batch of users, padded list length

    key = jax.random.PRNGKey(0)
    k_uf, k_ef, k_rk, k_uid, k_aid, k_cid, k_acnt, k_ccnt = jax.random.split(key, 8)

    params = {
        # torch.nn.Embedding default init ~ N(0, 1)
        "user_factors": jax.random.normal(k_uf, (n_users, n_factors), jnp.float32),
        "entity_factors": jax.random.normal(k_ef, (n_entity, n_factors), jnp.float32),
        "relation_k": jax.random.normal(k_rk, (n_factors, n_rk), jnp.float32),
    }

    user_id = jax.random.randint(k_uid, (B,), 0, n_users)
    artists_ids = jax.random.randint(k_aid, (B, L), 0, n_entity)
    categories_ids = jax.random.randint(k_cid, (B, L), 0, n_entity)
    a_counts = jax.random.randint(k_acnt, (B,), 1, L + 1)
    c_counts = jax.random.randint(k_ccnt, (B,), 1, L + 1)
    pos = jnp.arange(L)[None, :]
    artists_mask = (pos < a_counts[:, None]).astype(jnp.float32)
    categories_mask = (pos < c_counts[:, None]).astype(jnp.float32)

    outs = aspect_augmentation_book_forward(
        user_id, artists_ids, artists_mask, categories_ids, categories_mask,
        params, rate=0.0, tb=16)                  # grid = (4,): pipelined, 2 steps/core on v7x
    outs = jax.block_until_ready(outs)

    # Sanity check against a pure-JAX f32 reference.
    ref = _reference(user_id, artists_ids, artists_mask,
                     categories_ids, categories_mask, params)
    # scores go through the (tiny) f32 matmul -> tight tolerance.
    assert jnp.allclose(outs[1], ref[1], atol=1e-3, rtol=1e-3)
    # entity-dependent outputs: entity table is fed to the MXU in bf16 (native rate),
    # so they carry ~bf16 rounding error vs. the f32 reference.
    tol = dict(atol=8e-2, rtol=2e-2)
    assert jnp.allclose(outs[0], ref[0], **tol)
    assert jnp.allclose(outs[2], ref[2], **tol)
    assert jnp.allclose(outs[3], ref[3], **tol)
    assert jnp.allclose(outs[4][0], ref[4][0], **tol)
    assert jnp.allclose(outs[4][1], ref[4][1], **tol)

    print("KERNEL_OK")
</pallas_src>

<mosaic_0001>
module attributes {stable_mosaic.version = 11 : i64} {
  func.func @_aspect_kernel(%arg0: i32, %arg1: memref<16x32xf32, #tpu.memory_space<vmem>>, %arg2: memref<32x3xf32, #tpu.memory_space<vmem>>, %arg3: memref<64x32xf32, #tpu.memory_space<vmem>>, %arg4: memref<16x8xi32, #tpu.memory_space<vmem>>, %arg5: memref<16x8xf32, #tpu.memory_space<vmem>>, %arg6: memref<16x8xi32, #tpu.memory_space<vmem>>, %arg7: memref<16x8xf32, #tpu.memory_space<vmem>>, %arg8: memref<16x128xf32, #tpu.memory_space<vmem>>) attributes {dimension_semantics = [#tpu.dimension_semantics<parallel>], iteration_bounds = array<i64: 4>, scalar_prefetch = 0 : i64, scratch_operands = 0 : i64, tpu.core_type = #tpu.core_type<tc>, window_params = [{transform_indices = @transform_0, window_bounds = array<i64: 16, 32>}, {pipeline_mode = #tpu.pipeline_mode<synchronous>, transform_indices = @transform_1, window_bounds = array<i64: 32, 3>}, {pipeline_mode = #tpu.pipeline_mode<synchronous>, transform_indices = @transform_2, window_bounds = array<i64: 64, 32>}, {transform_indices = @transform_3, window_bounds = array<i64: 16, 8>}, {transform_indices = @transform_4, window_bounds = array<i64: 16, 8>}, {transform_indices = @transform_5, window_bounds = array<i64: 16, 8>}, {transform_indices = @transform_6, window_bounds = array<i64: 16, 8>}, {transform_indices = @transform_7, window_bounds = array<i64: 16, 128>}]} {
    %c0 = arith.constant 0 : index
    %c0_0 = arith.constant 0 : index
    %0 = vector.load %arg1[%c0, %c0_0] : memref<16x32xf32, #tpu.memory_space<vmem>>, vector<16x32xf32>
    %c0_1 = arith.constant 0 : index
    %c0_2 = arith.constant 0 : index
    %1 = vector.load %arg2[%c0_1, %c0_2] : memref<32x3xf32, #tpu.memory_space<vmem>>, vector<32x3xf32>
    %c0_3 = arith.constant 0 : index
    %c0_4 = arith.constant 0 : index
    %2 = vector.load %arg3[%c0_3, %c0_4] : memref<64x32xf32, #tpu.memory_space<vmem>>, vector<64x32xf32>
    %3 = arith.truncf %2 : vector<64x32xf32> to vector<64x32xbf16>
    %cst = arith.constant dense<0.000000e+00> : vector<16x3xf32>
    %4 = tpu.matmul %0, %1, %cst {dimension_numbers = #tpu.dot_dimension_numbers<[1], [0], [0], [1], [0, 0, 1, 1], [], []>} : vector<16x32xf32>, vector<32x3xf32>, vector<16x3xf32> -> vector<16x3xf32>
    %cst_5 = arith.constant 0.000000e+00 : f32
    %5 = vector.broadcast %cst_5 : f32 to vector<16x3xf32>
    %6 = arith.cmpf oge, %4, %5 : vector<16x3xf32>
    %cst_6 = arith.constant 2.000000e-01 : f32
    %7 = vector.broadcast %cst_6 : f32 to vector<16x3xf32>
    %8 = arith.mulf %7, %4 : vector<16x3xf32>
    %9 = arith.select %6, %4, %8 : vector<16x3xi1>, vector<16x3xf32>
    %cst_7 = arith.constant dense<0xFF800000> : vector<16xf32>
    %10 = vector.multi_reduction <maximumf>, %9, %cst_7 [1] : vector<16x3xf32> to vector<16xf32>
    %11 = vector.shape_cast %10 : vector<16xf32> to vector<16x1xf32>
    %12 = vector.broadcast %11 : vector<16x1xf32> to vector<16x3xf32>
    %13 = arith.subf %9, %12 : vector<16x3xf32>
    %14 = math.exp %13 : vector<16x3xf32>
    %cst_8 = arith.constant dense<0.000000e+00> : vector<16xf32>
    %15 = vector.multi_reduction <add>, %14, %cst_8 [1] : vector<16x3xf32> to vector<16xf32>
    %16 = vector.shape_cast %15 : vector<16xf32> to vector<16x1xf32>
    %17 = vector.broadcast %16 : vector<16x1xf32> to vector<16x3xf32>
    %18 = arith.divf %14, %17 : vector<16x3xf32>
    %19 = vector.extract_strided_slice %18 {offsets = [0, 0], sizes = [16, 1], strides = [1, 1]} : vector<16x3xf32> to vector<16x1xf32>
    %20 = vector.extract_strided_slice %18 {offsets = [0, 1], sizes = [16, 1], strides = [1, 1]} : vector<16x3xf32> to vector<16x1xf32>
    %21 = tpu.iota {dimensions = array<i32: 2>} : vector<16x8x64xi32>
    %c0_9 = arith.constant 0 : index
    %c0_10 = arith.constant 0 : index
    %22 = vector.load %arg4[%c0_9, %c0_10] : memref<16x8xi32, #tpu.memory_space<vmem>>, vector<16x8xi32>
    %c0_11 = arith.constant 0 : index
    %c0_12 = arith.constant 0 : index
    %23 = vector.load %arg5[%c0_11, %c0_12] : memref<16x8xf32, #tpu.memory_space<vmem>>, vector<16x8xf32>
    %24 = vector.shape_cast %22 : vector<16x8xi32> to vector<16x8x1xi32>
    %25 = vector.broadcast %24 : vector<16x8x1xi32> to vector<16x8x64xi32>
    %26 = arith.cmpi eq, %21, %25 : vector<16x8x64xi32>
    %27 = arith.extui %26 : vector<16x8x64xi1> to vector<16x8x64xi32>
    %28 = arith.sitofp %27 : vector<16x8x64xi32> to vector<16x8x64xf32>
    %29 = arith.truncf %28 : vector<16x8x64xf32> to vector<16x8x64xbf16>
    %30 = vector.shape_cast %29 : vector<16x8x64xbf16> to vector<128x64xbf16>
    %cst_13 = arith.constant dense<0.000000e+00> : vector<128x32xf32>
    %31 = tpu.matmul %30, %3, %cst_13 {dimension_numbers = #tpu.dot_dimension_numbers<[1], [0], [0], [1], [0, 0, 1, 1], [], []>} : vector<128x64xbf16>, vector<64x32xbf16>, vector<128x32xf32> -> vector<128x32xf32>
    %32 = vector.shape_cast %31 : vector<128x32xf32> to vector<16x8x32xf32>
    %33 = vector.shape_cast %0 : vector<16x32xf32> to vector<16x1x32xf32>
    %34 = vector.broadcast %33 : vector<16x1x32xf32> to vector<16x8x32xf32>
    %35 = arith.mulf %32, %34 : vector<16x8x32xf32>
    %cst_14 = arith.constant dense<0.000000e+00> : vector<16x8xf32>
    %36 = vector.multi_reduction <add>, %35, %cst_14 [2] : vector<16x8x32xf32> to vector<16x8xf32>
    %37 = arith.mulf %36, %23 : vector<16x8xf32>
    %cst_15 = arith.constant dense<0.000000e+00> : vector<16xf32>
    %38 = vector.multi_reduction <add>, %23, %cst_15 [1] : vector<16x8xf32> to vector<16xf32>
    %39 = vector.shape_cast %38 : vector<16xf32> to vector<16x1xf32>
    %cst_16 = arith.constant 1.000000e+00 : f32
    %40 = vector.broadcast %cst_16 : f32 to vector<16x1xf32>
    %41 = arith.maximumf %39, %40 : vector<16x1xf32>
    %cst_17 = arith.constant dense<0.000000e+00> : vector<16xf32>
    %42 = vector.multi_reduction <add>, %37, %cst_17 [1] : vector<16x8xf32> to vector<16xf32>
    %43 = vector.shape_cast %42 : vector<16xf32> to vector<16x1xf32>
    %44 = arith.divf %43, %41 : vector<16x1xf32>
    %c0_18 = arith.constant 0 : index
    %c0_19 = arith.constant 0 : index
    %45 = vector.load %arg6[%c0_18, %c0_19] : memref<16x8xi32, #tpu.memory_space<vmem>>, vector<16x8xi32>
    %c0_20 = arith.constant 0 : index
    %c0_21 = arith.constant 0 : index
    %46 = vector.load %arg7[%c0_20, %c0_21] : memref<16x8xf32, #tpu.memory_space<vmem>>, vector<16x8xf32>
    %47 = vector.shape_cast %45 : vector<16x8xi32> to vector<16x8x1xi32>
    %48 = vector.broadcast %47 : vector<16x8x1xi32> to vector<16x8x64xi32>
    %49 = arith.cmpi eq, %21, %48 : vector<16x8x64xi32>
    %50 = arith.extui %49 : vector<16x8x64xi1> to vector<16x8x64xi32>
    %51 = arith.sitofp %50 : vector<16x8x64xi32> to vector<16x8x64xf32>
    %52 = arith.truncf %51 : vector<16x8x64xf32> to vector<16x8x64xbf16>
    %53 = vector.shape_cast %52 : vector<16x8x64xbf16> to vector<128x64xbf16>
    %cst_22 = arith.constant dense<0.000000e+00> : vector<128x32xf32>
    %54 = tpu.matmul %53, %3, %cst_22 {dimension_numbers = #tpu.dot_dimension_numbers<[1], [0], [0], [1], [0, 0, 1, 1], [], []>} : vector<128x64xbf16>, vector<64x32xbf16>, vector<128x32xf32> -> vector<128x32xf32>
    %55 = vector.shape_cast %54 : vector<128x32xf32> to vector<16x8x32xf32>
    %56 = vector.shape_cast %0 : vector<16x32xf32> to vector<16x1x32xf32>
    %57 = vector.broadcast %56 : vector<16x1x32xf32> to vector<16x8x32xf32>
    %58 = arith.mulf %55, %57 : vector<16x8x32xf32>
    %cst_23 = arith.constant dense<0.000000e+00> : vector<16x8xf32>
    %59 = vector.multi_reduction <add>, %58, %cst_23 [2] : vector<16x8x32xf32> to vector<16x8xf32>
    %60 = arith.mulf %59, %46 : vector<16x8xf32>
    %cst_24 = arith.constant dense<0.000000e+00> : vector<16xf32>
    %61 = vector.multi_reduction <add>, %46, %cst_24 [1] : vector<16x8xf32> to vector<16xf32>
    %62 = vector.shape_cast %61 : vector<16xf32> to vector<16x1xf32>
    %cst_25 = arith.constant 1.000000e+00 : f32
    %63 = vector.broadcast %cst_25 : f32 to vector<16x1xf32>
    %64 = arith.maximumf %62, %63 : vector<16x1xf32>
    %cst_26 = arith.constant dense<0.000000e+00> : vector<16xf32>
    %65 = vector.multi_reduction <add>, %60, %cst_26 [1] : vector<16x8xf32> to vector<16xf32>
    %66 = vector.shape_cast %65 : vector<16xf32> to vector<16x1xf32>
    %67 = arith.divf %66, %64 : vector<16x1xf32>
    %68 = arith.mulf %44, %19 : vector<16x1xf32>
    %69 = arith.mulf %67, %20 : vector<16x1xf32>
    %70 = arith.addf %68, %69 : vector<16x1xf32>
    %71 = arith.addf %19, %20 : vector<16x1xf32>
    %72 = arith.divf %70, %71 : vector<16x1xf32>
    %cst_27 = arith.constant 0.000000e+00 : f32
    %73 = vector.broadcast %cst_27 : f32 to vector<16x128xf32>
    %c0_28 = arith.constant 0 : index
    %c0_29 = arith.constant 0 : index
    %74 = vector.load %arg8[%c0_28, %c0_29] : memref<16x128xf32, #tpu.memory_space<vmem>>, vector<16x128xf32>
    tpu.vector_store %arg8[%c0_28, %c0_29], %73 {strides = array<i32>} : memref<16x128xf32, #tpu.memory_space<vmem>>, vector<16x128xf32>,
    %c0_30 = arith.constant 0 : index
    %c0_31 = arith.constant 0 : index
    %75 = vector.load %arg8[%c0_30, %c0_31] : memref<16x128xf32, #tpu.memory_space<vmem>>, vector<16x1xf32>
    tpu.vector_store %arg8[%c0_30, %c0_31], %72 {strides = array<i32>} : memref<16x128xf32, #tpu.memory_space<vmem>>, vector<16x1xf32>,
    %c0_32 = arith.constant 0 : index
    %c1 = arith.constant 1 : index
    %76 = vector.load %arg8[%c0_32, %c1] : memref<16x128xf32, #tpu.memory_space<vmem>>, vector<16x1xf32>
    tpu.vector_store %arg8[%c0_32, %c1], %44 {strides = array<i32>} : memref<16x128xf32, #tpu.memory_space<vmem>>, vector<16x1xf32>,
    %c0_33 = arith.constant 0 : index
    %c2 = arith.constant 2 : index
    %77 = vector.load %arg8[%c0_33, %c2] : memref<16x128xf32, #tpu.memory_space<vmem>>, vector<16x1xf32>
    tpu.vector_store %arg8[%c0_33, %c2], %67 {strides = array<i32>} : memref<16x128xf32, #tpu.memory_space<vmem>>, vector<16x1xf32>,
    %c0_34 = arith.constant 0 : index
    %c3 = arith.constant 3 : index
    %78 = vector.load %arg8[%c0_34, %c3] : memref<16x128xf32, #tpu.memory_space<vmem>>, vector<16x3xf32>
    tpu.vector_store %arg8[%c0_34, %c3], %18 {strides = array<i32>} : memref<16x128xf32, #tpu.memory_space<vmem>>, vector<16x3xf32>,
    %c0_35 = arith.constant 0 : index
    %c6 = arith.constant 6 : index
    %79 = vector.load %arg8[%c0_35, %c6] : memref<16x128xf32, #tpu.memory_space<vmem>>, vector<16x8xf32>
    tpu.vector_store %arg8[%c0_35, %c6], %37 {strides = array<i32>} : memref<16x128xf32, #tpu.memory_space<vmem>>, vector<16x8xf32>,
    %c0_36 = arith.constant 0 : index
    %c14 = arith.constant 14 : index
    %80 = vector.load %arg8[%c0_36, %c14] : memref<16x128xf32, #tpu.memory_space<vmem>>, vector<16x8xf32>
    tpu.vector_store %arg8[%c0_36, %c14], %60 {strides = array<i32>} : memref<16x128xf32, #tpu.memory_space<vmem>>, vector<16x8xf32>,
    return
  }
  func.func @transform_0(%arg0: i32) -> (i32, i32) {
    %c0_i32 = arith.constant 0 : i32
    %c0_i32_0 = arith.constant 0 : i32
    return %arg0, %c0_i32 : i32, i32
  }
  func.func @transform_1(%arg0: i32) -> (i32, i32) {
    %c0_i32 = arith.constant 0 : i32
    %c0_i32_0 = arith.constant 0 : i32
    %c0_i32_1 = arith.constant 0 : i32
    return %c0_i32, %c0_i32_0 : i32, i32
  }
  func.func @transform_2(%arg0: i32) -> (i32, i32) {
    %c0_i32 = arith.constant 0 : i32
    %c0_i32_0 = arith.constant 0 : i32
    %c0_i32_1 = arith.constant 0 : i32
    return %c0_i32, %c0_i32_0 : i32, i32
  }
  func.func @transform_3(%arg0: i32) -> (i32, i32) {
    %c0_i32 = arith.constant 0 : i32
    %c0_i32_0 = arith.constant 0 : i32
    return %arg0, %c0_i32 : i32, i32
  }
  func.func @transform_4(%arg0: i32) -> (i32, i32) {
    %c0_i32 = arith.constant 0 : i32
    %c0_i32_0 = arith.constant 0 : i32
    return %arg0, %c0_i32 : i32, i32
  }
  func.func @transform_5(%arg0: i32) -> (i32, i32) {
    %c0_i32 = arith.constant 0 : i32
    %c0_i32_0 = arith.constant 0 : i32
    return %arg0, %c0_i32 : i32, i32
  }
  func.func @transform_6(%arg0: i32) -> (i32, i32) {
    %c0_i32 = arith.constant 0 : i32
    %c0_i32_0 = arith.constant 0 : i32
    return %arg0, %c0_i32 : i32, i32
  }
  func.func @transform_7(%arg0: i32) -> (i32, i32) {
    %c0_i32 = arith.constant 0 : i32
    %c0_i32_0 = arith.constant 0 : i32
    return %arg0, %c0_i32 : i32, i32
  }
}

module attributes {stable_mosaic.version = 11 : i64} {
  func.func @_aspect_kernel(%arg0: i32, %arg1: memref<16x32xf32, #tpu.memory_space<vmem>>, %arg2: memref<32x3xf32, #tpu.memory_space<vmem>>, %arg3: memref<64x32xf32, #tpu.memory_space<vmem>>, %arg4: memref<16x8xi32, #tpu.memory_space<vmem>>, %arg5: memref<16x8xf32, #tpu.memory_space<vmem>>, %arg6: memref<16x8xi32, #tpu.memory_space<vmem>>, %arg7: memref<16x8xf32, #tpu.memory_space<vmem>>, %arg8: memref<16x128xf32, #tpu.memory_space<vmem>>) attributes {dimension_semantics = [#tpu.dimension_semantics<parallel>], iteration_bounds = array<i64: 4>, scalar_prefetch = 0 : i64, scratch_operands = 0 : i64, tpu.core_type = #tpu.core_type<tc>, window_params = [{transform_indices = @transform_0, window_bounds = array<i64: 16, 32>}, {pipeline_mode = #tpu.pipeline_mode<synchronous>, transform_indices = @transform_1, window_bounds = array<i64: 32, 3>}, {pipeline_mode = #tpu.pipeline_mode<synchronous>, transform_indices = @transform_2, window_bounds = array<i64: 64, 32>}, {transform_indices = @transform_3, window_bounds = array<i64: 16, 8>}, {transform_indices = @transform_4, window_bounds = array<i64: 16, 8>}, {transform_indices = @transform_5, window_bounds = array<i64: 16, 8>}, {transform_indices = @transform_6, window_bounds = array<i64: 16, 8>}, {transform_indices = @transform_7, window_bounds = array<i64: 16, 128>}]} {
    %c0 = arith.constant 0 : index
    %c0_0 = arith.constant 0 : index
    %0 = vector.load %arg1[%c0, %c0_0] : memref<16x32xf32, #tpu.memory_space<vmem>>, vector<16x32xf32>
    %c0_1 = arith.constant 0 : index
    %c0_2 = arith.constant 0 : index
    %1 = vector.load %arg2[%c0_1, %c0_2] : memref<32x3xf32, #tpu.memory_space<vmem>>, vector<32x3xf32>
    %c0_3 = arith.constant 0 : index
    %c0_4 = arith.constant 0 : index
    %2 = vector.load %arg3[%c0_3, %c0_4] : memref<64x32xf32, #tpu.memory_space<vmem>>, vector<64x32xf32>
    %3 = arith.truncf %2 : vector<64x32xf32> to vector<64x32xbf16>
    %cst = arith.constant dense<0.000000e+00> : vector<16x3xf32>
    %4 = tpu.matmul %0, %1, %cst {dimension_numbers = #tpu.dot_dimension_numbers<[1], [0], [0], [1], [0, 0, 1, 1], [], []>} : vector<16x32xf32>, vector<32x3xf32>, vector<16x3xf32> -> vector<16x3xf32>
    %cst_5 = arith.constant 0.000000e+00 : f32
    %5 = vector.broadcast %cst_5 : f32 to vector<16x3xf32>
    %6 = arith.cmpf oge, %4, %5 : vector<16x3xf32>
    %cst_6 = arith.constant 2.000000e-01 : f32
    %7 = vector.broadcast %cst_6 : f32 to vector<16x3xf32>
    %8 = arith.mulf %7, %4 : vector<16x3xf32>
    %9 = arith.select %6, %4, %8 : vector<16x3xi1>, vector<16x3xf32>
    %cst_7 = arith.constant dense<0xFF800000> : vector<16xf32>
    %10 = vector.multi_reduction <maximumf>, %9, %cst_7 [1] : vector<16x3xf32> to vector<16xf32>
    %11 = vector.shape_cast %10 : vector<16xf32> to vector<16x1xf32>
    %12 = vector.broadcast %11 : vector<16x1xf32> to vector<16x3xf32>
    %13 = arith.subf %9, %12 : vector<16x3xf32>
    %14 = math.exp %13 : vector<16x3xf32>
    %cst_8 = arith.constant dense<0.000000e+00> : vector<16xf32>
    %15 = vector.multi_reduction <add>, %14, %cst_8 [1] : vector<16x3xf32> to vector<16xf32>
    %16 = vector.shape_cast %15 : vector<16xf32> to vector<16x1xf32>
    %17 = vector.broadcast %16 : vector<16x1xf32> to vector<16x3xf32>
    %18 = arith.divf %14, %17 : vector<16x3xf32>
    %19 = vector.extract_strided_slice %18 {offsets = [0, 0], sizes = [16, 1], strides = [1, 1]} : vector<16x3xf32> to vector<16x1xf32>
    %20 = vector.extract_strided_slice %18 {offsets = [0, 1], sizes = [16, 1], strides = [1, 1]} : vector<16x3xf32> to vector<16x1xf32>
    %21 = tpu.iota {dimensions = array<i32: 2>} : vector<16x8x64xi32>
    %c0_9 = arith.constant 0 : index
    %c0_10 = arith.constant 0 : index
    %22 = vector.load %arg4[%c0_9, %c0_10] : memref<16x8xi32, #tpu.memory_space<vmem>>, vector<16x8xi32>
    %c0_11 = arith.constant 0 : index
    %c0_12 = arith.constant 0 : index
    %23 = vector.load %arg5[%c0_11, %c0_12] : memref<16x8xf32, #tpu.memory_space<vmem>>, vector<16x8xf32>
    %24 = vector.shape_cast %22 : vector<16x8xi32> to vector<16x8x1xi32>
    %25 = vector.broadcast %24 : vector<16x8x1xi32> to vector<16x8x64xi32>
    %26 = arith.cmpi eq, %21, %25 : vector<16x8x64xi32>
    %27 = arith.extui %26 : vector<16x8x64xi1> to vector<16x8x64xi32>
    %28 = arith.sitofp %27 : vector<16x8x64xi32> to vector<16x8x64xf32>
    %29 = arith.truncf %28 : vector<16x8x64xf32> to vector<16x8x64xbf16>
    %30 = vector.shape_cast %29 : vector<16x8x64xbf16> to vector<128x64xbf16>
    %cst_13 = arith.constant dense<0.000000e+00> : vector<128x32xf32>
    %31 = tpu.matmul %30, %3, %cst_13 {dimension_numbers = #tpu.dot_dimension_numbers<[1], [0], [0], [1], [0, 0, 1, 1], [], []>} : vector<128x64xbf16>, vector<64x32xbf16>, vector<128x32xf32> -> vector<128x32xf32>
    %32 = vector.shape_cast %31 : vector<128x32xf32> to vector<16x8x32xf32>
    %33 = vector.shape_cast %0 : vector<16x32xf32> to vector<16x1x32xf32>
    %34 = vector.broadcast %33 : vector<16x1x32xf32> to vector<16x8x32xf32>
    %35 = arith.mulf %32, %34 : vector<16x8x32xf32>
    %cst_14 = arith.constant dense<0.000000e+00> : vector<16x8xf32>
    %36 = vector.multi_reduction <add>, %35, %cst_14 [2] : vector<16x8x32xf32> to vector<16x8xf32>
    %37 = arith.mulf %36, %23 : vector<16x8xf32>
    %cst_15 = arith.constant dense<0.000000e+00> : vector<16xf32>
    %38 = vector.multi_reduction <add>, %23, %cst_15 [1] : vector<16x8xf32> to vector<16xf32>
    %39 = vector.shape_cast %38 : vector<16xf32> to vector<16x1xf32>
    %cst_16 = arith.constant 1.000000e+00 : f32
    %40 = vector.broadcast %cst_16 : f32 to vector<16x1xf32>
    %41 = arith.maximumf %39, %40 : vector<16x1xf32>
    %cst_17 = arith.constant dense<0.000000e+00> : vector<16xf32>
    %42 = vector.multi_reduction <add>, %37, %cst_17 [1] : vector<16x8xf32> to vector<16xf32>
    %43 = vector.shape_cast %42 : vector<16xf32> to vector<16x1xf32>
    %44 = arith.divf %43, %41 : vector<16x1xf32>
    %c0_18 = arith.constant 0 : index
    %c0_19 = arith.constant 0 : index
    %45 = vector.load %arg6[%c0_18, %c0_19] : memref<16x8xi32, #tpu.memory_space<vmem>>, vector<16x8xi32>
    %c0_20 = arith.constant 0 : index
    %c0_21 = arith.constant 0 : index
    %46 = vector.load %arg7[%c0_20, %c0_21] : memref<16x8xf32, #tpu.memory_space<vmem>>, vector<16x8xf32>
    %47 = vector.shape_cast %45 : vector<16x8xi32> to vector<16x8x1xi32>
    %48 = vector.broadcast %47 : vector<16x8x1xi32> to vector<16x8x64xi32>
    %49 = arith.cmpi eq, %21, %48 : vector<16x8x64xi32>
    %50 = arith.extui %49 : vector<16x8x64xi1> to vector<16x8x64xi32>
    %51 = arith.sitofp %50 : vector<16x8x64xi32> to vector<16x8x64xf32>
    %52 = arith.truncf %51 : vector<16x8x64xf32> to vector<16x8x64xbf16>
    %53 = vector.shape_cast %52 : vector<16x8x64xbf16> to vector<128x64xbf16>
    %cst_22 = arith.constant dense<0.000000e+00> : vector<128x32xf32>
    %54 = tpu.matmul %53, %3, %cst_22 {dimension_numbers = #tpu.dot_dimension_numbers<[1], [0], [0], [1], [0, 0, 1, 1], [], []>} : vector<128x64xbf16>, vector<64x32xbf16>, vector<128x32xf32> -> vector<128x32xf32>
    %55 = vector.shape_cast %54 : vector<128x32xf32> to vector<16x8x32xf32>
    %56 = vector.shape_cast %0 : vector<16x32xf32> to vector<16x1x32xf32>
    %57 = vector.broadcast %56 : vector<16x1x32xf32> to vector<16x8x32xf32>
    %58 = arith.mulf %55, %57 : vector<16x8x32xf32>
    %cst_23 = arith.constant dense<0.000000e+00> : vector<16x8xf32>
    %59 = vector.multi_reduction <add>, %58, %cst_23 [2] : vector<16x8x32xf32> to vector<16x8xf32>
    %60 = arith.mulf %59, %46 : vector<16x8xf32>
    %cst_24 = arith.constant dense<0.000000e+00> : vector<16xf32>
    %61 = vector.multi_reduction <add>, %46, %cst_24 [1] : vector<16x8xf32> to vector<16xf32>
    %62 = vector.shape_cast %61 : vector<16xf32> to vector<16x1xf32>
    %cst_25 = arith.constant 1.000000e+00 : f32
    %63 = vector.broadcast %cst_25 : f32 to vector<16x1xf32>
    %64 = arith.maximumf %62, %63 : vector<16x1xf32>
    %cst_26 = arith.constant dense<0.000000e+00> : vector<16xf32>
    %65 = vector.multi_reduction <add>, %60, %cst_26 [1] : vector<16x8xf32> to vector<16xf32>
    %66 = vector.shape_cast %65 : vector<16xf32> to vector<16x1xf32>
    %67 = arith.divf %66, %64 : vector<16x1xf32>
    %68 = arith.mulf %44, %19 : vector<16x1xf32>
    %69 = arith.mulf %67, %20 : vector<16x1xf32>
    %70 = arith.addf %68, %69 : vector<16x1xf32>
    %71 = arith.addf %19, %20 : vector<16x1xf32>
    %72 = arith.divf %70, %71 : vector<16x1xf32>
    %cst_27 = arith.constant 0.000000e+00 : f32
    %73 = vector.broadcast %cst_27 : f32 to vector<16x128xf32>
    %c0_28 = arith.constant 0 : index
    %c0_29 = arith.constant 0 : index
    %74 = vector.load %arg8[%c0_28, %c0_29] : memref<16x128xf32, #tpu.memory_space<vmem>>, vector<16x128xf32>
    tpu.vector_store %arg8[%c0_28, %c0_29], %73 {strides = array<i32>} : memref<16x128xf32, #tpu.memory_space<vmem>>, vector<16x128xf32>,
    %c0_30 = arith.constant 0 : index
    %c0_31 = arith.constant 0 : index
    %75 = vector.load %arg8[%c0_30, %c0_31] : memref<16x128xf32, #tpu.memory_space<vmem>>, vector<16x1xf32>
    tpu.vector_store %arg8[%c0_30, %c0_31], %72 {strides = array<i32>} : memref<16x128xf32, #tpu.memory_space<vmem>>, vector<16x1xf32>,
    %c0_32 = arith.constant 0 : index
    %c1 = arith.constant 1 : index
    %76 = vector.load %arg8[%c0_32, %c1] : memref<16x128xf32, #tpu.memory_space<vmem>>, vector<16x1xf32>
    tpu.vector_store %arg8[%c0_32, %c1], %44 {strides = array<i32>} : memref<16x128xf32, #tpu.memory_space<vmem>>, vector<16x1xf32>,
    %c0_33 = arith.constant 0 : index
    %c2 = arith.constant 2 : index
    %77 = vector.load %arg8[%c0_33, %c2] : memref<16x128xf32, #tpu.memory_space<vmem>>, vector<16x1xf32>
    tpu.vector_store %arg8[%c0_33, %c2], %67 {strides = array<i32>} : memref<16x128xf32, #tpu.memory_space<vmem>>, vector<16x1xf32>,
    %c0_34 = arith.constant 0 : index
    %c3 = arith.constant 3 : index
    %78 = vector.load %arg8[%c0_34, %c3] : memref<16x128xf32, #tpu.memory_space<vmem>>, vector<16x3xf32>
    tpu.vector_store %arg8[%c0_34, %c3], %18 {strides = array<i32>} : memref<16x128xf32, #tpu.memory_space<vmem>>, vector<16x3xf32>,
    %c0_35 = arith.constant 0 : index
    %c6 = arith.constant 6 : index
    %79 = vector.load %arg8[%c0_35, %c6] : memref<16x128xf32, #tpu.memory_space<vmem>>, vector<16x8xf32>
    tpu.vector_store %arg8[%c0_35, %c6], %37 {strides = array<i32>} : memref<16x128xf32, #tpu.memory_space<vmem>>, vector<16x8xf32>,
    %c0_36 = arith.constant 0 : index
    %c14 = arith.constant 14 : index
    %80 = vector.load %arg8[%c0_36, %c14] : memref<16x128xf32, #tpu.memory_space<vmem>>, vector<16x8xf32>
    tpu.vector_store %arg8[%c0_36, %c14], %60 {strides = array<i32>} : memref<16x128xf32, #tpu.memory_space<vmem>>, vector<16x8xf32>,
    return
  }
  func.func @transform_0(%arg0: i32) -> (i32, i32) {
    %c0_i32 = arith.constant 0 : i32
    %c0_i32_0 = arith.constant 0 : i32
    return %arg0, %c0_i32 : i32, i32
  }
  func.func @transform_1(%arg0: i32) -> (i32, i32) {
    %c0_i32 = arith.constant 0 : i32
    %c0_i32_0 = arith.constant 0 : i32
    %c0_i32_1 = arith.constant 0 : i32
    return %c0_i32, %c0_i32_0 : i32, i32
  }
  func.func @transform_2(%arg0: i32) -> (i32, i32) {
    %c0_i32 = arith.constant 0 : i32
    %c0_i32_0 = arith.constant 0 : i32
    %c0_i32_1 = arith.constant 0 : i32
    return %c0_i32, %c0_i32_0 : i32, i32
  }
  func.func @transform_3(%arg0: i32) -> (i32, i32) {
    %c0_i32 = arith.constant 0 : i32
    %c0_i32_0 = arith.constant 0 : i32
    return %arg0, %c0_i32 : i32, i32
  }
  func.func @transform_4(%arg0: i32) -> (i32, i32) {
    %c0_i32 = arith.constant 0 : i32
    %c0_i32_0 = arith.constant 0 : i32
    return %arg0, %c0_i32 : i32, i32
  }
  func.func @transform_5(%arg0: i32) -> (i32, i32) {
    %c0_i32 = arith.constant 0 : i32
    %c0_i32_0 = arith.constant 0 : i32
    return %arg0, %c0_i32 : i32, i32
  }
  func.func @transform_6(%arg0: i32) -> (i32, i32) {
    %c0_i32 = arith.constant 0 : i32
    %c0_i32_0 = arith.constant 0 : i32
    return %arg0, %c0_i32 : i32, i32
  }
  func.func @transform_7(%arg0: i32) -> (i32, i32) {
    %c0_i32 = arith.constant 0 : i32
    %c0_i32_0 = arith.constant 0 : i32
    return %arg0, %c0_i32 : i32, i32
  }
}

</mosaic_0001>

<bundles_post_ra>
// kernel: tpu_custom_call.1
= control target key start
LH: loop header
LB: loop body
LE: loop exit
PB: predicated region body
PF: predicated region fallthrough
CT: control target
= control target key end

     0   :  { %12 = vsyncpa [#allocation3], 0  ;;  %s3645_s0 = inlined_call_operand.vmem [shape: f32[64,32], index: 0, kind: input, shape index: {}]   ;;  %s3646_s1 = inlined_call_operand.vmem [shape: f32[32,3], index: 1, kind: input, shape index: {}]   ;;  %s3647_s2 = inlined_call_operand.vmem [shape: f32[64,32], index: 2, kind: input, shape index: {}]   ;;  %s3648_s3 = inlined_call_operand.vmem [shape: s32[64,8], index: 3, kind: input, shape index: {}]   ;;  %s3649_s4 = inlined_call_operand.vmem [shape: f32[64,8], index: 4, kind: input, shape index: {}]   ;;  %s3650_s5 = inlined_call_operand.vmem [shape: s32[64,8], index: 5, kind: input, shape index: {}]   ;;  %s3651_s6 = inlined_call_operand.vmem [shape: f32[64,8], index: 6, kind: input, shape index: {}]   ;;  %s3652_s7 = inlined_call_operand.hbm [shape: f32[64,128], index: 7, kind: output, shape index: {}]  }
   0x1   :  { %14 = vsyncpa [#allocation3 + $0x1], 0  ;;  %s2825_s24 = smov 0   ;;  %s2827_s25 = smov 0  }
   0x2   :  { %s2829_s26 = smov 0   ;;  %s2831_s27 = smov 0  }
   0x3 LB: > { %s2846_s28 = sadd.s32 4294967295, %s2775_s27   ;;  %s2453_s29 = sadd.s32 4294967294, %s2775_s27   ;;  %s2775_s27 = sphi %s2831_s27, %s3658_s27   ;;  %s2771_s26 = sphi %s2829_s26, %s3657_s26   ;;  %s2767_s25 = sphi %s2827_s25, %s3656_s25   ;;  %s2763_s24 = sphi %s2825_s24, %s3655_s24  }
   0x4   : > { %s2850_s30 = sadd.s32 1, %s2775_s27   ;;  %s199_s8 = sadd.s32 1, %s2771_s26 }
   0x5   : > { %s196_s9 = ssub.s32 %s2775_s27, %s2850_s30  ;;  %p209_p0 = scmp.ne.s32.totalorder %s2771_s26, %s2767_s25 }
   0x6   : > { %p197_p1 = scmp.eq.s32.totalorder %s196_s9, 0  ;;  %p210_p2 = scmp.eq.s32.totalorder %s2846_s28, 3 }
   0x7   : > { %p215_p3 = scmp.ne.s32.totalorder %s2767_s25, %s2763_s24  ;;  %p216_p4 = scmp.eq.s32.totalorder %s2453_s29, 3 }
   0x8   : > { %s2861_s10 = scalar_select %p197_p1, %s2771_s26, %s199_s8  }
   0x9   : > { %p2863_p5 = por %p210_p2, %p209_p0  ;;  %p2867_p6 = por %p216_p4, %p215_p3 }
   0xa   : > { %p2456_p7 = scmp.ge.s32.totalorder %s2775_s27, 1  ;;  %p285_p8 = scmp.lt.s32.totalorder %s2775_s27, 5 }
   0xc   : > { %p286_p9 = pnand %p2456_p7, %p285_p8 }
   0xd   : > { %s2458_s17 = sshll.u32 (!%p286_p9), %s2846_s28, 1  ;;  %s2781_s13 = smov (!%p286_p9), 3  }
   0xe   : > { %289 = sbr.rel (%p286_p9) target bundleno = 998 (0x3e6), region = 48  ;;  %p338_p10 = scmp.lt.s32.totalorder (!%p286_p9), %s2458_s17, 7 }
   0xf   : > { %s334_s14 = sand.u32 (!%p286_p9), 1, %s2767_s25   ;;  %s2555_s19 = sshll.u32 (!%p286_p9), %s2846_s28, 8 }
  0x10   : > { %s2457_s15 = sshll.u32 (!%p286_p9), %s334_s14, 4  ;;  %s3605_s28 = scalar_lea.sflag (!%p286_p9), [#allocation3], %s334_s14 }
  0x11   : > { %s3549_s18 = scalar_lea.vmem (!%p286_p9), [#allocation2], %s2457_s15  ;;  %s2782_s29 = smov (!%p286_p9), [#allocation2]  }
  0x12   : > { %s2719_s8 = sshll.u32 (!%p286_p9), %s2782_s29, 4  ;;  %s2720_s8 = int_to_ptr.vmem [resolvable:$false] %s2719_s8 }
  0x13   : > { %v374_v0 = vld [vmem:[%s3646_s1 + $0x18] sm:$0xff]  ;;  %v373_v1 = vld [vmem:[%s3646_s1 + $0x10] sm:$0xff]  ;;  %v498_v2 = vlaneseq  ;;  %v372_v5 = vld [vmem:[%s3646_s1 + $0x8] sm:$0xff]  ;;  %s3660_s17 = smov (!%p338_p10, %s2458_s17), 7  ;;  %vm387_vm0 = vcmask 261120   ;;  %vm1230_vm1 = vcmask 64512  }
  0x14   : > { %2586 = vmatprep.subr.mxu0 %v374_v0  ;;  %v381_v3 = vld [vmem:[%s3647_s2 + $0x30] sm:$0xff]  ;;  %v382_v4 = vld [vmem:[%s3647_s2 + $0x38] sm:$0xff]  ;;  %v379_v7 = vld [vmem:[%s3647_s2 + $0x20] sm:$0xff]  ;;  %s2901_s16 = sshll.u32 %s3660_s17, 3  ;;  %vm720_vm6 = vcmask 523264  }
  0x15   : > { %2587 = vmatpush3.msra.mxu0 %v374_v0  ;;  %v386_v6 = vpack.c.bf16 %v382_v4, %v381_v3  ;;  %v380_v8 = vld [vmem:[%s3647_s2 + $0x28] sm:$0xff]  ;;  %v2896_v9 = vshrl.u32 %v498_v2, 7  ;;  %v371_v10 = vld [vmem:[%s3646_s1] sm:$0xff]  ;;  %s341_s20 = scalar_lea.vmem %s3645_s0, %s2901_s16  ;;  %s2911_s23 = scalar_lea.vmem %s3650_s5, %s2901_s16  ;;  %v377_v18 = vld [vmem:[%s3647_s2 + $0x10] sm:$0xff] }
  0x16   : > { %2588 = vmatprep.subr.mxu0 %v373_v1  ;;  %v385_v11 = vpack.c.bf16 %v380_v8, %v379_v7  ;;  %v2913_v12 = vld [vmem:[%s341_s20] sm:$0xff]  ;;  %v2923_v15 = vld [vmem:[%s341_s20 + $0x8] sm:$0xff]  ;;  %v378_v19 = vld [vmem:[%s3647_s2 + $0x18] sm:$0xff]  ;;  %s2960_s21 = scalar_lea.vmem %s3649_s4, %s2901_s16  ;;  %s347_s17 = scalar_lea.vmem %s3648_s3, %s2901_s16 }
  0x17   : > { %2589 = vmatpush3.msra.mxu0 %v373_v1  ;;  %2597 = vmatprep.subr.bf16.mxu1 %v386_v6  ;;  %v2916_v13 = vsub.s32 2, %v2896_v9  ;;  %v2919_v14 = vsub.s32 0, %v2896_v9  ;;  %v2926_v16 = vsub.s32 3, %v2896_v9  ;;  %v2929_v17 = vsub.s32 1, %v2896_v9  ;;  %v1400_v20 = vld [vmem:[%s2911_s23] sm:$0xff]  ;;  %v376_v29 = vld [vmem:[%s3647_s2 + $0x8] sm:$0xff]  ;;  %s3061_s9 = scalar_lea.vmem %s3651_s6, %s2901_s16 }
  0x18   : > { %2590 = vmatprep.subr.mxu0 %v372_v5  ;;  %2598 = vmatpush3.bf16.msra.mxu1 %v386_v6  ;;  %v384_v23 = vpack.c.bf16 %v378_v19, %v377_v18  ;;  %v2945_v26 = vsub.s32 5, %v2896_v9  ;;  %v2948_v27 = vsub.s32 4, %v2896_v9  ;;  %v375_v28 = vld [vmem:[%s3647_s2] sm:$0xff]  ;;  %v2965_v33 = vsub.s32 7, %v2896_v9  ;;  %v2971_v35 = vld [vmem:[%s2960_s21 + $0x8] sm:$0xff]  ;;  %s2780_s16 = smov 127  }
  0x19   : > { %2591 = vmatpush3.msra.mxu0 %v372_v5  ;;  %2599 = vmatprep.subr.bf16.mxu1 %v385_v11  ;;  %v1421_v21 = vrot.slane %v1400_v20, %v2916_v13  ;;  %v1407_v22 = vrot.slane %v1400_v20, %v2919_v14  ;;  %v1428_v24 = vrot.slane %v1400_v20, %v2926_v16  ;;  %v2968_v34 = vsub.s32 6, %v2896_v9  ;;  %v1401_v39 = vld [vmem:[%s2911_s23 + $0x8] sm:$0xff]  ;;  %v500_v48 = vld [vmem:[%s347_s17] sm:$0xff]  ;;  %s2343_s20 = sshll.u32 %s3549_s18, 4  ;;  %s3591_s23 = scalar_lea.hbm %s3652_s7, %s2555_s19  ;;  %s3593_s20 = int_to_ptr.vmem [resolvable:$true] %s2343_s20 }
  0x1a   : > { %2592 = vmatprep.subr.mxu0 %v371_v10  ;;  %2594 = vmatprep.mubr.msk.f32.mxu0 %vm387_vm0, %v2913_v12  ;;  %v1414_v25 = vrot.slane %v1400_v20, %v2929_v17  ;;  %v383_v30 = vpack.c.bf16 %v376_v29, %v375_v28  ;;  %v1442_v31 = vrot.slane %v1400_v20, %v2945_v26  ;;  %v501_v57 = vld [vmem:[%s347_s17 + $0x8] sm:$0xff]  ;;  %v502_v3 = vld [vmem:[%s2960_s21] sm:$0xff]  ;;  %v3033_v28 = vand.u32 127, %v498_v2  ;;  %s2715_s17 = scalar_lea.vmem %s3593_s20, 256  ;;  %p2722_p0 = scmp.lt.s32.totalorder %s3593_s20, %s2720_s8 }
  0x1b   : > { %2593 = vmatpush3.msra.mxu0 %v371_v10  ;;  %1423 = vbcast.lane.b32.xlu1 %v1421_v21, 256  ;;  %v1435_v32 = vrot.slane %v1400_v20, %v2948_v27  ;;  %v1456_v36 = vrot.slane %v1400_v20, %v2965_v33  ;;  %v1449_v37 = vrot.slane %v1400_v20, %v2968_v34  ;;  %p2716_p11 = scmp.ne.s32.totalorder %s3593_s20, %s2715_s17 }
  0x1c   : > { %2621 = vmatprep.subr.bf16.mxu0 %v386_v6  ;;  %2595 = vmatmul.mubr.msk.f32.vlgmr.msra.gmra.mxu0 %vm387_vm0, %v2923_v15  ;;  %v1152_v38 = vrot.slane %v2971_v35, %v2929_v17  ;;  %v1470_v40 = vrot.slane %v1401_v39, %v2929_v17  ;;  %v1463_v41 = vrot.slane %v1401_v39, %v2919_v14 }
  0x1d   : > { %2622 = vmatpush3.bf16.msra.mxu0 %v386_v6  ;;  %1409 = vbcast.lane.b32.xlu0 %v1407_v22, 256  ;;  %v1484_v42 = vrot.slane %v1401_v39, %v2926_v16  ;;  %v1477_v43 = vrot.slane %v1401_v39, %v2916_v13  ;;  %v1498_v44 = vrot.slane %v1401_v39, %v2945_v26  ;;  %p2717_p12 = pnand %p2716_p11, %p2863_p5 }
  0x1e   : > { %2623 = vmatprep.subr.bf16.mxu0 %v385_v11  ;;  %2600 = vmatpush3.bf16.msra.mxu1 %v385_v11  ;;  %v1491_v45 = vrot.slane %v1401_v39, %v2948_v27  ;;  %v1512_v46 = vrot.slane %v1401_v39, %v2965_v33  ;;  %v1505_v47 = vrot.slane %v1401_v39, %v2968_v34 }
  0x1f   : > { %1430 = vbcast.lane.b32.xlu1 %v1428_v24, 256  ;;  %2601 = vmatprep.subr.bf16.mxu1 %v384_v23  ;;  %v514_v49 = vrot.slane %v500_v48, %v2929_v17  ;;  %v507_v50 = vrot.slane %v500_v48, %v2919_v14  ;;  %v528_v51 = vrot.slane %v500_v48, %v2926_v16  ;;  %p2718_p13 = pneg %p2717_p12 }
  0x20   : > { %v521_v52 = vrot.slane %v500_v48, %v2916_v13  ;;  %v542_v53 = vrot.slane %v500_v48, %v2945_v26  ;;  %v535_v54 = vrot.slane %v500_v48, %v2948_v27  ;;  %v556_v55 = vrot.slane %v500_v48, %v2965_v33 }
  0x21   : > { %2624 = vmatpush3.bf16.msra.mxu0 %v385_v11  ;;  %1416 = vbcast.lane.b32.xlu0 %v1414_v25, 256  ;;  %v549_v56 = vrot.slane %v500_v48, %v2968_v34  ;;  %v570_v58 = vrot.slane %v501_v57, %v2929_v17  ;;  %v563_v59 = vrot.slane %v501_v57, %v2919_v14 }
  0x22   : > { %2625 = vmatprep.subr.bf16.mxu0 %v384_v23  ;;  %2602 = vmatpush3.bf16.msra.mxu1 %v384_v23  ;;  %v584_v60 = vrot.slane %v501_v57, %v2926_v16  ;;  %v577_v61 = vrot.slane %v501_v57, %v2916_v13  ;;  %v598_v62 = vrot.slane %v501_v57, %v2945_v26 }
  0x23   : > { %1444 = vbcast.lane.b32.xlu1 %v1442_v31, 256  ;;  %2603 = vmatprep.subr.bf16.mxu1 %v383_v30  ;;  %v591_v63 = vrot.slane %v501_v57, %v2948_v27  ;;  %v612_v0 = vrot.slane %v501_v57, %v2965_v33  ;;  %v605_v1 = vrot.slane %v501_v57, %v2968_v34  ;;  %v1231_v31 = vsel %vm1230_vm1, %v502_v3, 0.0 }
  0x24   : > { %v1089_v4 = vrot.slane %v502_v3, %v2919_v14  ;;  %v1096_v5 = vrot.slane %v502_v3, %v2929_v17  ;;  %v1103_v6 = vrot.slane %v502_v3, %v2916_v13  ;;  %v1117_v7 = vrot.slane %v502_v3, %v2948_v27 }
  0x25   : > { %2626 = vmatpush3.bf16.msra.mxu0 %v384_v23  ;;  %1437 = vbcast.lane.b32.xlu0 %v1435_v32, 256  ;;  %v1110_v8 = vrot.slane %v502_v3, %v2926_v16  ;;  %v1131_v10 = vrot.slane %v502_v3, %v2968_v34  ;;  %v1124_v11 = vrot.slane %v502_v3, %v2945_v26 }
  0x26   : > { %2627 = vmatprep.subr.bf16.mxu0 %v383_v30  ;;  %2604 = vmatpush3.bf16.msra.mxu1 %v383_v30  ;;  %v1145_v18 = vrot.slane %v2971_v35, %v2919_v14  ;;  %v1138_v19 = vrot.slane %v502_v3, %v2965_v33  ;;  %v1159_v20 = vrot.slane %v2971_v35, %v2916_v13 }
  0x27   : > { %1458 = vbcast.lane.b32.xlu1 %v1456_v36, 256  ;;  %v1173_v21 = vrot.slane %v2971_v35, %v2948_v27  ;;  %v1166_v22 = vrot.slane %v2971_v35, %v2926_v16  ;;  %v1187_v23 = vrot.slane %v2971_v35, %v2968_v34  ;;  %v1180_v24 = vrot.slane %v2971_v35, %v2945_v26 }
  0x28   : > { %v1194_v25 = vrot.slane %v2971_v35, %v2965_v33 }
  0x29   : > { %2628 = vmatpush3.bf16.msra.mxu0 %v383_v30  ;;  %1451 = vbcast.lane.b32.xlu0 %v1449_v37, 256  ;;  %v2777_v37 = vmov 0.0  }
  0x2a   : > { %2141 = vst [vmem:[%s3549_s18] sm:$0xff] %v2777_v37  ;;  %2142 = vst [vmem:[%s3549_s18 + $0x8] sm:$0xff] %v2777_v37 }
  0x2b   : > { %1472 = vbcast.lane.b32.xlu1 %v1470_v40, 256 }
  0x2d   : > { %1465 = vbcast.lane.b32.xlu0 %v1463_v41, 256 }
  0x2f   : > { %1486 = vbcast.lane.b32.xlu1 %v1484_v42, 256 }
  0x31   : > { %1479 = vbcast.lane.b32.xlu0 %v1477_v43, 256 }
  0x33   : > { %1500 = vbcast.lane.b32.xlu1 %v1498_v44, 256 }
  0x35   : > { %1493 = vbcast.lane.b32.xlu0 %v1491_v45, 256 }
  0x37   : > { %1514 = vbcast.lane.b32.xlu1 %v1512_v46, 256 }
  0x39   : > { %1507 = vbcast.lane.b32.xlu0 %v1505_v47, 256 }
  0x3b   : > { %516 = vbcast.lane.b32.xlu1 %v514_v49, 256 }
  0x3d   : > { %509 = vbcast.lane.b32.xlu0 %v507_v50, 256 }
  0x3f   : > { %530 = vbcast.lane.b32.xlu1 %v528_v51, 256 }
  0x41   : > { %523 = vbcast.lane.b32.xlu0 %v521_v52, 256 }
  0x43   : > { %544 = vbcast.lane.b32.xlu1 %v542_v53, 256  ;;  %v1234_v53 = vsel %vm1230_vm1, %v2971_v35, 0.0 }
  0x45   : > { %537 = vbcast.lane.b32.xlu0 %v535_v54, 256 }
  0x47   : > { %558 = vbcast.lane.b32.xlu1 %v556_v55, 256 }
  0x49   : > { %551 = vbcast.lane.b32.xlu0 %v549_v56, 256 }
  0x4b   : > { %572 = vbcast.lane.b32.xlu1 %v570_v58, 256  ;;  %v3069_v58 = vld [vmem:[%s3061_s9] sm:$0xff] }
  0x4d   : > { %565 = vbcast.lane.b32.xlu0 %v563_v59, 256 }
  0x4f   : > { %586 = vbcast.lane.b32.xlu1 %v584_v60, 256 }
  0x51   : > { %579 = vbcast.lane.b32.xlu0 %v577_v61, 256 }
  0x53   : > { %600 = vbcast.lane.b32.xlu1 %v598_v62, 256 }
  0x55   : > { %593 = vbcast.lane.b32.xlu0 %v591_v63, 256 }
  0x57   : > { %614 = vbcast.lane.b32.xlu1 %v612_v0, 256  ;;  %v1817_v0 = vrot.slane %v3069_v58, %v2929_v17 }
  0x59   : > { %607 = vbcast.lane.b32.xlu0 %v605_v1, 256 }
  0x5b   : > { %1091 = vbcast.lane.b32.xlu1 %v1089_v4, 256 }
  0x5d   : > { %1098 = vbcast.lane.b32.xlu0 %v1096_v5, 256 }
  0x5f   : > { %1105 = vbcast.lane.b32.xlu1 %v1103_v6, 256 }
  0x61   : > { %1119 = vbcast.lane.b32.xlu0 %v1117_v7, 256  ;;  %v1824_v7 = vrot.slane %v3069_v58, %v2916_v13 }
  0x63   : > { %1112 = vbcast.lane.b32.xlu1 %v1110_v8, 256 }
  0x65   : > { %1133 = vbcast.lane.b32.xlu0 %v1131_v10, 256 }
  0x67   : > { %1126 = vbcast.lane.b32.xlu1 %v1124_v11, 256 }
  0x69   : > { %1147 = vbcast.lane.b32.xlu0 %v1145_v18, 256 }
  0x6b   : > { %1140 = vbcast.lane.b32.xlu1 %v1138_v19, 256 }
  0x6d   : > { %1161 = vbcast.lane.b32.xlu0 %v1159_v20, 256  ;;  %v1810_v20 = vrot.slane %v3069_v58, %v2919_v14 }
  0x6f   : > { %1154 = vbcast.lane.b32.xlu1 %v1152_v38, 256 }
  0x71   : > { %1175 = vbcast.lane.b32.xlu0 %v1173_v21, 256  ;;  %v1831_v21 = vrot.slane %v3069_v58, %v2926_v16 }
  0x73   : > { %1168 = vbcast.lane.b32.xlu1 %v1166_v22, 256  ;;  %v3095_v22 = vld [vmem:[%s3061_s9 + $0x8] sm:$0xff]  ;;  %s2721_s9 = scalar_lea.vmem %s2720_s8, 512 }
  0x74   : > { %p2723_p1 = scmp.lt.s32.totalorder %s2721_s9, %s2715_s17 }
  0x75   : > { %1189 = vbcast.lane.b32.xlu0 %v1187_v23, 256 }
  0x76   : > { %p2724_p2 = por %p2723_p1, %p2722_p0 }
  0x77   : > { %1182 = vbcast.lane.b32.xlu1 %v1180_v24, 256 }
  0x78   : > { %p2725_p3 = pnand %p2724_p2, %p2718_p13 }
  0x7b   : > { %1196 = vbcast.lane.b32.xlu1 %v1194_v25, 256 }
  0x8d   : > { %v1424_v29 = vpop.permute.xlu1 %1423 }
  0x8e   : > { %vm1518_vm2 = vcmp.eq.s32.totalorder %v3033_v28, %v1424_v29 }
  0x8f   : > { %v1410_v30 = vpop.permute.xlu0 %1409  ;;  %v2504_v2 = vsel %vm1518_vm2, 1.0, %v2777_v37 }
  0x90   : > { %vm1516_vm3 = vcmp.eq.s32.totalorder %v3033_v28, %v1410_v30 }
  0x91   : > { %v1431_v32 = vpop.permute.xlu1 %1430  ;;  %v2502_v38 = vsel %vm1516_vm3, 1.0, %v2777_v37 }
  0x92   : > { %vm1519_vm4 = vcmp.eq.s32.totalorder %v3033_v28, %v1431_v32  ;;  %v1838_v32 = vrot.slane %v3069_v58, %v2948_v27 }
  0x93   : > { %v1417_v36 = vpop.permute.xlu0 %1416  ;;  %v2505_v39 = vsel %vm1519_vm4, 1.0, %v2777_v37 }
  0x94   : > { %vm1517_vm5 = vcmp.eq.s32.totalorder %v3033_v28, %v1417_v36  ;;  %1232 = vadd.xlane.f32.xlu0 %v1231_v31  ;;  %v2548_v41 = vpack.c.bf16 %v2505_v39, %v2504_v2  ;;  %v1866_v31 = vrot.slane %v3095_v22, %v2919_v14 }
  0x95   : > { %v2503_v40 = vsel %vm1517_vm5, 1.0, %v2777_v37  ;;  %v1445_v43 = vpop.permute.xlu1 %1444 }
  0x96   : > { %v2547_v42 = vpack.c.bf16 %v2503_v40, %v2502_v38  ;;  %vm1521_vm7 = vcmp.eq.s32.totalorder %v3033_v28, %v1445_v43 }
  0x97   : > { %v1438_v44 = vpop.permute.xlu0 %1437  ;;  %v2507_v45 = vsel %vm1521_vm7, 1.0, %v2777_v37 }
  0x98   : > { %vm1520_vm8 = vcmp.eq.s32.totalorder %v3033_v28, %v1438_v44  ;;  %2629 = vmatprep.mubr.msk.bf16.mxu0 %vm720_vm6, %v2547_v42  ;;  %v1845_v42 = vrot.slane %v3069_v58, %v2945_v26 }
  0x99   : > { %v2506_v46 = vsel %vm1520_vm8, 1.0, %v2777_v37  ;;  %2630 = vmatmul.mubr.msk.bf16.vlgmr.msra.gmra.mxu0 %vm720_vm6, %v2548_v41  ;;  %v1459_v48 = vpop.permute.xlu1 %1458  ;;  %v1873_v41 = vrot.slane %v3095_v22, %v2929_v17 }
  0x9a   : > { %v2549_v47 = vpack.c.bf16 %v2507_v45, %v2506_v46  ;;  %vm1523_vm9 = vcmp.eq.s32.totalorder %v3033_v28, %v1459_v48 }
  0x9b   : > { %v1452_v49 = vpop.permute.xlu0 %1451  ;;  %v2509_v50 = vsel %vm1523_vm9, 1.0, %v2777_v37 }
  0x9c   : > { %vm1522_vm10 = vcmp.eq.s32.totalorder %v3033_v28, %v1452_v49  ;;  %2633 = vmatprep.mubr.msk.bf16.mxu0 %vm720_vm6, %v2549_v47 }
  0x9d   : > { %v2508_v51 = vsel %vm1522_vm10, 1.0, %v2777_v37  ;;  %v1473_v54 = vpop.permute.xlu1 %1472 }
  0x9e   : > { %v2550_v52 = vpack.c.bf16 %v2509_v50, %v2508_v51  ;;  %vm1525_vm11 = vcmp.eq.s32.totalorder %v3033_v28, %v1473_v54 }
  0x9f   : > { %v1466_v55 = vpop.permute.xlu0 %1465  ;;  %v2511_v56 = vsel %vm1525_vm11, 1.0, %v2777_v37  ;;  %1235 = vadd.xlane.f32.xlu1 %v1234_v53 }
  0xa0   : > { %vm1524_vm12 = vcmp.eq.s32.totalorder %v3033_v28, %v1466_v55 }
  0xa1   : > { %v2510_v57 = vsel %vm1524_vm12, 1.0, %v2777_v37  ;;  %2634 = vmatmul.mubr.msk.bf16.gmra.mxu0 %vm720_vm6, %v2550_v52  ;;  %v1487_v59 = vpop.permute.xlu1 %1486 }
  0xa2   : > { %v2551_v35 = vpack.c.bf16 %v2511_v56, %v2510_v57  ;;  %vm1527_vm13 = vcmp.eq.s32.totalorder %v3033_v28, %v1487_v59 }
  0xa3   : > { %v1480_v60 = vpop.permute.xlu0 %1479  ;;  %v2513_v61 = vsel %vm1527_vm13, 1.0, %v2777_v37 }
  0xa4   : > { %vm1526_vm14 = vcmp.eq.s32.totalorder %v3033_v28, %v1480_v60  ;;  %2637 = vmatprep.mubr.msk.bf16.mxu0 %vm720_vm6, %v2551_v35 }
  0xa5   : > { %v2512_v62 = vsel %vm1526_vm14, 1.0, %v2777_v37  ;;  %v1501_v1 = vpop.permute.xlu1 %1500 }
  0xa6   : > { %v2552_v63 = vpack.c.bf16 %v2513_v61, %v2512_v62  ;;  %vm1529_vm15 = vcmp.eq.s32.totalorder %v3033_v28, %v1501_v1 }
  0xa7   : > { %v1494_v3 = vpop.permute.xlu0 %1493  ;;  %v2515_v4 = vsel %vm1529_vm15, 1.0, %v2777_v37 }
  0xa8   : > { %vm1528_vm2 = vcmp.eq.s32.totalorder %v3033_v28, %v1494_v3 }
  0xa9   : > { %v2514_v5 = vsel %vm1528_vm2, 1.0, %v2777_v37  ;;  %2638 = vmatmul.mubr.msk.bf16.gmra.mxu0 %vm720_vm6, %v2552_v63  ;;  %v1515_v8 = vpop.permute.xlu1 %1514 }
  0xaa   : > { %v2553_v6 = vpack.c.bf16 %v2515_v4, %v2514_v5  ;;  %1819 = vbcast.lane.b32.xlu0 %v1817_v0, 256  ;;  %vm1531_vm3 = vcmp.eq.s32.totalorder %v3033_v28, %v1515_v8 }
  0xab   : > { %v1508_v10 = vpop.permute.xlu0 %1507  ;;  %v2517_v11 = vsel %vm1531_vm3, 1.0, %v2777_v37 }
  0xac   : > { %vm1530_vm4 = vcmp.eq.s32.totalorder %v3033_v28, %v1508_v10  ;;  %2641 = vmatprep.mubr.msk.bf16.mxu0 %vm720_vm6, %v2553_v6 }
  0xad   : > { %v2516_v18 = vsel %vm1530_vm4, 1.0, %v2777_v37  ;;  %v517_v23 = vpop.permute.xlu1 %516 }
  0xae   : > { %v2554_v19 = vpack.c.bf16 %v2517_v11, %v2516_v18  ;;  %1826 = vbcast.lane.b32.xlu0 %v1824_v7, 256  ;;  %vm617_vm5 = vcmp.eq.s32.totalorder %v3033_v28, %v517_v23 }
  0xaf   : > { %v510_v24 = vpop.permute.xlu0 %509  ;;  %v2471_v29 = vsel %vm617_vm5, 1.0, %v2777_v37 }
  0xb0   : > { %vm616_vm7 = vcmp.eq.s32.totalorder %v3033_v28, %v510_v24  ;;  %1812 = vbcast.lane.b32.xlu1 %v1810_v20, 256 }
  0xb1   : > { %2642 = vmatmul.mubr.msk.bf16.gmra.mxu0 %vm720_vm6, %v2554_v19  ;;  %v2470_v25 = vsel %vm616_vm7, 1.0, %v2777_v37  ;;  %v531_v36 = vpop.permute.xlu1 %530 }
  0xb2   : > { %v2539_v30 = vpack.c.bf16 %v2471_v29, %v2470_v25  ;;  %1833 = vbcast.lane.b32.xlu0 %v1831_v21, 256  ;;  %vm619_vm8 = vcmp.eq.s32.totalorder %v3033_v28, %v531_v36  ;;  %v1880_v25 = vrot.slane %v3095_v22, %v2916_v13  ;;  %v1887_v29 = vrot.slane %v3095_v22, %v2926_v16 }
  0xb3   : > { %v524_v2 = vpop.permute.xlu0 %523  ;;  %v2473_v38 = vsel %vm619_vm8, 1.0, %v2777_v37  ;;  %v1901_v36 = vrot.slane %v3095_v22, %v2945_v26  ;;  %v1908_v13 = vrot.slane %v3095_v22, %v2968_v34  ;;  %v1915_v16 = vrot.slane %v3095_v22, %v2965_v33 }
  0xb4   : > { %vm618_vm9 = vcmp.eq.s32.totalorder %v3033_v28, %v524_v2  ;;  %2605 = vmatprep.mubr.msk.bf16.mxu1 %vm720_vm6, %v2539_v30  ;;  %1868 = vbcast.lane.b32.xlu1 %v1866_v31, 256  ;;  %v1852_v30 = vrot.slane %v3069_v58, %v2968_v34  ;;  %v1894_v31 = vrot.slane %v3095_v22, %v2948_v27  ;;  %v2778_v2 = vmov 1966171168  }
  0xb5   : > { %v2472_v39 = vsel %vm618_vm9, 1.0, %v2777_v37  ;;  %v545_v43 = vpop.permute.xlu1 %544  ;;  %v844_v27 = vunpack.c.l.s4 %v2778_v2 }
  0xb6   : > { %v2540_v40 = vpack.c.bf16 %v2473_v38, %v2472_v39  ;;  %1840 = vbcast.lane.b32.xlu0 %v1838_v32, 256  ;;  %vm621_vm10 = vcmp.eq.s32.totalorder %v3033_v28, %v545_v43  ;;  %v1859_v32 = vrot.slane %v3069_v58, %v2965_v33 }
  0xb7   : > { %v538_v44 = vpop.permute.xlu0 %537  ;;  %v2475_v45 = vsel %vm621_vm10, 1.0, %v2777_v37  ;;  %vm475_vm10 = vcmask 23552   ;;  %v845_v38 = vunpack.c.0.s8 %v844_v27 }
  0xb8   : > { %vm620_vm11 = vcmp.eq.s32.totalorder %v3033_v28, %v538_v44  ;;  %2606 = vmatmul.mubr.msk.bf16.vlgmr.msra.gmra.mxu1 %vm720_vm6, %v2540_v40  ;;  %1875 = vbcast.lane.b32.xlu1 %v1873_v41, 256 }
  0xb9   : > { %v2474_v46 = vsel %vm620_vm11, 1.0, %v2777_v37  ;;  %v559_v17 = vpop.permute.xlu1 %558  ;;  %v3171_v39 = vsub.s32 %v845_v38, %v2896_v9 }
  0xba   : > { %v2541_v47 = vpack.c.bf16 %v2475_v45, %v2474_v46  ;;  %1847 = vbcast.lane.b32.xlu0 %v1845_v42, 256  ;;  %vm623_vm12 = vcmp.eq.s32.totalorder %v3033_v28, %v559_v17 }
  0xbb   : > { %v552_v48 = vpop.permute.xlu0 %551  ;;  %v2477_v49 = vsel %vm623_vm12, 1.0, %v2777_v37  ;;  %v849_v40 = vrot.slane %v2913_v12, %v3171_v39  ;;  %vm1371_vm12 = vcmask 1043459  }
  0xbc   : > { %vm622_vm13 = vcmp.eq.s32.totalorder %v3033_v28, %v552_v48  ;;  %2609 = vmatprep.mubr.msk.bf16.mxu1 %vm720_vm6, %v2541_v47 }
  0xbd   : > { %v2476_v50 = vsel %vm622_vm13, 1.0, %v2777_v37  ;;  %v573_v52 = vpop.permute.xlu1 %572  ;;  %v865_v26 = vrot.slane %v849_v40, %v3171_v39  ;;  %vm1373_vm13 = vcmask 1044484  }
  0xbe   : > { %v2542_v51 = vpack.c.bf16 %v2477_v49, %v2476_v50  ;;  %vm625_vm14 = vcmp.eq.s32.totalorder %v3033_v28, %v573_v52 }
  0xbf   : > { %v566_v53 = vpop.permute.xlu0 %565  ;;  %v2479_v54 = vsel %vm625_vm14, 1.0, %v2777_v37  ;;  %v943_v34 = vrot.slane %v865_v26, %v2919_v14  ;;  %vm1375_vm14 = vcmask 1045509  }
  0xc0   : > { %2610 = vmatmul.mubr.msk.bf16.gmra.mxu1 %vm720_vm6, %v2542_v51  ;;  %vm624_vm15 = vcmp.eq.s32.totalorder %v3033_v28, %v566_v53  ;;  %v857_v51 = vcombine.high %v849_v40, %v849_v40  ;;  %v842_v53 = vcombine.high %v2913_v12, %v2913_v12 }
  0xc1   : > { %v2478_v55 = vsel %vm624_vm15, 1.0, %v2777_v37  ;;  %v587_v57 = vpop.permute.xlu1 %586  ;;  %vm1377_vm15 = vcmask 1046534  }
  0xc2   : > { %v2543_v56 = vpack.c.bf16 %v2479_v54, %v2478_v55  ;;  %vm627_vm2 = vcmp.eq.s32.totalorder %v3033_v28, %v587_v57  ;;  %v879_v57 = vrot.slane %v857_v51, %v3171_v39 }
  0xc3   : > { %v580_v35 = vpop.permute.xlu0 %579  ;;  %v2481_v59 = vsel %vm627_vm2, 1.0, %v2777_v37  ;;  %vm1379_vm2 = vcmask 1047559  }
  0xc4   : > { %vm626_vm3 = vcmp.eq.s32.totalorder %v3033_v28, %v580_v35  ;;  %2613 = vmatprep.mubr.msk.bf16.mxu1 %vm720_vm6, %v2543_v56  ;;  %v887_v56 = vcombine.high %v865_v26, %v865_v26  ;;  %v856_v35 = vrot.slane %v842_v53, %v3171_v39 }
  0xc5   : > { %v2480_v60 = vsel %vm626_vm3, 1.0, %v2777_v37  ;;  %v601_v62 = vpop.permute.xlu1 %600  ;;  %vm2146_vm3 = vcmask 15368  }
  0xc6   : > { %v2544_v61 = vpack.c.bf16 %v2481_v59, %v2480_v60  ;;  %vm629_vm4 = vcmp.eq.s32.totalorder %v3033_v28, %v601_v62  ;;  %v872_v40 = vrot.slane %v856_v35, %v3171_v39 }
  0xc7   : > { %v594_v63 = vpop.permute.xlu0 %593  ;;  %v2483_v0 = vsel %vm629_vm4, 1.0, %v2777_v37  ;;  %vm2149_vm4 = vcmask 23568  }
  0xc8   : > { %2614 = vmatmul.mubr.msk.bf16.gmra.mxu1 %vm720_vm6, %v2544_v61  ;;  %vm628_vm5 = vcmp.eq.s32.totalorder %v3033_v28, %v594_v63  ;;  %v858_v61 = vcombine.high %v856_v35, %v856_v35  ;;  %v951_v63 = vrot.slane %v887_v56, %v2919_v14 }
  0xc9   : > { %v2482_v1 = vsel %vm628_vm5, 1.0, %v2777_v37  ;;  %v615_v4 = vpop.permute.xlu1 %614  ;;  %vm2158_vm5 = vcmask 48152  }
  0xca   : > { %v2545_v3 = vpack.c.bf16 %v2483_v0, %v2482_v1  ;;  %vm631_vm7 = vcmp.eq.s32.totalorder %v3033_v28, %v615_v4  ;;  %v889_v0 = vcombine.high %v879_v57, %v879_v57  ;;  %v898_v4 = vrot.slane %v2923_v15, %v3171_v39 }
  0xcb   : > { %v608_v5 = vpop.permute.xlu0 %607  ;;  %v2485_v6 = vsel %vm631_vm7, 1.0, %v2777_v37  ;;  %vm2242_vm7 = vcmask 113712  }
  0xcc   : > { %vm630_vm8 = vcmp.eq.s32.totalorder %v3033_v28, %v608_v5  ;;  %2617 = vmatprep.mubr.msk.bf16.mxu1 %vm720_vm6, %v2545_v3  ;;  %v886_v5 = vrot.slane %v858_v61, %v3171_v39  ;;  %v906_v26 = vcombine.high %v898_v4, %v898_v4  ;;  %v888_v61 = vcombine.high %v872_v40, %v872_v40 }
  0xcd   : > { %v2484_v7 = vsel %vm630_vm8, 1.0, %v2777_v37  ;;  %v3176_v41 = vpop.permute.xlu1 %1091  ;;  %vm2326_vm8 = vcmask 179312  }
  0xce   : > { %v2546_v8 = vpack.c.bf16 %v2485_v6, %v2484_v7  ;;  %v3239_v35 = vrot.slane %v886_v5, %v2919_v14 }
  0xcf   : > { %v3179_v42 = vpop.permute.xlu0 %1098 }
  0xd0   : > { %2618 = vmatmul.mubr.msk.bf16.gmra.mxu1 %vm720_vm6, %v2546_v8  ;;  %vm1369_vm6 = vcmask 1042434  }
  0xd1   : > { %v3181_v45 = vpop.permute.xlu1 %1105 }
  0xd3   : > { %v3184_v47 = vpop.permute.xlu0 %1119 }
  0xd5   : > { %v3186_v17 = vpop.permute.xlu1 %1112 }
  0xd7   : > { %v3188_v48 = vpop.permute.xlu0 %1133 }
  0xd9   : > { %v3190_v49 = vpop.permute.xlu1 %1126 }
  0xdb   : > { %v3192_v50 = vpop.permute.xlu0 %1147 }
  0xdc   : > { %v2596_v10 = vpop.f32.mrf.mxu0 }
  0xdd   : > { %vm470_vm9 = vcmp.ge.f32.partialorder %v2596_v10, 0.0  ;;  %v472_v11 = vmul.f32 0.2, %v2596_v10  ;;  %v3194_v52 = vpop.permute.xlu1 %1140 }
  0xde   : > { %v460_v18 = vpop.f32.mrf.mxu0 }
  0xdf   : > { %vm469_vm11 = vcmp.ge.f32.partialorder %v460_v18, 0.0  ;;  %v471_v19 = vmul.f32 0.2, %v460_v18  ;;  %v3146_v20 = vsel %vm470_vm9, %v2596_v10, %v472_v11  ;;  %v3198_v55 = vpop.permute.xlu0 %1161  ;;  %v955_v10 = vrot.slane %v889_v0, %v2919_v14 }
  0xe0   : > { %v479_v21 = vsel %vm475_vm10, %v3146_v20, -inf  ;;  %v928_v0 = vrot.slane %v906_v26, %v3171_v39 }
  0xe1   : > { %480 = vmax.xlane.f32.xlu1 %v479_v21  ;;  %v3150_v23 = vsel %vm469_vm11, %v460_v18, %v471_v19  ;;  %v3202_v60 = vpop.permute.xlu1 %1154 }
  0xe2   : > { %v476_v24 = vsel %vm475_vm10, %v3150_v23, -inf }
  0xe3   : > { %477 = vmax.xlane.f32.xlu0 %v476_v24  ;;  %v3204_v62 = vpop.permute.xlu0 %1175  ;;  %v947_v24 = vrot.slane %v879_v57, %v2919_v14 }
  0xe5   : > { %v3212_v7 = vpop.permute.xlu1 %1168 }
  0xe7   : > { %v3218_v21 = vpop.permute.xlu0 %1189 }
  0xe9   : > { %v3226_v38 = vpop.permute.xlu1 %1182 }
  0xf2   : > { %1882 = vbcast.lane.b32.xlu1 %v1880_v25, 256 }
  0xf6   : > { %1889 = vbcast.lane.b32.xlu1 %v1887_v29, 256  ;;  %v890_v29 = vcombine.high %v886_v5, %v886_v5 }
  0xf9   : > { %1854 = vbcast.lane.b32.xlu0 %v1852_v30, 256  ;;  %v914_v30 = vrot.slane %v898_v4, %v3171_v39 }
  0xfa   : > { %1896 = vbcast.lane.b32.xlu1 %v1894_v31, 256 }
  0xfd   : > { %1861 = vbcast.lane.b32.xlu0 %v1859_v32, 256 }
  0xfe   : > { %1903 = vbcast.lane.b32.xlu1 %v1901_v36, 256 }
 0x102   : > { %1910 = vbcast.lane.b32.xlu1 %v1908_v13, 256 }
 0x106   : > { %1917 = vbcast.lane.b32.xlu1 %v1915_v16, 256 }
 0x159   : > { %v2631_v43 = vpop.f32.mrf.mxu0 }
 0x15a   : > { %v1743_v8 = vmul.f32 %v2631_v43, %v951_v63  ;;  %v936_v43 = vcombine.high %v914_v30, %v914_v30 }
 0x15b   : > { %v1678_v33 = vpop.f32.mrf.mxu0 }
 0x15c   : > { %v1741_v44 = vmul.f32 %v1678_v33, %v943_v34  ;;  %v1763_v13 = vsel %vm387_vm0, %v1743_v8, 0.0 }
 0x15d   : > { %v2632_v54 = vpop.f32.mrf.mxu0 }
 0x15e   : > { %v1757_v46 = vsel %vm387_vm0, %v1741_v44, 0.0  ;;  %v3229_v44 = vpop.xlane.xlu0 %1232 }
 0x15f   : > { %1758 = vadd.xlane.f32.xlu0 %v1757_v46  ;;  %v1681_v59 = vpop.f32.mrf.mxu0  ;;  %v3232_v46 = vrot.slane %v890_v29, %v2919_v14  ;;  %v1237_v37 = vmax.f32 %v3229_v44, 1.0 }
 0x160   : > { %v1742_v4 = vmul.f32 %v1681_v59, %v947_v24  ;;  %v3257_v59 = vrot.slane %v914_v30, %v2919_v14 }
 0x161   : > { %v3207_v1 = vpop.f32.mrf.mxu0 }
 0x162   : > { %v3254_v29 = vpop.permute.xlu0 %1819 }
 0x163   : > { %v3216_v18 = vpop.f32.mrf.mxu0 }
 0x165   : > { %v3224_v2 = vpop.f32.mrf.mxu0 }
 0x167   : > { %v3236_v56 = vpop.f32.mrf.mxu0 }
 0x169   : > { %v2639_v5 = vpop.f32.mrf.mxu0 }
 0x16b   : > { %v1710_v26 = vpop.f32.mrf.mxu0 }
 0x178   : > { %v2607_v12 = vpop.f32.mrf.mxu1 }
 0x179   : > { %v1022_v3 = vmul.f32 %v2607_v12, %v951_v63 }
 0x17a   : > { %v779_v6 = vpop.f32.mrf.mxu1 }
 0x17b   : > { %v1042_v11 = vsel %vm387_vm0, %v1022_v3, 0.0  ;;  %v1020_v32 = vmul.f32 %v943_v34, %v779_v6  ;;  %v1744_v34 = vmul.f32 %v2632_v54, %v955_v10  ;;  %v3243_v54 = vrot.slane %v936_v43, %v2919_v14  ;;  %v3246_v3 = vpop.permute.xlu1 %1196 }
 0x17c   : > { %v2608_v19 = vpop.f32.mrf.mxu1  ;;  %1043 = vadd.xlane.f32.xlu1 %v1042_v11  ;;  %v2779_v11 = vmov 0  }
 0x17d   : > { %v1023_v25 = vmul.f32 %v2608_v19, %v955_v10  ;;  %v1036_v51 = vsel %vm387_vm0, %v1020_v32, 0.0  ;;  %v1766_v8 = vsel %vm387_vm0, %v1744_v34, 0.0  ;;  %2691 = vset.pattern.permute.xlu1 %v2779_v11  ;;  %2692 = vset.pattern.permute.xlu0 %v2779_v11  ;;  %v1751_v32 = vmul.f32 %v2639_v5, %v3243_v54  ;;  %v2640_v11 = vpop.f32.mrf.mxu0 }
 0x17e   : > { %v782_v31 = vpop.f32.mrf.mxu1  ;;  %v891_v34 = vcombine.high %v2923_v15, %v2923_v15 }
 0x17f   : > { %v1021_v36 = vmul.f32 %v947_v24, %v782_v31  ;;  %v1045_v16 = vsel %vm387_vm0, %v1023_v25, 0.0  ;;  %v967_v25 = vrot.slane %v888_v61, %v2919_v14  ;;  %v938_v24 = vcombine.high %v928_v0, %v928_v0  ;;  %v3259_v31 = vpop.xlane.xlu1 %1235  ;;  %v3273_v61 = vpop.permute.xlu0 %1826 }
 0x180   : > { %v2611_v27 = vpop.f32.mrf.mxu1  ;;  %1764 = vadd.xlane.f32.xlu1 %v1763_v13  ;;  %1046 = vadd.xlane.f32.xlu0 %v1045_v16  ;;  %v1760_v13 = vsel %vm387_vm0, %v1742_v4, 0.0  ;;  %v959_v4 = vrot.slane %v872_v40, %v2919_v14 }
 0x181   : > { %v1039_v53 = vsel %vm387_vm0, %v1021_v36, 0.0  ;;  %v1026_v36 = vmul.f32 %v2611_v27, %v967_v25  ;;  %v987_v30 = vrot.slane %v938_v24, %v2919_v14 }
 0x182   : > { %v795_v33 = vpop.f32.mrf.mxu1  ;;  %v1745_v40 = vmul.f32 %v3216_v18, %v959_v4  ;;  %v1713_v18 = vpop.f32.mrf.mxu0 }
 0x183   : > { %v1054_v27 = vsel %vm387_vm0, %v1026_v36, 0.0  ;;  %v1752_v36 = vmul.f32 %v2640_v11, %v987_v30 }
 0x184   : > { %v2612_v57 = vpop.f32.mrf.mxu1  ;;  %1037 = vadd.xlane.f32.xlu1 %v1036_v51  ;;  %1040 = vadd.xlane.f32.xlu0 %v1039_v53  ;;  %v1747_v51 = vmul.f32 %v3207_v1, %v967_v25  ;;  %v1749_v53 = vmul.f32 %v1710_v26, %v3257_v59  ;;  %v3282_v25 = vpop.permute.xlu0 %1833 }
 0x185   : > { %v1027_v63 = vmul.f32 %v2612_v57, %v3232_v46  ;;  %v1787_v57 = vsel %vm387_vm0, %v1751_v32, 0.0 }
 0x186   : > { %v798_v12 = vpop.f32.mrf.mxu1  ;;  %v1775_v1 = vsel %vm387_vm0, %v1747_v51, 0.0  ;;  %v1748_v51 = vmul.f32 %v3224_v2, %v3232_v46 }
 0x187   : > { %v1025_v6 = vmul.f32 %v3239_v35, %v798_v12  ;;  %v1057_v10 = vsel %vm387_vm0, %v1027_v63, 0.0  ;;  %v3275_v12 = vpop.permute.xlu1 %1812 }
 0x188   : > { %1767 = vadd.xlane.f32.xlu1 %v1766_v8  ;;  %1058 = vadd.xlane.f32.xlu0 %v1057_v10  ;;  %v3251_v19 = vpop.f32.mrf.mxu1  ;;  %v1024_v8 = vmul.f32 %v959_v4, %v795_v33  ;;  %v1781_v10 = vsel %vm387_vm0, %v1749_v53, 0.0  ;;  %v1778_v46 = vsel %vm387_vm0, %v1748_v51, 0.0 }
 0x189   : > { %v1051_v16 = vsel %vm387_vm0, %v1025_v6, 0.0  ;;  %v905_v6 = vrot.slane %v891_v34, %v3171_v39 }
 0x18a   : > { %v3264_v43 = vpop.f32.mrf.mxu1  ;;  %v1048_v33 = vsel %vm387_vm0, %v1024_v8, 0.0  ;;  %v2643_v8 = vpop.f32.mrf.mxu0 }
 0x18b   : > { %v921_v24 = vrot.slane %v905_v6, %v3171_v39  ;;  %v3285_v32 = vpop.permute.xlu1 %1868  ;;  %v907_v34 = vcombine.high %v905_v6, %v905_v6 }
 0x18c   : > { %1761 = vadd.xlane.f32.xlu1 %v1760_v13  ;;  %1052 = vadd.xlane.f32.xlu0 %v1051_v16  ;;  %v2616_v63 = vpop.f32.mrf.mxu1  ;;  %v979_v16 = vrot.slane %v928_v0, %v2919_v14 }
 0x18d   : > { %v1031_v15 = vmul.f32 %v2616_v63, %v987_v30  ;;  %v937_v26 = vcombine.high %v921_v24, %v921_v24  ;;  %v3294_v63 = vpop.permute.xlu0 %1840  ;;  %v935_v0 = vrot.slane %v907_v34, %v3171_v39  ;;  %v991_v11 = vrot.slane %v921_v24, %v2919_v14 }
 0x18e   : > { %v814_v13 = vpop.f32.mrf.mxu1  ;;  %v1750_v2 = vmul.f32 %v1713_v18, %v979_v16  ;;  %v1030_v39 = vmul.f32 %v3251_v19, %v3243_v54  ;;  %v1028_v24 = vmul.f32 %v3257_v59, %v3264_v43 }
 0x18f   : > { %v1069_v5 = vsel %vm387_vm0, %v1031_v15, 0.0  ;;  %v1029_v53 = vmul.f32 %v979_v16, %v814_v13  ;;  %v3296_v30 = vpop.permute.xlu1 %1875  ;;  %v999_v4 = vrot.slane %v937_v26, %v2919_v14  ;;  %v1746_v15 = vmul.f32 %v3236_v56, %v3239_v35 }
 0x190   : > { %1055 = vadd.xlane.f32.xlu1 %v1054_v27  ;;  %1788 = vadd.xlane.f32.xlu0 %v1787_v57  ;;  %v1769_v27 = vsel %vm387_vm0, %v1745_v40, 0.0  ;;  %v1790_v57 = vsel %vm387_vm0, %v1752_v36, 0.0  ;;  %v1784_v35 = vsel %vm387_vm0, %v1750_v2, 0.0  ;;  %v1066_v51 = vsel %vm387_vm0, %v1030_v39, 0.0 }
 0x191   : > { %v1063_v6 = vsel %vm387_vm0, %v1029_v53, 0.0  ;;  %v1755_v36 = vmul.f32 %v2643_v8, %v999_v4  ;;  %v1772_v56 = vsel %vm387_vm0, %v1746_v15, 0.0 }
 0x193   : > { %v481_v40 = vpop.xlane.xlu1 %480  ;;  %v1799_v54 = vsel %vm387_vm0, %v1755_v36, 0.0 }
 0x194   : > { %1776 = vadd.xlane.f32.xlu1 %v1775_v1  ;;  %1782 = vadd.xlane.f32.xlu0 %v1781_v10  ;;  %v2619_v1 = vpop.f32.mrf.mxu1  ;;  %v3304_v10 = vpop.permute.xlu0 %1847  ;;  %v483_v16 = vsub.f32 %v3146_v20, %v481_v40  ;;  %v1060_v20 = vsel %vm387_vm0, %v1028_v24, 0.0 }
 0x196   : > { %v827_v13 = vpop.f32.mrf.mxu1  ;;  %v486_v18 = vmul.f32 1.442695, %v483_v16 }
 0x197   : > { %v1883_v16 = vpop.permute.xlu1 %1882 }
 0x198   : > { %1049 = vadd.xlane.f32.xlu1 %v1048_v33  ;;  %1070 = vadd.xlane.f32.xlu0 %v1069_v5  ;;  %v939_v5 = vcombine.high %v935_v0, %v935_v0  ;;  %v1726_v33 = vpop.f32.mrf.mxu0  ;;  %v478_v19 = vpop.xlane.xlu0 %477  ;;  %2695 = vpow2.f32 %v486_v18 }
 0x199   : > { %v1753_v34 = vmul.f32 %v1726_v33, %v991_v11  ;;  %v2620_v53 = vpop.f32.mrf.mxu1  ;;  %v482_v15 = vsub.f32 %v3150_v23, %v478_v19  ;;  %v995_v23 = vrot.slane %v935_v0, %v2919_v14 }
 0x19a   : > { %v1003_v26 = vrot.slane %v939_v5, %v2919_v14  ;;  %v1032_v5 = vmul.f32 %v991_v11, %v827_v13 }
 0x19b   : > { %v1793_v2 = vsel %vm387_vm0, %v1753_v34, 0.0 }
 0x19c   : > { %1770 = vadd.xlane.f32.xlu1 %v1769_v27  ;;  %1791 = vadd.xlane.f32.xlu0 %v1790_v57  ;;  %v1034_v27 = vmul.f32 %v2619_v1, %v999_v4  ;;  %v1035_v57 = vmul.f32 %v2620_v53, %v1003_v26  ;;  %v830_v4 = vpop.f32.mrf.mxu1  ;;  %v1072_v40 = vsel %vm387_vm0, %v1032_v5, 0.0 }
 0x19d   : > { %v1033_v1 = vmul.f32 %v995_v23, %v830_v4 }
 0x19e   : > { %v1078_v59 = vsel %vm387_vm0, %v1034_v27, 0.0  ;;  %v1081_v43 = vsel %vm387_vm0, %v1035_v57, 0.0 }
 0x1a0   : > { %1779 = vadd.xlane.f32.xlu1 %v1778_v46  ;;  %1064 = vadd.xlane.f32.xlu0 %v1063_v6  ;;  %v2644_v46 = vpop.f32.mrf.mxu0  ;;  %v484_v6 = vmul.f32 1.442695, %v482_v15 }
 0x1a1   : > { %v1756_v8 = vmul.f32 %v2644_v46, %v1003_v26  ;;  %v3335_v26 = vpop.permute.xlu1 %1889 }
 0x1a2   : > { %2697 = vpow2.f32 %v484_v6  ;;  %v1729_v39 = vpop.f32.mrf.mxu0 }
 0x1a3   : > { %v1802_v36 = vsel %vm387_vm0, %v1756_v8, 0.0 }
 0x1a4   : > { %1773 = vadd.xlane.f32.xlu1 %v1772_v56  ;;  %1785 = vadd.xlane.f32.xlu0 %v1784_v35  ;;  %v1754_v56 = vmul.f32 %v1729_v39, %v995_v23  ;;  %v1075_v35 = vsel %vm387_vm0, %v1033_v1, 0.0 }
 0x1a5   : > { %v3327_v33 = vpop.eup %2695  ;;  %v3337_v34 = vpop.permute.xlu1 %1896 }
 0x1a6   : > { %v1796_v11 = vsel %vm387_vm0, %v1754_v56, 0.0  ;;  %v491_v14 = vsel %vm475_vm10, %v3327_v33, 0.0  ;;  %vm1367_vm0 = vcmask 1041409  }
 0x1a8   : > { %1067 = vadd.xlane.f32.xlu1 %v1066_v51  ;;  %1800 = vadd.xlane.f32.xlu0 %v1799_v54  ;;  %v1855_v54 = vpop.permute.xlu0 %1854 }
 0x1a9   : > { %v3339_v24 = vpop.permute.xlu1 %1903 }
 0x1ac   : > { %1061 = vadd.xlane.f32.xlu1 %v1060_v20  ;;  %1794 = vadd.xlane.f32.xlu0 %v1793_v2  ;;  %v1862_v53 = vpop.permute.xlu0 %1861 }
 0x1ad   : > { %v3341_v51 = vpop.permute.xlu1 %1910 }
 0x1af   : > { %v3331_v0 = vpop.eup %2697 }
 0x1b0   : > { %1079 = vadd.xlane.f32.xlu1 %v1078_v59  ;;  %1082 = vadd.xlane.f32.xlu0 %v1081_v43  ;;  %v488_v13 = vsel %vm475_vm10, %v3331_v0, 0.0 }
 0x1b1   : > { %v3343_v19 = vpop.permute.xlu1 %1917 }
 0x1b4   : > { %1073 = vadd.xlane.f32.xlu1 %v1072_v40  ;;  %1803 = vadd.xlane.f32.xlu0 %v1802_v36 }
 0x1b8   : > { %1076 = vadd.xlane.f32.xlu0 %v1075_v35 }
 0x1bc   : > { %1797 = vadd.xlane.f32.xlu0 %v1796_v11 }
 0x1c0   : > { %492 = vadd.xlane.f32.xlu0 %v491_v14 }
 0x1c4   : > { %489 = vadd.xlane.f32.xlu0 %v488_v13 }
 0x1e8   : > { %v1759_v27 = vpop.xlane.xlu0 %1758 }
 0x205   : > { %v1044_v57 = vpop.xlane.xlu1 %1043 }
 0x206   : > { %v1216_v18 = vmul.f32 %v3181_v45, %v1044_v57  ;;  %v1935_v45 = vmul.f32 %v3275_v12, %v1759_v27 }
 0x208   : > { %1262 = vperm.xlu1 %2691, %v1216_v18  }
 0x209   : > { %v1765_v15 = vpop.xlane.xlu1 %1764  ;;  %v1047_v20 = vpop.xlane.xlu0 %1046 }
 0x20a   : > { %v1937_v2 = vmul.f32 %v3273_v61, %v1765_v15  ;;  %v1217_v46 = vmul.f32 %v3186_v17, %v1047_v20 }
 0x20c   : > { %1982 = vperm.xlu0 %2692, %v1937_v2   ;;  %1265 = vperm.xlu1 %2691, %v1217_v46  }
 0x20d   : > { %v1038_v59 = vpop.xlane.xlu1 %1037  ;;  %v1041_v43 = vpop.xlane.xlu0 %1040 }
 0x20e   : > { %v1214_v6 = vmul.f32 %v3176_v41, %v1038_v59  ;;  %v1215_v8 = vmul.f32 %v3179_v42, %v1041_v43 }
 0x210   : > { %1256 = vperm.xlu0 %2692, %v1214_v6   ;;  %1259 = vperm.xlu1 %2691, %v1215_v8  }
 0x211   : > { %v1768_v5 = vpop.xlane.xlu1 %1767  ;;  %v1059_v4 = vpop.xlane.xlu0 %1058 }
 0x212   : > { %v1938_v61 = vmul.f32 %v3282_v25, %v1768_v5 }
 0x214   : > { %1976 = vperm.xlu0 %2692, %v1935_v45  }
 0x215   : > { %v1762_v23 = vpop.xlane.xlu1 %1761  ;;  %v1053_v1 = vpop.xlane.xlu0 %1052 }
 0x216   : > { %v1936_v17 = vmul.f32 %v3254_v29, %v1762_v23  ;;  %v1221_v29 = vmul.f32 %v3194_v52, %v1059_v4  ;;  %v1219_v57 = vmul.f32 %v3190_v49, %v1053_v1 }
 0x218   : > { %1985 = vperm.xlu0 %2692, %v1938_v61   ;;  %1979 = vperm.xlu1 %2691, %v1936_v17  }
 0x219   : > { %v1056_v40 = vpop.xlane.xlu1 %1055  ;;  %v1789_v36 = vpop.xlane.xlu0 %1788 }
 0x21a   : > { %v1220_v41 = vmul.f32 %v3188_v48, %v1056_v40  ;;  %v1945_v20 = vmul.f32 %v1883_v16, %v1789_v36 }
 0x21c   : > { %1274 = vperm.xlu1 %2691, %v1220_v41  }
 0x21d   : > { %v1777_v42 = vpop.xlane.xlu1 %1776  ;;  %v1783_v39 = vpop.xlane.xlu0 %1782 }
 0x21e   : > { %v1941_v56 = vmul.f32 %v1855_v54, %v1777_v42  ;;  %v1943_v16 = vmul.f32 %v3285_v32, %v1783_v39  ;;  %v1951_v32 = vsel %vm1230_vm1, %v3069_v58, 0.0  ;;  %v2245_v39 = vadd.s32 4294967282, %v3033_v28 }
 0x220   : > { %1994 = vperm.xlu0 %2692, %v1941_v56  }
 0x221   : > { %v1050_v35 = vpop.xlane.xlu1 %1049  ;;  %v1071_v12 = vpop.xlane.xlu0 %1070 }
 0x222   : > { %v1218_v11 = vmul.f32 %v3184_v47, %v1050_v35  ;;  %v1225_v58 = vmul.f32 %v3212_v7, %v1071_v12 }
 0x224   : > { %1268 = vperm.xlu1 %2691, %v1218_v11  }
 0x225   : > { %v1771_v14 = vpop.xlane.xlu1 %1770  ;;  %v1792_v25 = vpop.xlane.xlu0 %1791 }
 0x226   : > { %v1939_v13 = vmul.f32 %v3294_v63, %v1771_v14  ;;  %v1946_v63 = vmul.f32 %v3335_v26, %v1792_v25  ;;  %v3398_v14 = vsub.s32 %v2245_v39, %v2896_v9 }
 0x228   : > { %1988 = vperm.xlu0 %2692, %v1939_v13   ;;  %1277 = vperm.xlu1 %2691, %v1221_v29  }
 0x229   : > { %v1780_v27 = vpop.xlane.xlu1 %1779  ;;  %v1065_v48 = vpop.xlane.xlu0 %1064 }
 0x22a   : > { %v1942_v18 = vmul.f32 %v1862_v53, %v1780_v27  ;;  %v1223_v43 = vmul.f32 %v3202_v60, %v1065_v48 }
 0x22c   : > { %1997 = vperm.xlu0 %2692, %v1942_v18   ;;  %1271 = vperm.xlu1 %2691, %v1219_v57  }
 0x22d   : > { %v1774_v54 = vpop.xlane.xlu1 %1773  ;;  %v1786_v15 = vpop.xlane.xlu0 %1785 }
 0x22e   : > { %v1940_v47 = vmul.f32 %v3304_v10, %v1774_v54  ;;  %v1944_v10 = vmul.f32 %v3296_v30, %v1786_v15 }
 0x230   : > { %1991 = vperm.xlu0 %2692, %v1940_v47   ;;  %2006 = vperm.xlu1 %2691, %v1945_v20   ;;  %v3409_v47 = vsub.s32 %v3033_v28, %v2896_v9 }
 0x231   : > { %v1068_v2 = vpop.xlane.xlu1 %1067  ;;  %v1801_v52 = vpop.xlane.xlu0 %1800 }
 0x232   : > { %v1949_v8 = vmul.f32 %v3341_v51, %v1801_v52  ;;  %v1954_v51 = vsel %vm1230_vm1, %v3095_v22, 0.0  ;;  %v1224_v45 = vmul.f32 %v3198_v55, %v1068_v2  ;;  %v2161_v55 = vadd.s32 4294967290, %v3033_v28 }
 0x234   : > { %2009 = vperm.xlu1 %2691, %v1946_v63  }
 0x235   : > { %v1062_v46 = vpop.xlane.xlu1 %1061  ;;  %v1795_v59 = vpop.xlane.xlu0 %1794 }
 0x236   : > { %v1222_v49 = vmul.f32 %v3192_v50, %v1062_v46  ;;  %v1947_v5 = vmul.f32 %v3337_v34, %v1795_v59 }
 0x238   : > { %1280 = vperm.xlu0 %2692, %v1222_v49   ;;  %1283 = vperm.xlu1 %2691, %v1223_v43  }
 0x239   : > { %v1083_v53 = vpop.xlane.xlu0 %1082  ;;  %v1080_v30 = vpop.xlane.xlu1 %1079 }
 0x23a   : > { %v1229_v1 = vmul.f32 %v3246_v3, %v1083_v53 }
 0x23c   : > { %2000 = vperm.xlu0 %2692, %v1943_v16   ;;  %2003 = vperm.xlu1 %2691, %v1944_v10  }
 0x23d   : > { %v1804_v6 = vpop.xlane.xlu0 %1803  ;;  %v1074_v23 = vpop.xlane.xlu1 %1073 }
 0x23e   : > { %v1950_v60 = vmul.f32 %v3343_v19, %v1804_v6  ;;  %v1226_v34 = vmul.f32 %v3204_v62, %v1074_v23  ;;  %v1228_v19 = vmul.f32 %v3218_v21, %v1080_v30  ;;  %v3386_v21 = vsub.s32 %v2161_v55, %v2896_v9 }
 0x240   : > { %2018 = vperm.xlu1 %2691, %v1949_v8  }
 0x241   : > { %v1077_v26 = vpop.xlane.xlu0 %1076 }
 0x242   : > { %v1227_v17 = vmul.f32 %v3226_v38, %v1077_v26 }
 0x244   : > { %2012 = vperm.xlu1 %2691, %v1947_v5  }
 0x245   : > { %v1798_v50 = vpop.xlane.xlu0 %1797 }
 0x246   : > { %v1948_v4 = vmul.f32 %v3339_v24, %v1798_v50 }
 0x248   : > { %2021 = vperm.xlu1 %2691, %v1950_v60  }
 0x249   : > { %v3375_v24 = vpop.xlane.xlu0 %492 }
 0x24a   : > { %2699 = vrcp.f32 %v3375_v24 }
 0x24c   : > { %2015 = vperm.xlu1 %2691, %v1948_v4  }
 0x24d   : > { %v3379_v61 = vpop.xlane.xlu0 %489 }
 0x24e   : > { %2701 = vrcp.f32 %v3379_v61 }
 0x25b   : > { %1952 = vadd.xlane.f32.xlu0 %v1951_v32 }
 0x270   : > { %1955 = vadd.xlane.f32.xlu1 %v1954_v51 }
 0x271   : > { %1286 = vperm.xlu0 %2692, %v1224_v45  }
 0x275   : > { %1292 = vperm.xlu0 %2692, %v1226_v34  }
 0x279   : > { %1298 = vperm.xlu0 %2692, %v1228_v19  }
 0x281   : > { %1289 = vperm.xlu1 %2691, %v1225_v58  }
 0x283   : > { %v1263_v22 = vpop.permute.xlu1 %1262 }
 0x284   : > { %v2173_v42 = vrot.slane %v1263_v22, %v3386_v21  ;;  %v1314_v6 = vrot.slane %v1263_v22, %v3409_v47 }
 0x285   : > { %1301 = vperm.xlu1 %2691, %v1229_v1  }
 0x287   : > { %v3383_v62 = vpop.permute.xlu1 %1265  ;;  %v1983_v40 = vpop.permute.xlu0 %1982 }
 0x288   : > { %v2177_v38 = vrot.slane %v3383_v62, %v3386_v21  ;;  %v2257_v48 = vrot.slane %v1983_v40, %v3398_v14  ;;  %v2034_v5 = vrot.slane %v1983_v40, %v3409_v47  ;;  %v1318_v30 = vrot.slane %v3383_v62, %v3409_v47 }
 0x289   : > { %1295 = vperm.xlu1 %2691, %v1227_v17  }
 0x28b   : > { %v1260_v36 = vpop.permute.xlu1 %1259  ;;  %v1257_v7 = vpop.permute.xlu0 %1256 }
 0x28c   : > { %v2169_v3 = vrot.slane %v1260_v36, %v3386_v21  ;;  %v2165_v41 = vrot.slane %v1257_v7, %v3386_v21  ;;  %v1310_v63 = vrot.slane %v1260_v36, %v3409_v47  ;;  %v1306_v46 = vrot.slane %v1257_v7, %v3409_v47 }
 0x28e   : > { %v2226_v56 = vsel %vm1367_vm0, %v2169_v3, %v2165_v41  ;;  %v1368_v10 = vsel %vm1367_vm0, %v1310_v63, %v1306_v46 }
 0x28f   : > { %v2227_v35 = vsel %vm1369_vm6, %v2173_v42, %v2226_v56  ;;  %v1977_v12 = vpop.permute.xlu0 %1976  ;;  %v1370_v60 = vsel %vm1369_vm6, %v1314_v6, %v1368_v10 }
 0x290   : > { %v2228_v11 = vsel %vm1371_vm12, %v2177_v38, %v2227_v35  ;;  %v2249_v13 = vrot.slane %v1977_v12, %v3398_v14  ;;  %v2026_v9 = vrot.slane %v1977_v12, %v3409_v47  ;;  %v1372_v1 = vsel %vm1371_vm12, %v1318_v30, %v1370_v60 }
 0x293   : > { %v1980_v25 = vpop.permute.xlu1 %1979  ;;  %v1986_v29 = vpop.permute.xlu0 %1985 }
 0x294   : > { %v2253_v27 = vrot.slane %v1980_v25, %v3398_v14  ;;  %v2261_v18 = vrot.slane %v1986_v29, %v3398_v14  ;;  %v2030_v43 = vrot.slane %v1980_v25, %v3409_v47  ;;  %v2038_v58 = vrot.slane %v1986_v29, %v3409_v47 }
 0x296   : > { %v2310_v57 = vsel %vm1367_vm0, %v2253_v27, %v2249_v13  ;;  %v2087_v8 = vsel %vm1367_vm0, %v2030_v43, %v2026_v9 }
 0x297   : > { %v2311_v54 = vsel %vm1369_vm6, %v2257_v48, %v2310_v57  ;;  %v1275_v20 = vpop.permute.xlu1 %1274  ;;  %v2088_v23 = vsel %vm1369_vm6, %v2034_v5, %v2087_v8 }
 0x298   : > { %v2312_v15 = vsel %vm1371_vm12, %v2261_v18, %v2311_v54  ;;  %v2189_v34 = vrot.slane %v1275_v20, %v3386_v21  ;;  %v2089_v7 = vsel %vm1371_vm12, %v2038_v58, %v2088_v23  ;;  %v1330_v39 = vrot.slane %v1275_v20, %v3409_v47 }
 0x29b   : > { %v1995_v2 = vpop.permute.xlu0 %1994 }
 0x29c   : > { %v2050_v38 = vrot.slane %v1995_v2, %v3409_v47  ;;  %v2273_v12 = vrot.slane %v1995_v2, %v3398_v14 }
 0x29f   : > { %v1269_v52 = vpop.permute.xlu1 %1268 }
 0x2a0   : > { %v2181_v59 = vrot.slane %v1269_v52, %v3386_v21  ;;  %v1322_v50 = vrot.slane %v1269_v52, %v3409_v47 }
 0x2a2   : > { %v2229_v49 = vsel %vm1373_vm13, %v2181_v59, %v2228_v11  ;;  %v1374_v17 = vsel %vm1373_vm13, %v1322_v50, %v1372_v1 }
 0x2a3   : > { %v1278_v53 = vpop.permute.xlu1 %1277  ;;  %v1989_v16 = vpop.permute.xlu0 %1988 }
 0x2a4   : > { %v2265_v28 = vrot.slane %v1989_v16, %v3398_v14  ;;  %v2042_v19 = vrot.slane %v1989_v16, %v3409_v47  ;;  %v2193_v22 = vrot.slane %v1278_v53, %v3386_v21  ;;  %v1334_v18 = vrot.slane %v1278_v53, %v3409_v47 }
 0x2a6   : > { %v2313_v26 = vsel %vm1373_vm13, %v2265_v28, %v2312_v15  ;;  %v2090_v56 = vsel %vm1373_vm13, %v2042_v19, %v2089_v7 }
 0x2a7   : > { %v1272_v4 = vpop.permute.xlu1 %1271  ;;  %v1998_v32 = vpop.permute.xlu0 %1997 }
 0x2a8   : > { %v1326_v51 = vrot.slane %v1272_v4, %v3409_v47  ;;  %v2185_v45 = vrot.slane %v1272_v4, %v3386_v21  ;;  %v2054_v11 = vrot.slane %v1998_v32, %v3409_v47  ;;  %v2277_v29 = vrot.slane %v1998_v32, %v3398_v14 }
 0x2aa   : > { %v2230_v55 = vsel %vm1375_vm14, %v2185_v45, %v2229_v49  ;;  %v1376_v3 = vsel %vm1375_vm14, %v1326_v51, %v1374_v17  ;;  %v2700_v17 = vpop.eup %2699 }
 0x2ab   : > { %v2231_v62 = vsel %vm1377_vm15, %v2189_v34, %v2230_v55  ;;  %v2007_v40 = vpop.permute.xlu1 %2006  ;;  %v1992_v36 = vpop.permute.xlu0 %1991  ;;  %v1378_v57 = vsel %vm1377_vm15, %v1330_v39, %v1376_v3 }
 0x2ac   : > { %v3441_v41 = vsel %vm1379_vm2, %v2193_v22, %v2231_v62  ;;  %v2046_v42 = vrot.slane %v1992_v36, %v3409_v47  ;;  %v2269_v35 = vrot.slane %v1992_v36, %v3398_v14  ;;  %v1380_v52 = vsel %vm1379_vm2, %v1334_v18, %v1378_v57 }
 0x2ad   : > { %v1390_v16 = vsel %vm1230_vm1, %v1380_v52, 0.0  ;;  %v2289_v5 = vrot.slane %v2007_v40, %v3398_v14  ;;  %v2066_v58 = vrot.slane %v2007_v40, %v3409_v47 }
 0x2ae   : > { %v2091_v25 = vsel %vm1375_vm14, %v2046_v42, %v2090_v56  ;;  %v2314_v13 = vsel %vm1375_vm14, %v2269_v35, %v2313_v26  ;;  %v3496_v56 = vmul.f32 %v2700_v17, %v3327_v33 }
 0x2af   : > { %v2010_v27 = vpop.permute.xlu1 %2009  ;;  %v2092_v48 = vsel %vm1377_vm15, %v2050_v38, %v2091_v25  ;;  %v2315_v54 = vsel %vm1377_vm15, %v2273_v12, %v2314_v13 }
 0x2b0   : > { %v2093_v15 = vsel %vm1379_vm2, %v2054_v11, %v2092_v48  ;;  %v3459_v20 = vsel %vm1379_vm2, %v2277_v29, %v2315_v54  ;;  %v2293_v60 = vrot.slane %v2010_v27, %v3398_v14  ;;  %v2070_v62 = vrot.slane %v2010_v27, %v3409_v47  ;;  %v2702_v48 = vpop.eup %2701 }
 0x2b1   : > { %v2103_v2 = vsel %vm1230_vm1, %v2093_v15, 0.0  ;;  %v3513_v57 = vmul.f32 %v2702_v48, %v3331_v0 }
 0x2b2   : > { %2104 = vadd.xlane.f32.xlu0 %v2103_v2 }
 0x2b3   : > { %v1284_v63 = vpop.permute.xlu1 %1283  ;;  %v1281_v46 = vpop.permute.xlu0 %1280 }
 0x2b4   : > { %v1342_v59 = vrot.slane %v1284_v63, %v3409_v47  ;;  %v2201_v43 = vrot.slane %v1284_v63, %v3386_v21  ;;  %v1338_v49 = vrot.slane %v1281_v46, %v3409_v47  ;;  %v2197_v53 = vrot.slane %v1281_v46, %v3386_v21 }
 0x2b6   : > { %v3469_v10 = vsel %vm1367_vm0, %v1342_v59, %v1338_v49  ;;  %v2233_v9 = vsel %vm1367_vm0, %v2201_v43, %v2197_v53  ;;  %1391 = vadd.xlane.f32.xlu0 %v1390_v16 }
 0x2b7   : > { %v2004_v28 = vpop.permute.xlu1 %2003  ;;  %v2001_v6 = vpop.permute.xlu0 %2000 }
 0x2b8   : > { %v2285_v8 = vrot.slane %v2004_v28, %v3398_v14  ;;  %v2281_v26 = vrot.slane %v2001_v6, %v3398_v14  ;;  %v2062_v51 = vrot.slane %v2004_v28, %v3409_v47  ;;  %v2058_v45 = vrot.slane %v2001_v6, %v3409_v47 }
 0x2ba   : > { %v2317_v50 = vsel %vm1367_vm0, %v2285_v8, %v2281_v26  ;;  %v2094_v24 = vsel %vm1367_vm0, %v2062_v51, %v2058_v45 }
 0x2bb   : > { %v2318_v4 = vsel %vm1369_vm6, %v2289_v5, %v2317_v50  ;;  %v2019_v32 = vpop.permute.xlu1 %2018  ;;  %v2095_v22 = vsel %vm1369_vm6, %v2066_v58, %v2094_v24 }
 0x2bc   : > { %v2319_v30 = vsel %vm1371_vm12, %v2293_v60, %v2318_v4  ;;  %v2096_v7 = vsel %vm1371_vm12, %v2070_v62, %v2095_v22  ;;  %v2082_v39 = vrot.slane %v2019_v32, %v3409_v47  ;;  %v2305_v38 = vrot.slane %v2019_v32, %v3398_v14 }
 0x2bf   : > { %v2013_v23 = vpop.permute.xlu1 %2012 }
 0x2c0   : > { %v2297_v34 = vrot.slane %v2013_v23, %v3398_v14  ;;  %v2074_v55 = vrot.slane %v2013_v23, %v3409_v47 }
 0x2c2   : > { %v2320_v19 = vsel %vm1373_vm13, %v2297_v34, %v2319_v30  ;;  %v2097_v40 = vsel %vm1373_vm13, %v2074_v55, %v2096_v7 }
 0x2c3   : > { %v2022_v1 = vpop.permute.xlu1 %2021 }
 0x2c4   : > { %v2086_v35 = vrot.slane %v2022_v1, %v3409_v47  ;;  %v2309_v12 = vrot.slane %v2022_v1, %v3398_v14 }
 0x2c7   : > { %v2016_v36 = vpop.permute.xlu1 %2015 }
 0x2c8   : > { %v2078_v3 = vrot.slane %v2016_v36, %v3409_v47  ;;  %v2301_v42 = vrot.slane %v2016_v36, %v3398_v14 }
 0x2ca   : > { %v2098_v11 = vsel %vm1375_vm14, %v2078_v3, %v2097_v40  ;;  %v2321_v25 = vsel %vm1375_vm14, %v2301_v42, %v2320_v19 }
 0x2cb   : > { %v2322_v29 = vsel %vm1377_vm15, %v2305_v38, %v2321_v25  ;;  %v2099_v13 = vsel %vm1377_vm15, %v2082_v39, %v2098_v11 }
 0x2cc   : > { %v3505_v27 = vsel %vm1379_vm2, %v2309_v12, %v2322_v29  ;;  %2131 = vrot.lane.b32.xlu0 %v3496_v56, %s2780_s16  ;;  %v2100_v33 = vsel %vm1379_vm2, %v2086_v35, %v2099_v13 }
 0x2cd   : > { %v2106_v14 = vsel %vm1230_vm1, %v2100_v33, 0.0 }
 0x2ce   : > { %2107 = vadd.xlane.f32.xlu1 %v2106_v14  ;;  %v1238_v14 = vmax.f32 %v3259_v31, 1.0 }
 0x2df   : > { %2129 = vrot.lane.b32.xlu1 %v3513_v57, %s2780_s16 }
 0x2e4   : > { %v1953_v18 = vpop.xlane.xlu0 %1952 }
 0x2ec   : > { %v1287_v54 = vpop.permute.xlu0 %1286 }
 0x2ed   : > { %v2205_v15 = vrot.slane %v1287_v54, %v3386_v21  ;;  %v1346_v59 = vrot.slane %v1287_v54, %v3409_v47 }
 0x2ef   : > { %v2234_v2 = vsel %vm1369_vm6, %v2205_v15, %v2233_v9  ;;  %v1382_v28 = vsel %vm1369_vm6, %v1346_v59, %v3469_v10 }
 0x2f0   : > { %v1293_v63 = vpop.permute.xlu0 %1292 }
 0x2f1   : > { %v2213_v43 = vrot.slane %v1293_v63, %v3386_v21  ;;  %v1354_v8 = vrot.slane %v1293_v63, %v3409_v47 }
 0x2f4   : > { %v1299_v9 = vpop.permute.xlu0 %1298 }
 0x2f5   : > { %v1362_v50 = vrot.slane %v1299_v9, %v3409_v47  ;;  %v2221_v4 = vrot.slane %v1299_v9, %v3386_v21 }
 0x2f9   : > { %v1956_v52 = vpop.xlane.xlu1 %1955 }
 0x2fa   : > { %v1958_v17 = vmax.f32 %v1956_v52, 1.0 }
 0x2fd   : > { %v1290_v46 = vpop.permute.xlu1 %1289 }
 0x2fe   : > { %v2209_v61 = vrot.slane %v1290_v46, %v3386_v21  ;;  %v1350_v0 = vrot.slane %v1290_v46, %v3409_v47 }
 0x300   : > { %v2235_v49 = vsel %vm1371_vm12, %v2209_v61, %v2234_v2  ;;  %v1383_v6 = vsel %vm1371_vm12, %v1350_v0, %v1382_v28 }
 0x301   : > { %v1302_v53 = vpop.permute.xlu1 %1301  ;;  %v2236_v16 = vsel %vm1373_vm13, %v2213_v43, %v2235_v49  ;;  %v1384_v32 = vsel %vm1373_vm13, %v1354_v8, %v1383_v6 }
 0x302   : > { %v1366_v10 = vrot.slane %v1302_v53, %v3409_v47  ;;  %v2225_v30 = vrot.slane %v1302_v53, %v3386_v21 }
 0x305   : > { %v1296_v26 = vpop.permute.xlu1 %1295 }
 0x306   : > { %v1358_v5 = vrot.slane %v1296_v26, %v3409_v47  ;;  %v2217_v60 = vrot.slane %v1296_v26, %v3386_v21  ;;  %v1957_v21 = vmax.f32 %v1953_v18, 1.0 }
 0x308   : > { %v1385_v51 = vsel %vm1375_vm14, %v1358_v5, %v1384_v32  ;;  %v2237_v45 = vsel %vm1375_vm14, %v2217_v60, %v2236_v16  ;;  %2703 = vrcp.f32 %v1957_v21 }
 0x309   : > { %v2238_v23 = vsel %vm1377_vm15, %v2221_v4, %v2237_v45  ;;  %v1386_v34 = vsel %vm1377_vm15, %v1362_v50, %v1385_v51  ;;  %2705 = vrcp.f32 %v1958_v17 }
 0x30a   : > { %v3541_v24 = vsel %vm1379_vm2, %v2225_v30, %v2238_v23  ;;  %v1387_v19 = vsel %vm1379_vm2, %v1366_v10, %v1386_v34  ;;  %2707 = vrcp.f32 %v1237_v37 }
 0x30b   : > { %v1393_v58 = vsel %vm1230_vm1, %v1387_v19, 0.0  ;;  %vm2143_vm1 = vcmask 7168  }
 0x30c   : > { %1394 = vadd.xlane.f32.xlu0 %v1393_v58 }
 0x315   : > { %v2704_v47 = vpop.eup %2703 }
 0x316   : > { %v2706_v62 = vpop.eup %2705 }
 0x317   : > { %v2708_v40 = vpop.eup %2707 }
 0x322   : > { %2152 = vrot.lane.b32.xlu0 %v3513_v57, %s2781_s13 }
 0x33b   : > { %v2105_v1 = vpop.xlane.xlu0 %2104 }
 0x33c   : > { %v2110_v22 = vmul.f32 %v2704_v47, %v2105_v1 }
 0x33e   : > { %v2115_v55 = vmul.f32 %v2110_v22, %v3513_v57 }
 0x33f   : > { %v1392_v38 = vpop.xlane.xlu0 %1391 }
 0x340   : > { %2119 = vrot.lane.b32.xlu1 %v2115_v55, %s2780_s16  ;;  %v1397_v35 = vmul.f32 %v2708_v40, %v1392_v38 }
 0x342   : > { %v2113_v11 = vmul.f32 %v1397_v35, %v3513_v57 }
 0x343   : > { %v2132_v12 = vpop.permute.xlu0 %2131 }
 0x344   : > { %v2136_v31 = vadd.f32 %v2132_v12, %v3496_v56 }
 0x357   : > { %v2108_v36 = vpop.xlane.xlu1 %2107 }
 0x358   : > { %v2112_v7 = vmul.f32 %v2706_v62, %v2108_v36 }
 0x35a   : > { %v2116_v3 = vmul.f32 %v2112_v7, %v3496_v56 }
 0x35b   : > { %v2130_v42 = vpop.permute.xlu1 %2129 }
 0x35c   : > { %2121 = vrot.lane.b32.xlu1 %v2116_v3, %s2780_s16  ;;  %v2135_v39 = vadd.f32 %v2130_v42, %v3513_v57 }
 0x35e   : > { %2709 = vrcp.f32 %v2135_v39 }
 0x35f   : > { %2711 = vrcp.f32 %v1238_v14 }
 0x360   : > { %2154 = vrot.lane.b32.xlu1 %v3496_v56, %s2781_s13  ;;  %2713 = vrcp.f32 %v2136_v31 }
 0x36b   : > { %v2710_v44 = vpop.eup %2709 }
 0x36c   : > { %v2712_v57 = vpop.eup %2711 }
 0x36d   : > { %v2714_v52 = vpop.eup %2713 }
 0x395   : > { %v1395_v29 = vpop.xlane.xlu0 %1394 }
 0x396   : > { %v1399_v18 = vmul.f32 %v2712_v57, %v1395_v29 }
 0x398   : > { %v2114_v54 = vmul.f32 %v1399_v18, %v3496_v56 }
 0x399   : > { %v2153_v48 = vpop.permute.xlu0 %2152 }
 0x3b2   : > { %v2120_v25 = vpop.permute.xlu1 %2119 }
 0x3b3   : > { %v2125_v13 = vadd.f32 %v2120_v25, %v2113_v11 }
 0x3b5   : > { %v2138_v33 = vmul.f32 %v2710_v44, %v2125_v13 }
 0x3b7   : > { %2144 = vst.msk [vmem:[%s3549_s18] sm:$0xff] %vm2143_vm1, %v2138_v33 }
 0x3b8   : > { %2147 = vst.msk [vmem:[%s3549_s18] sm:$0xff] %vm2146_vm3, %v1397_v35 }
 0x3b9   : > { %2150 = vst.msk [vmem:[%s3549_s18] sm:$0xff] %vm2149_vm4, %v2110_v22 }
 0x3ba   : > { %2159 = vst.msk [vmem:[%s3549_s18] sm:$0xff] %vm2158_vm5, %v2153_v48 }
 0x3bb   : > { %2243 = vst.msk [vmem:[%s3549_s18] sm:$0xff] %vm2242_vm7, %v3441_v41 }
 0x3bc   : > { %2327 = vst.msk [vmem:[%s3549_s18] sm:$0xff] %vm2326_vm8, %v3459_v20 }
 0x3ce   : > { %v2122_v15 = vpop.permute.xlu1 %2121 }
 0x3cf   : > { %v2126_v2 = vadd.f32 %v2122_v15, %v2114_v54 }
 0x3d1   : > { %v2140_v41 = vmul.f32 %v2714_v52, %v2126_v2 }
 0x3d2   : > { %v2155_v20 = vpop.permute.xlu1 %2154 }
 0x3d3   : > { %2145 = vst.msk [vmem:[%s3549_s18 + $0x8] sm:$0xff] %vm2143_vm1, %v2140_v41 }
 0x3d4   : > { %2148 = vst.msk [vmem:[%s3549_s18 + $0x8] sm:$0xff] %vm2146_vm3, %v1399_v18 }
 0x3d5   : > { %2151 = vst.msk [vmem:[%s3549_s18 + $0x8] sm:$0xff] %vm2149_vm4, %v2112_v7 }
 0x3d6   : > { %2160 = vst.msk [vmem:[%s3549_s18 + $0x8] sm:$0xff] %vm2158_vm5, %v2155_v20 }
 0x3d7   : > { %2244 = vst.msk [vmem:[%s3549_s18 + $0x8] sm:$0xff] %vm2242_vm7, %v3541_v24 }
 0x3d8   : > { %2328 = vst.msk [vmem:[%s3549_s18 + $0x8] sm:$0xff] %vm2326_vm8, %v3505_v27 }
 0x3d9   : > { %2728 = shalt.err (!%p2725_p3)
}
 0x3da   : > { %s2729_s16 = scalar_lea.hbm %s3591_s23, 256  ;;  %s2733_s15 = scalar_lea.hbm %s3652_s7, 1024 }
 0x3db   : > { %p2730_p4 = scmp.ne.s32.totalorder %s3591_s23, %s2729_s16  ;;  %p2734_p9 = scmp.lt.s32.totalorder %s3591_s23, %s3652_s7 }
 0x3dc   : > { %p2735_p10 = scmp.lt.s32.totalorder %s2733_s15, %s2729_s16 }
 0x3dd   : > { %p2731_p7 = pnand %p2730_p4, %p2863_p5 }
 0x3de   : > { %p2736_p11 = por %p2735_p10, %p2734_p9 }
 0x3df   : > { %p2732_p8 = pneg %p2731_p7 }
 0x3e1   : > { %p2737_p12 = pnand %p2736_p11, %p2732_p8 }
 0x3e3   : > { %2740 = shalt.err (!%p2737_p12)
}
 0x3e4   : > { %s2783_s21 = smov 128   ;;  %s2784_s22 = smov 8  }
 0x3e5   : > { %2645 = dma.vmem_to_hbm [thread:$0]  (%p2863_p5), %s3593_s20, 256, %s3591_s23, %s3605_s28, %s2783_s21, %s2783_s21, %s2784_s22  }
 0x3e6 PF: > { %p2651_p13 = scmp.ge.s32.totalorder %s2775_s27, 2  ;;  %s2358_s17 = sand.u32 1, %s2763_s24  }
 0x3e7   : > { %s2359_s29 = scalar_lea.sflag [#allocation3], %s2358_s17 }
 0x3e8   : > { %p2648_p0 = pnand %p2651_p13, %p2867_p6 }
 0x3ea   : > { %p2649_p1 = pneg %p2648_p0 }
 0x3ec   : > { %2758 = dma.done.wait (%p2649_p1), %s2359_s29, 256  }
 0x3ed   : > { %2760 = vsyncadd (%p2649_p1), %s2359_s29, 4294967040  ;;  %p17_p2 = scmp.ge.s32.totalorder %s2850_s30, 6   ;;  %s3655_s24 = smov %s2767_s25 }
 0x3ee   : > { %s3656_s25 = smov %s2771_s26  ;;  %s3657_s26 = smov %s2861_s10 }
 0x3ef   : > { %s3658_s27 = smov %s2850_s30  ;;  %19 = sbr.rel (!%p17_p2) target bundleno = 3 (0x3), region = 95 }
 0x3f4   :  { %2364 = vsyncpa [#allocation3], 1 }
 0x3f5   :  { %2366 = vsyncpa [#allocation3 + $0x1], 1 }

// kernel: tpu_custom_call.1
= control target key start
LH: loop header
LB: loop body
LE: loop exit
PB: predicated region body
PF: predicated region fallthrough
CT: control target
= control target key end

     0   :  { %12 = vsyncpa [#allocation3], 0  ;;  %s3645_s0 = inlined_call_operand.vmem [shape: f32[64,32], index: 0, kind: input, shape index: {}]   ;;  %s3646_s1 = inlined_call_operand.vmem [shape: f32[32,3], index: 1, kind: input, shape index: {}]   ;;  %s3647_s2 = inlined_call_operand.vmem [shape: f32[64,32], index: 2, kind: input, shape index: {}]   ;;  %s3648_s3 = inlined_call_operand.vmem [shape: s32[64,8], index: 3, kind: input, shape index: {}]   ;;  %s3649_s4 = inlined_call_operand.vmem [shape: f32[64,8], index: 4, kind: input, shape index: {}]   ;;  %s3650_s5 = inlined_call_operand.vmem [shape: s32[64,8], index: 5, kind: input, shape index: {}]   ;;  %s3651_s6 = inlined_call_operand.vmem [shape: f32[64,8], index: 6, kind: input, shape index: {}]   ;;  %s3652_s7 = inlined_call_operand.hbm [shape: f32[64,128], index: 7, kind: output, shape index: {}]  }
   0x1   :  { %14 = vsyncpa [#allocation3 + $0x1], 0  ;;  %s2825_s24 = smov 0   ;;  %s2827_s25 = smov 0  }
   0x2   :  { %s2829_s26 = smov 0   ;;  %s2831_s27 = smov 0  }
   0x3 LB: > { %s2846_s28 = sadd.s32 4294967295, %s2775_s27   ;;  %s2453_s29 = sadd.s32 4294967294, %s2775_s27   ;;  %s2775_s27 = sphi %s2831_s27, %s3658_s27   ;;  %s2771_s26 = sphi %s2829_s26, %s3657_s26   ;;  %s2767_s25 = sphi %s2827_s25, %s3656_s25   ;;  %s2763_s24 = sphi %s2825_s24, %s3655_s24  }
   0x4   : > { %s2850_s30 = sadd.s32 1, %s2775_s27   ;;  %s199_s8 = sadd.s32 1, %s2771_s26 }
   0x5   : > { %s196_s9 = ssub.s32 %s2775_s27, %s2850_s30  ;;  %p209_p0 = scmp.ne.s32.totalorder %s2771_s26, %s2767_s25 }
   0x6   : > { %p197_p1 = scmp.eq.s32.totalorder %s196_s9, 0  ;;  %p210_p2 = scmp.eq.s32.totalorder %s2846_s28, 3 }
   0x7   : > { %p215_p3 = scmp.ne.s32.totalorder %s2767_s25, %s2763_s24  ;;  %p216_p4 = scmp.eq.s32.totalorder %s2453_s29, 3 }
   0x8   : > { %s2861_s10 = scalar_select %p197_p1, %s2771_s26, %s199_s8  }
   0x9   : > { %p2863_p5 = por %p210_p2, %p209_p0  ;;  %p2867_p6 = por %p216_p4, %p215_p3 }
   0xa   : > { %p2456_p7 = scmp.ge.s32.totalorder %s2775_s27, 1  ;;  %p285_p8 = scmp.lt.s32.totalorder %s2775_s27, 5 }
   0xc   : > { %p286_p9 = pnand %p2456_p7, %p285_p8 }
   0xd   : > { %s2458_s17 = sshll.u32 (!%p286_p9), %s2846_s28, 1  ;;  %s2781_s13 = smov (!%p286_p9), 3  }
   0xe   : > { %289 = sbr.rel (%p286_p9) target bundleno = 998 (0x3e6), region = 48  ;;  %p338_p10 = scmp.lt.s32.totalorder (!%p286_p9), %s2458_s17, 7 }
   0xf   : > { %s334_s14 = sand.u32 (!%p286_p9), 1, %s2767_s25   ;;  %s2555_s19 = sshll.u32 (!%p286_p9), %s2846_s28, 8 }
  0x10   : > { %s2457_s15 = sshll.u32 (!%p286_p9), %s334_s14, 4  ;;  %s3605_s28 = scalar_lea.sflag (!%p286_p9), [#allocation3], %s334_s14 }
  0x11   : > { %s3549_s18 = scalar_lea.vmem (!%p286_p9), [#allocation2], %s2457_s15  ;;  %s2782_s29 = smov (!%p286_p9), [#allocation2]  }
  0x12   : > { %s2719_s8 = sshll.u32 (!%p286_p9), %s2782_s29, 4  ;;  %s2720_s8 = int_to_ptr.vmem [resolvable:$false] %s2719_s8 }
  0x13   : > { %v374_v0 = vld [vmem:[%s3646_s1 + $0x18] sm:$0xff]  ;;  %v373_v1 = vld [vmem:[%s3646_s1 + $0x10] sm:$0xff]  ;;  %v498_v2 = vlaneseq  ;;  %v372_v5 = vld [vmem:[%s3646_s1 + $0x8] sm:$0xff]  ;;  %s3660_s17 = smov (!%p338_p10, %s2458_s17), 7  ;;  %vm387_vm0 = vcmask 261120   ;;  %vm1230_vm1 = vcmask 64512  }
  0x14   : > { %2586 = vmatprep.subr.mxu0 %v374_v0  ;;  %v381_v3 = vld [vmem:[%s3647_s2 + $0x30] sm:$0xff]  ;;  %v382_v4 = vld [vmem:[%s3647_s2 + $0x38] sm:$0xff]  ;;  %v379_v7 = vld [vmem:[%s3647_s2 + $0x20] sm:$0xff]  ;;  %s2901_s16 = sshll.u32 %s3660_s17, 3  ;;  %vm720_vm6 = vcmask 523264  }
  0x15   : > { %2587 = vmatpush3.msra.mxu0 %v374_v0  ;;  %v386_v6 = vpack.c.bf16 %v382_v4, %v381_v3  ;;  %v380_v8 = vld [vmem:[%s3647_s2 + $0x28] sm:$0xff]  ;;  %v2896_v9 = vshrl.u32 %v498_v2, 7  ;;  %v371_v10 = vld [vmem:[%s3646_s1] sm:$0xff]  ;;  %s341_s20 = scalar_lea.vmem %s3645_s0, %s2901_s16  ;;  %s2911_s23 = scalar_lea.vmem %s3650_s5, %s2901_s16  ;;  %v377_v18 = vld [vmem:[%s3647_s2 + $0x10] sm:$0xff] }
  0x16   : > { %2588 = vmatprep.subr.mxu0 %v373_v1  ;;  %v385_v11 = vpack.c.bf16 %v380_v8, %v379_v7  ;;  %v2913_v12 = vld [vmem:[%s341_s20] sm:$0xff]  ;;  %v2923_v15 = vld [vmem:[%s341_s20 + $0x8] sm:$0xff]  ;;  %v378_v19 = vld [vmem:[%s3647_s2 + $0x18] sm:$0xff]  ;;  %s2960_s21 = scalar_lea.vmem %s3649_s4, %s2901_s16  ;;  %s347_s17 = scalar_lea.vmem %s3648_s3, %s2901_s16 }
  0x17   : > { %2589 = vmatpush3.msra.mxu0 %v373_v1  ;;  %2597 = vmatprep.subr.bf16.mxu1 %v386_v6  ;;  %v2916_v13 = vsub.s32 2, %v2896_v9  ;;  %v2919_v14 = vsub.s32 0, %v2896_v9  ;;  %v2926_v16 = vsub.s32 3, %v2896_v9  ;;  %v2929_v17 = vsub.s32 1, %v2896_v9  ;;  %v1400_v20 = vld [vmem:[%s2911_s23] sm:$0xff]  ;;  %v376_v29 = vld [vmem:[%s3647_s2 + $0x8] sm:$0xff]  ;;  %s3061_s9 = scalar_lea.vmem %s3651_s6, %s2901_s16 }
  0x18   : > { %2590 = vmatprep.subr.mxu0 %v372_v5  ;;  %2598 = vmatpush3.bf16.msra.mxu1 %v386_v6  ;;  %v384_v23 = vpack.c.bf16 %v378_v19, %v377_v18  ;;  %v2945_v26 = vsub.s32 5, %v2896_v9  ;;  %v2948_v27 = vsub.s32 4, %v2896_v9  ;;  %v375_v28 = vld [vmem:[%s3647_s2] sm:$0xff]  ;;  %v2965_v33 = vsub.s32 7, %v2896_v9  ;;  %v2971_v35 = vld [vmem:[%s2960_s21 + $0x8] sm:$0xff]  ;;  %s2780_s16 = smov 127  }
  0x19   : > { %2591 = vmatpush3.msra.mxu0 %v372_v5  ;;  %2599 = vmatprep.subr.bf16.mxu1 %v385_v11  ;;  %v1421_v21 = vrot.slane %v1400_v20, %v2916_v13  ;;  %v1407_v22 = vrot.slane %v1400_v20, %v2919_v14  ;;  %v1428_v24 = vrot.slane %v1400_v20, %v2926_v16  ;;  %v2968_v34 = vsub.s32 6, %v2896_v9  ;;  %v1401_v39 = vld [vmem:[%s2911_s23 + $0x8] sm:$0xff]  ;;  %v500_v48 = vld [vmem:[%s347_s17] sm:$0xff]  ;;  %s2343_s20 = sshll.u32 %s3549_s18, 4  ;;  %s3591_s23 = scalar_lea.hbm %s3652_s7, %s2555_s19  ;;  %s3593_s20 = int_to_ptr.vmem [resolvable:$true] %s2343_s20 }
  0x1a   : > { %2592 = vmatprep.subr.mxu0 %v371_v10  ;;  %2594 = vmatprep.mubr.msk.f32.mxu0 %vm387_vm0, %v2913_v12  ;;  %v1414_v25 = vrot.slane %v1400_v20, %v2929_v17  ;;  %v383_v30 = vpack.c.bf16 %v376_v29, %v375_v28  ;;  %v1442_v31 = vrot.slane %v1400_v20, %v2945_v26  ;;  %v501_v57 = vld [vmem:[%s347_s17 + $0x8] sm:$0xff]  ;;  %v502_v3 = vld [vmem:[%s2960_s21] sm:$0xff]  ;;  %v3033_v28 = vand.u32 127, %v498_v2  ;;  %s2715_s17 = scalar_lea.vmem %s3593_s20, 256  ;;  %p2722_p0 = scmp.lt.s32.totalorder %s3593_s20, %s2720_s8 }
  0x1b   : > { %2593 = vmatpush3.msra.mxu0 %v371_v10  ;;  %1423 = vbcast.lane.b32.xlu1 %v1421_v21, 256  ;;  %v1435_v32 = vrot.slane %v1400_v20, %v2948_v27  ;;  %v1456_v36 = vrot.slane %v1400_v20, %v2965_v33  ;;  %v1449_v37 = vrot.slane %v1400_v20, %v2968_v34  ;;  %p2716_p11 = scmp.ne.s32.totalorder %s3593_s20, %s2715_s17 }
  0x1c   : > { %2621 = vmatprep.subr.bf16.mxu0 %v386_v6  ;;  %2595 = vmatmul.mubr.msk.f32.vlgmr.msra.gmra.mxu0 %vm387_vm0, %v2923_v15  ;;  %v1152_v38 = vrot.slane %v2971_v35, %v2929_v17  ;;  %v1470_v40 = vrot.slane %v1401_v39, %v2929_v17  ;;  %v1463_v41 = vrot.slane %v1401_v39, %v2919_v14 }
  0x1d   : > { %2622 = vmatpush3.bf16.msra.mxu0 %v386_v6  ;;  %1409 = vbcast.lane.b32.xlu0 %v1407_v22, 256  ;;  %v1484_v42 = vrot.slane %v1401_v39, %v2926_v16  ;;  %v1477_v43 = vrot.slane %v1401_v39, %v2916_v13  ;;  %v1498_v44 = vrot.slane %v1401_v39, %v2945_v26  ;;  %p2717_p12 = pnand %p2716_p11, %p2863_p5 }
  0x1e   : > { %2623 = vmatprep.subr.bf16.mxu0 %v385_v11  ;;  %2600 = vmatpush3.bf16.msra.mxu1 %v385_v11  ;;  %v1491_v45 = vrot.slane %v1401_v39, %v2948_v27  ;;  %v1512_v46 = vrot.slane %v1401_v39, %v2965_v33  ;;  %v1505_v47 = vrot.slane %v1401_v39, %v2968_v34 }
  0x1f   : > { %1430 = vbcast.lane.b32.xlu1 %v1428_v24, 256  ;;  %2601 = vmatprep.subr.bf16.mxu1 %v384_v23  ;;  %v514_v49 = vrot.slane %v500_v48, %v2929_v17  ;;  %v507_v50 = vrot.slane %v500_v48, %v2919_v14  ;;  %v528_v51 = vrot.slane %v500_v48, %v2926_v16  ;;  %p2718_p13 = pneg %p2717_p12 }
  0x20   : > { %v521_v52 = vrot.slane %v500_v48, %v2916_v13  ;;  %v542_v53 = vrot.slane %v500_v48, %v2945_v26  ;;  %v535_v54 = vrot.slane %v500_v48, %v2948_v27  ;;  %v556_v55 = vrot.slane %v500_v48, %v2965_v33 }
  0x21   : > { %2624 = vmatpush3.bf16.msra.mxu0 %v385_v11  ;;  %1416 = vbcast.lane.b32.xlu0 %v1414_v25, 256  ;;  %v549_v56 = vrot.slane %v500_v48, %v2968_v34  ;;  %v570_v58 = vrot.slane %v501_v57, %v2929_v17  ;;  %v563_v59 = vrot.slane %v501_v57, %v2919_v14 }
  0x22   : > { %2625 = vmatprep.subr.bf16.mxu0 %v384_v23  ;;  %2602 = vmatpush3.bf16.msra.mxu1 %v384_v23  ;;  %v584_v60 = vrot.slane %v501_v57, %v2926_v16  ;;  %v577_v61 = vrot.slane %v501_v57, %v2916_v13  ;;  %v598_v62 = vrot.slane %v501_v57, %v2945_v26 }
  0x23   : > { %1444 = vbcast.lane.b32.xlu1 %v1442_v31, 256  ;;  %2603 = vmatprep.subr.bf16.mxu1 %v383_v30  ;;  %v591_v63 = vrot.slane %v501_v57, %v2948_v27  ;;  %v612_v0 = vrot.slane %v501_v57, %v2965_v33  ;;  %v605_v1 = vrot.slane %v501_v57, %v2968_v34  ;;  %v1231_v31 = vsel %vm1230_vm1, %v502_v3, 0.0 }
  0x24   : > { %v1089_v4 = vrot.slane %v502_v3, %v2919_v14  ;;  %v1096_v5 = vrot.slane %v502_v3, %v2929_v17  ;;  %v1103_v6 = vrot.slane %v502_v3, %v2916_v13  ;;  %v1117_v7 = vrot.slane %v502_v3, %v2948_v27 }
  0x25   : > { %2626 = vmatpush3.bf16.msra.mxu0 %v384_v23  ;;  %1437 = vbcast.lane.b32.xlu0 %v1435_v32, 256  ;;  %v1110_v8 = vrot.slane %v502_v3, %v2926_v16  ;;  %v1131_v10 = vrot.slane %v502_v3, %v2968_v34  ;;  %v1124_v11 = vrot.slane %v502_v3, %v2945_v26 }
  0x26   : > { %2627 = vmatprep.subr.bf16.mxu0 %v383_v30  ;;  %2604 = vmatpush3.bf16.msra.mxu1 %v383_v30  ;;  %v1145_v18 = vrot.slane %v2971_v35, %v2919_v14  ;;  %v1138_v19 = vrot.slane %v502_v3, %v2965_v33  ;;  %v1159_v20 = vrot.slane %v2971_v35, %v2916_v13 }
  0x27   : > { %1458 = vbcast.lane.b32.xlu1 %v1456_v36, 256  ;;  %v1173_v21 = vrot.slane %v2971_v35, %v2948_v27  ;;  %v1166_v22 = vrot.slane %v2971_v35, %v2926_v16  ;;  %v1187_v23 = vrot.slane %v2971_v35, %v2968_v34  ;;  %v1180_v24 = vrot.slane %v2971_v35, %v2945_v26 }
  0x28   : > { %v1194_v25 = vrot.slane %v2971_v35, %v2965_v33 }
  0x29   : > { %2628 = vmatpush3.bf16.msra.mxu0 %v383_v30  ;;  %1451 = vbcast.lane.b32.xlu0 %v1449_v37, 256  ;;  %v2777_v37 = vmov 0.0  }
  0x2a   : > { %2141 = vst [vmem:[%s3549_s18] sm:$0xff] %v2777_v37  ;;  %2142 = vst [vmem:[%s3549_s18 + $0x8] sm:$0xff] %v2777_v37 }
  0x2b   : > { %1472 = vbcast.lane.b32.xlu1 %v1470_v40, 256 }
  0x2d   : > { %1465 = vbcast.lane.b32.xlu0 %v1463_v41, 256 }
  0x2f   : > { %1486 = vbcast.lane.b32.xlu1 %v1484_v42, 256 }
  0x31   : > { %1479 = vbcast.lane.b32.xlu0 %v1477_v43, 256 }
  0x33   : > { %1500 = vbcast.lane.b32.xlu1 %v1498_v44, 256 }
  0x35   : > { %1493 = vbcast.lane.b32.xlu0 %v1491_v45, 256 }
  0x37   : > { %1514 = vbcast.lane.b32.xlu1 %v1512_v46, 256 }
  0x39   : > { %1507 = vbcast.lane.b32.xlu0 %v1505_v47, 256 }
  0x3b   : > { %516 = vbcast.lane.b32.xlu1 %v514_v49, 256 }
  0x3d   : > { %509 = vbcast.lane.b32.xlu0 %v507_v50, 256 }
  0x3f   : > { %530 = vbcast.lane.b32.xlu1 %v528_v51, 256 }
  0x41   : > { %523 = vbcast.lane.b32.xlu0 %v521_v52, 256 }
  0x43   : > { %544 = vbcast.lane.b32.xlu1 %v542_v53, 256  ;;  %v1234_v53 = vsel %vm1230_vm1, %v2971_v35, 0.0 }
  0x45   : > { %537 = vbcast.lane.b32.xlu0 %v535_v54, 256 }
  0x47   : > { %558 = vbcast.lane.b32.xlu1 %v556_v55, 256 }
  0x49   : > { %551 = vbcast.lane.b32.xlu0 %v549_v56, 256 }
  0x4b   : > { %572 = vbcast.lane.b32.xlu1 %v570_v58, 256  ;;  %v3069_v58 = vld [vmem:[%s3061_s9] sm:$0xff] }
  0x4d   : > { %565 = vbcast.lane.b32.xlu0 %v563_v59, 256 }
  0x4f   : > { %586 = vbcast.lane.b32.xlu1 %v584_v60, 256 }
  0x51   : > { %579 = vbcast.lane.b32.xlu0 %v577_v61, 256 }
  0x53   : > { %600 = vbcast.lane.b32.xlu1 %v598_v62, 256 }
  0x55   : > { %593 = vbcast.lane.b32.xlu0 %v591_v63, 256 }
  0x57   : > { %614 = vbcast.lane.b32.xlu1 %v612_v0, 256  ;;  %v1817_v0 = vrot.slane %v3069_v58, %v2929_v17 }
  0x59   : > { %607 = vbcast.lane.b32.xlu0 %v605_v1, 256 }
  0x5b   : > { %1091 = vbcast.lane.b32.xlu1 %v1089_v4, 256 }
  0x5d   : > { %1098 = vbcast.lane.b32.xlu0 %v1096_v5, 256 }
  0x5f   : > { %1105 = vbcast.lane.b32.xlu1 %v1103_v6, 256 }
  0x61   : > { %1119 = vbcast.lane.b32.xlu0 %v1117_v7, 256  ;;  %v1824_v7 = vrot.slane %v3069_v58, %v2916_v13 }
  0x63   : > { %1112 = vbcast.lane.b32.xlu1 %v1110_v8, 256 }
  0x65   : > { %1133 = vbcast.lane.b32.xlu0 %v1131_v10, 256 }
  0x67   : > { %1126 = vbcast.lane.b32.xlu1 %v1124_v11, 256 }
  0x69   : > { %1147 = vbcast.lane.b32.xlu0 %v1145_v18, 256 }
  0x6b   : > { %1140 = vbcast.lane.b32.xlu1 %v1138_v19, 256 }
  0x6d   : > { %1161 = vbcast.lane.b32.xlu0 %v1159_v20, 256  ;;  %v1810_v20 = vrot.slane %v3069_v58, %v2919_v14 }
  0x6f   : > { %1154 = vbcast.lane.b32.xlu1 %v1152_v38, 256 }
  0x71   : > { %1175 = vbcast.lane.b32.xlu0 %v1173_v21, 256  ;;  %v1831_v21 = vrot.slane %v3069_v58, %v2926_v16 }
  0x73   : > { %1168 = vbcast.lane.b32.xlu1 %v1166_v22, 256  ;;  %v3095_v22 = vld [vmem:[%s3061_s9 + $0x8] sm:$0xff]  ;;  %s2721_s9 = scalar_lea.vmem %s2720_s8, 512 }
  0x74   : > { %p2723_p1 = scmp.lt.s32.totalorder %s2721_s9, %s2715_s17 }
  0x75   : > { %1189 = vbcast.lane.b32.xlu0 %v1187_v23, 256 }
  0x76   : > { %p2724_p2 = por %p2723_p1, %p2722_p0 }
  0x77   : > { %1182 = vbcast.lane.b32.xlu1 %v1180_v24, 256 }
  0x78   : > { %p2725_p3 = pnand %p2724_p2, %p2718_p13 }
  0x7b   : > { %1196 = vbcast.lane.b32.xlu1 %v1194_v25, 256 }
  0x8d   : > { %v1424_v29 = vpop.permute.xlu1 %1423 }
  0x8e   : > { %vm1518_vm2 = vcmp.eq.s32.totalorder %v3033_v28, %v1424_v29 }
  0x8f   : > { %v1410_v30 = vpop.permute.xlu0 %1409  ;;  %v2504_v2 = vsel %vm1518_vm2, 1.0, %v2777_v37 }
  0x90   : > { %vm1516_vm3 = vcmp.eq.s32.totalorder %v3033_v28, %v1410_v30 }
  0x91   : > { %v1431_v32 = vpop.permute.xlu1 %1430  ;;  %v2502_v38 = vsel %vm1516_vm3, 1.0, %v2777_v37 }
  0x92   : > { %vm1519_vm4 = vcmp.eq.s32.totalorder %v3033_v28, %v1431_v32  ;;  %v1838_v32 = vrot.slane %v3069_v58, %v2948_v27 }
  0x93   : > { %v1417_v36 = vpop.permute.xlu0 %1416  ;;  %v2505_v39 = vsel %vm1519_vm4, 1.0, %v2777_v37 }
  0x94   : > { %vm1517_vm5 = vcmp.eq.s32.totalorder %v3033_v28, %v1417_v36  ;;  %1232 = vadd.xlane.f32.xlu0 %v1231_v31  ;;  %v2548_v41 = vpack.c.bf16 %v2505_v39, %v2504_v2  ;;  %v1866_v31 = vrot.slane %v3095_v22, %v2919_v14 }
  0x95   : > { %v2503_v40 = vsel %vm1517_vm5, 1.0, %v2777_v37  ;;  %v1445_v43 = vpop.permute.xlu1 %1444 }
  0x96   : > { %v2547_v42 = vpack.c.bf16 %v2503_v40, %v2502_v38  ;;  %vm1521_vm7 = vcmp.eq.s32.totalorder %v3033_v28, %v1445_v43 }
  0x97   : > { %v1438_v44 = vpop.permute.xlu0 %1437  ;;  %v2507_v45 = vsel %vm1521_vm7, 1.0, %v2777_v37 }
  0x98   : > { %vm1520_vm8 = vcmp.eq.s32.totalorder %v3033_v28, %v1438_v44  ;;  %2629 = vmatprep.mubr.msk.bf16.mxu0 %vm720_vm6, %v2547_v42  ;;  %v1845_v42 = vrot.slane %v3069_v58, %v2945_v26 }
  0x99   : > { %v2506_v46 = vsel %vm1520_vm8, 1.0, %v2777_v37  ;;  %2630 = vmatmul.mubr.msk.bf16.vlgmr.msra.gmra.mxu0 %vm720_vm6, %v2548_v41  ;;  %v1459_v48 = vpop.permute.xlu1 %1458  ;;  %v1873_v41 = vrot.slane %v3095_v22, %v2929_v17 }
  0x9a   : > { %v2549_v47 = vpack.c.bf16 %v2507_v45, %v2506_v46  ;;  %vm1523_vm9 = vcmp.eq.s32.totalorder %v3033_v28, %v1459_v48 }
  0x9b   : > { %v1452_v49 = vpop.permute.xlu0 %1451  ;;  %v2509_v50 = vsel %vm1523_vm9, 1.0, %v2777_v37 }
  0x9c   : > { %vm1522_vm10 = vcmp.eq.s32.totalorder %v3033_v28, %v1452_v49  ;;  %2633 = vmatprep.mubr.msk.bf16.mxu0 %vm720_vm6, %v2549_v47 }
  0x9d   : > { %v2508_v51 = vsel %vm1522_vm10, 1.0, %v2777_v37  ;;  %v1473_v54 = vpop.permute.xlu1 %1472 }
  0x9e   : > { %v2550_v52 = vpack.c.bf16 %v2509_v50, %v2508_v51  ;;  %vm1525_vm11 = vcmp.eq.s32.totalorder %v3033_v28, %v1473_v54 }
  0x9f   : > { %v1466_v55 = vpop.permute.xlu0 %1465  ;;  %v2511_v56 = vsel %vm1525_vm11, 1.0, %v2777_v37  ;;  %1235 = vadd.xlane.f32.xlu1 %v1234_v53 }
  0xa0   : > { %vm1524_vm12 = vcmp.eq.s32.totalorder %v3033_v28, %v1466_v55 }
  0xa1   : > { %v2510_v57 = vsel %vm1524_vm12, 1.0, %v2777_v37  ;;  %2634 = vmatmul.mubr.msk.bf16.gmra.mxu0 %vm720_vm6, %v2550_v52  ;;  %v1487_v59 = vpop.permute.xlu1 %1486 }
  0xa2   : > { %v2551_v35 = vpack.c.bf16 %v2511_v56, %v2510_v57  ;;  %vm1527_vm13 = vcmp.eq.s32.totalorder %v3033_v28, %v1487_v59 }
  0xa3   : > { %v1480_v60 = vpop.permute.xlu0 %1479  ;;  %v2513_v61 = vsel %vm1527_vm13, 1.0, %v2777_v37 }
  0xa4   : > { %vm1526_vm14 = vcmp.eq.s32.totalorder %v3033_v28, %v1480_v60  ;;  %2637 = vmatprep.mubr.msk.bf16.mxu0 %vm720_vm6, %v2551_v35 }
  0xa5   : > { %v2512_v62 = vsel %vm1526_vm14, 1.0, %v2777_v37  ;;  %v1501_v1 = vpop.permute.xlu1 %1500 }
  0xa6   : > { %v2552_v63 = vpack.c.bf16 %v2513_v61, %v2512_v62  ;;  %vm1529_vm15 = vcmp.eq.s32.totalorder %v3033_v28, %v1501_v1 }
  0xa7   : > { %v1494_v3 = vpop.permute.xlu0 %1493  ;;  %v2515_v4 = vsel %vm1529_vm15, 1.0, %v2777_v37 }
  0xa8   : > { %vm1528_vm2 = vcmp.eq.s32.totalorder %v3033_v28, %v1494_v3 }
  0xa9   : > { %v2514_v5 = vsel %vm1528_vm2, 1.0, %v2777_v37  ;;  %2638 = vmatmul.mubr.msk.bf16.gmra.mxu0 %vm720_vm6, %v2552_v63  ;;  %v1515_v8 = vpop.permute.xlu1 %1514 }
  0xaa   : > { %v2553_v6 = vpack.c.bf16 %v2515_v4, %v2514_v5  ;;  %1819 = vbcast.lane.b32.xlu0 %v1817_v0, 256  ;;  %vm1531_vm3 = vcmp.eq.s32.totalorder %v3033_v28, %v1515_v8 }
  0xab   : > { %v1508_v10 = vpop.permute.xlu0 %1507  ;;  %v2517_v11 = vsel %vm1531_vm3, 1.0, %v2777_v37 }
  0xac   : > { %vm1530_vm4 = vcmp.eq.s32.totalorder %v3033_v28, %v1508_v10  ;;  %2641 = vmatprep.mubr.msk.bf16.mxu0 %vm720_vm6, %v2553_v6 }
  0xad   : > { %v2516_v18 = vsel %vm1530_vm4, 1.0, %v2777_v37  ;;  %v517_v23 = vpop.permute.xlu1 %516 }
  0xae   : > { %v2554_v19 = vpack.c.bf16 %v2517_v11, %v2516_v18  ;;  %1826 = vbcast.lane.b32.xlu0 %v1824_v7, 256  ;;  %vm617_vm5 = vcmp.eq.s32.totalorder %v3033_v28, %v517_v23 }
  0xaf   : > { %v510_v24 = vpop.permute.xlu0 %509  ;;  %v2471_v29 = vsel %vm617_vm5, 1.0, %v2777_v37 }
  0xb0   : > { %vm616_vm7 = vcmp.eq.s32.totalorder %v3033_v28, %v510_v24  ;;  %1812 = vbcast.lane.b32.xlu1 %v1810_v20, 256 }
  0xb1   : > { %2642 = vmatmul.mubr.msk.bf16.gmra.mxu0 %vm720_vm6, %v2554_v19  ;;  %v2470_v25 = vsel %vm616_vm7, 1.0, %v2777_v37  ;;  %v531_v36 = vpop.permute.xlu1 %530 }
  0xb2   : > { %v2539_v30 = vpack.c.bf16 %v2471_v29, %v2470_v25  ;;  %1833 = vbcast.lane.b32.xlu0 %v1831_v21, 256  ;;  %vm619_vm8 = vcmp.eq.s32.totalorder %v3033_v28, %v531_v36  ;;  %v1880_v25 = vrot.slane %v3095_v22, %v2916_v13  ;;  %v1887_v29 = vrot.slane %v3095_v22, %v2926_v16 }
  0xb3   : > { %v524_v2 = vpop.permute.xlu0 %523  ;;  %v2473_v38 = vsel %vm619_vm8, 1.0, %v2777_v37  ;;  %v1901_v36 = vrot.slane %v3095_v22, %v2945_v26  ;;  %v1908_v13 = vrot.slane %v3095_v22, %v2968_v34  ;;  %v1915_v16 = vrot.slane %v3095_v22, %v2965_v33 }
  0xb4   : > { %vm618_vm9 = vcmp.eq.s32.totalorder %v3033_v28, %v524_v2  ;;  %2605 = vmatprep.mubr.msk.bf16.mxu1 %vm720_vm6, %v2539_v30  ;;  %1868 = vbcast.lane.b32.xlu1 %v1866_v31, 256  ;;  %v1852_v30 = vrot.slane %v3069_v58, %v2968_v34  ;;  %v1894_v31 = vrot.slane %v3095_v22, %v2948_v27  ;;  %v2778_v2 = vmov 1966171168  }
  0xb5   : > { %v2472_v39 = vsel %vm618_vm9, 1.0, %v2777_v37  ;;  %v545_v43 = vpop.permute.xlu1 %544  ;;  %v844_v27 = vunpack.c.l.s4 %v2778_v2 }
  0xb6   : > { %v2540_v40 = vpack.c.bf16 %v2473_v38, %v2472_v39  ;;  %1840 = vbcast.lane.b32.xlu0 %v1838_v32, 256  ;;  %vm621_vm10 = vcmp.eq.s32.totalorder %v3033_v28, %v545_v43  ;;  %v1859_v32 = vrot.slane %v3069_v58, %v2965_v33 }
  0xb7   : > { %v538_v44 = vpop.permute.xlu0 %537  ;;  %v2475_v45 = vsel %vm621_vm10, 1.0, %v2777_v37  ;;  %vm475_vm10 = vcmask 23552   ;;  %v845_v38 = vunpack.c.0.s8 %v844_v27 }
  0xb8   : > { %vm620_vm11 = vcmp.eq.s32.totalorder %v3033_v28, %v538_v44  ;;  %2606 = vmatmul.mubr.msk.bf16.vlgmr.msra.gmra.mxu1 %vm720_vm6, %v2540_v40  ;;  %1875 = vbcast.lane.b32.xlu1 %v1873_v41, 256 }
  0xb9   : > { %v2474_v46 = vsel %vm620_vm11, 1.0, %v2777_v37  ;;  %v559_v17 = vpop.permute.xlu1 %558  ;;  %v3171_v39 = vsub.s32 %v845_v38, %v2896_v9 }
  0xba   : > { %v2541_v47 = vpack.c.bf16 %v2475_v45, %v2474_v46  ;;  %1847 = vbcast.lane.b32.xlu0 %v1845_v42, 256  ;;  %vm623_vm12 = vcmp.eq.s32.totalorder %v3033_v28, %v559_v17 }
  0xbb   : > { %v552_v48 = vpop.permute.xlu0 %551  ;;  %v2477_v49 = vsel %vm623_vm12, 1.0, %v2777_v37  ;;  %v849_v40 = vrot.slane %v2913_v12, %v3171_v39  ;;  %vm1371_vm12 = vcmask 1043459  }
  0xbc   : > { %vm622_vm13 = vcmp.eq.s32.totalorder %v3033_v28, %v552_v48  ;;  %2609 = vmatprep.mubr.msk.bf16.mxu1 %vm720_vm6, %v2541_v47 }
  0xbd   : > { %v2476_v50 = vsel %vm622_vm13, 1.0, %v2777_v37  ;;  %v573_v52 = vpop.permute.xlu1 %572  ;;  %v865_v26 = vrot.slane %v849_v40, %v3171_v39  ;;  %vm1373_vm13 = vcmask 1044484  }
  0xbe   : > { %v2542_v51 = vpack.c.bf16 %v2477_v49, %v2476_v50  ;;  %vm625_vm14 = vcmp.eq.s32.totalorder %v3033_v28, %v573_v52 }
  0xbf   : > { %v566_v53 = vpop.permute.xlu0 %565  ;;  %v2479_v54 = vsel %vm625_vm14, 1.0, %v2777_v37  ;;  %v943_v34 = vrot.slane %v865_v26, %v2919_v14  ;;  %vm1375_vm14 = vcmask 1045509  }
  0xc0   : > { %2610 = vmatmul.mubr.msk.bf16.gmra.mxu1 %vm720_vm6, %v2542_v51  ;;  %vm624_vm15 = vcmp.eq.s32.totalorder %v3033_v28, %v566_v53  ;;  %v857_v51 = vcombine.high %v849_v40, %v849_v40  ;;  %v842_v53 = vcombine.high %v2913_v12, %v2913_v12 }
  0xc1   : > { %v2478_v55 = vsel %vm624_vm15, 1.0, %v2777_v37  ;;  %v587_v57 = vpop.permute.xlu1 %586  ;;  %vm1377_vm15 = vcmask 1046534  }
  0xc2   : > { %v2543_v56 = vpack.c.bf16 %v2479_v54, %v2478_v55  ;;  %vm627_vm2 = vcmp.eq.s32.totalorder %v3033_v28, %v587_v57  ;;  %v879_v57 = vrot.slane %v857_v51, %v3171_v39 }
  0xc3   : > { %v580_v35 = vpop.permute.xlu0 %579  ;;  %v2481_v59 = vsel %vm627_vm2, 1.0, %v2777_v37  ;;  %vm1379_vm2 = vcmask 1047559  }
  0xc4   : > { %vm626_vm3 = vcmp.eq.s32.totalorder %v3033_v28, %v580_v35  ;;  %2613 = vmatprep.mubr.msk.bf16.mxu1 %vm720_vm6, %v2543_v56  ;;  %v887_v56 = vcombine.high %v865_v26, %v865_v26  ;;  %v856_v35 = vrot.slane %v842_v53, %v3171_v39 }
  0xc5   : > { %v2480_v60 = vsel %vm626_vm3, 1.0, %v2777_v37  ;;  %v601_v62 = vpop.permute.xlu1 %600  ;;  %vm2146_vm3 = vcmask 15368  }
  0xc6   : > { %v2544_v61 = vpack.c.bf16 %v2481_v59, %v2480_v60  ;;  %vm629_vm4 = vcmp.eq.s32.totalorder %v3033_v28, %v601_v62  ;;  %v872_v40 = vrot.slane %v856_v35, %v3171_v39 }
  0xc7   : > { %v594_v63 = vpop.permute.xlu0 %593  ;;  %v2483_v0 = vsel %vm629_vm4, 1.0, %v2777_v37  ;;  %vm2149_vm4 = vcmask 23568  }
  0xc8   : > { %2614 = vmatmul.mubr.msk.bf16.gmra.mxu1 %vm720_vm6, %v2544_v61  ;;  %vm628_vm5 = vcmp.eq.s32.totalorder %v3033_v28, %v594_v63  ;;  %v858_v61 = vcombine.high %v856_v35, %v856_v35  ;;  %v951_v63 = vrot.slane %v887_v56, %v2919_v14 }
  0xc9   : > { %v2482_v1 = vsel %vm628_vm5, 1.0, %v2777_v37  ;;  %v615_v4 = vpop.permute.xlu1 %614  ;;  %vm2158_vm5 = vcmask 48152  }
  0xca   : > { %v2545_v3 = vpack.c.bf16 %v2483_v0, %v2482_v1  ;;  %vm631_vm7 = vcmp.eq.s32.totalorder %v3033_v28, %v615_v4  ;;  %v889_v0 = vcombine.high %v879_v57, %v879_v57  ;;  %v898_v4 = vrot.slane %v2923_v15, %v3171_v39 }
  0xcb   : > { %v608_v5 = vpop.permute.xlu0 %607  ;;  %v2485_v6 = vsel %vm631_vm7, 1.0, %v2777_v37  ;;  %vm2242_vm7 = vcmask 113712  }
  0xcc   : > { %vm630_vm8 = vcmp.eq.s32.totalorder %v3033_v28, %v608_v5  ;;  %2617 = vmatprep.mubr.msk.bf16.mxu1 %vm720_vm6, %v2545_v3  ;;  %v886_v5 = vrot.slane %v858_v61, %v3171_v39  ;;  %v906_v26 = vcombine.high %v898_v4, %v898_v4  ;;  %v888_v61 = vcombine.high %v872_v40, %v872_v40 }
  0xcd   : > { %v2484_v7 = vsel %vm630_vm8, 1.0, %v2777_v37  ;;  %v3176_v41 = vpop.permute.xlu1 %1091  ;;  %vm2326_vm8 = vcmask 179312  }
  0xce   : > { %v2546_v8 = vpack.c.bf16 %v2485_v6, %v2484_v7  ;;  %v3239_v35 = vrot.slane %v886_v5, %v2919_v14 }
  0xcf   : > { %v3179_v42 = vpop.permute.xlu0 %1098 }
  0xd0   : > { %2618 = vmatmul.mubr.msk.bf16.gmra.mxu1 %vm720_vm6, %v2546_v8  ;;  %vm1369_vm6 = vcmask 1042434  }
  0xd1   : > { %v3181_v45 = vpop.permute.xlu1 %1105 }
  0xd3   : > { %v3184_v47 = vpop.permute.xlu0 %1119 }
  0xd5   : > { %v3186_v17 = vpop.permute.xlu1 %1112 }
  0xd7   : > { %v3188_v48 = vpop.permute.xlu0 %1133 }
  0xd9   : > { %v3190_v49 = vpop.permute.xlu1 %1126 }
  0xdb   : > { %v3192_v50 = vpop.permute.xlu0 %1147 }
  0xdc   : > { %v2596_v10 = vpop.f32.mrf.mxu0 }
  0xdd   : > { %vm470_vm9 = vcmp.ge.f32.partialorder %v2596_v10, 0.0  ;;  %v472_v11 = vmul.f32 0.2, %v2596_v10  ;;  %v3194_v52 = vpop.permute.xlu1 %1140 }
  0xde   : > { %v460_v18 = vpop.f32.mrf.mxu0 }
  0xdf   : > { %vm469_vm11 = vcmp.ge.f32.partialorder %v460_v18, 0.0  ;;  %v471_v19 = vmul.f32 0.2, %v460_v18  ;;  %v3146_v20 = vsel %vm470_vm9, %v2596_v10, %v472_v11  ;;  %v3198_v55 = vpop.permute.xlu0 %1161  ;;  %v955_v10 = vrot.slane %v889_v0, %v2919_v14 }
  0xe0   : > { %v479_v21 = vsel %vm475_vm10, %v3146_v20, -inf  ;;  %v928_v0 = vrot.slane %v906_v26, %v3171_v39 }
  0xe1   : > { %480 = vmax.xlane.f32.xlu1 %v479_v21  ;;  %v3150_v23 = vsel %vm469_vm11, %v460_v18, %v471_v19  ;;  %v3202_v60 = vpop.permute.xlu1 %1154 }
  0xe2   : > { %v476_v24 = vsel %vm475_vm10, %v3150_v23, -inf }
  0xe3   : > { %477 = vmax.xlane.f32.xlu0 %v476_v24  ;;  %v3204_v62 = vpop.permute.xlu0 %1175  ;;  %v947_v24 = vrot.slane %v879_v57, %v2919_v14 }
  0xe5   : > { %v3212_v7 = vpop.permute.xlu1 %1168 }
  0xe7   : > { %v3218_v21 = vpop.permute.xlu0 %1189 }
  0xe9   : > { %v3226_v38 = vpop.permute.xlu1 %1182 }
  0xf2   : > { %1882 = vbcast.lane.b32.xlu1 %v1880_v25, 256 }
  0xf6   : > { %1889 = vbcast.lane.b32.xlu1 %v1887_v29, 256  ;;  %v890_v29 = vcombine.high %v886_v5, %v886_v5 }
  0xf9   : > { %1854 = vbcast.lane.b32.xlu0 %v1852_v30, 256  ;;  %v914_v30 = vrot.slane %v898_v4, %v3171_v39 }
  0xfa   : > { %1896 = vbcast.lane.b32.xlu1 %v1894_v31, 256 }
  0xfd   : > { %1861 = vbcast.lane.b32.xlu0 %v1859_v32, 256 }
  0xfe   : > { %1903 = vbcast.lane.b32.xlu1 %v1901_v36, 256 }
 0x102   : > { %1910 = vbcast.lane.b32.xlu1 %v1908_v13, 256 }
 0x106   : > { %1917 = vbcast.lane.b32.xlu1 %v1915_v16, 256 }
 0x159   : > { %v2631_v43 = vpop.f32.mrf.mxu0 }
 0x15a   : > { %v1743_v8 = vmul.f32 %v2631_v43, %v951_v63  ;;  %v936_v43 = vcombine.high %v914_v30, %v914_v30 }
 0x15b   : > { %v1678_v33 = vpop.f32.mrf.mxu0 }
 0x15c   : > { %v1741_v44 = vmul.f32 %v1678_v33, %v943_v34  ;;  %v1763_v13 = vsel %vm387_vm0, %v1743_v8, 0.0 }
 0x15d   : > { %v2632_v54 = vpop.f32.mrf.mxu0 }
 0x15e   : > { %v1757_v46 = vsel %vm387_vm0, %v1741_v44, 0.0  ;;  %v3229_v44 = vpop.xlane.xlu0 %1232 }
 0x15f   : > { %1758 = vadd.xlane.f32.xlu0 %v1757_v46  ;;  %v1681_v59 = vpop.f32.mrf.mxu0  ;;  %v3232_v46 = vrot.slane %v890_v29, %v2919_v14  ;;  %v1237_v37 = vmax.f32 %v3229_v44, 1.0 }
 0x160   : > { %v1742_v4 = vmul.f32 %v1681_v59, %v947_v24  ;;  %v3257_v59 = vrot.slane %v914_v30, %v2919_v14 }
 0x161   : > { %v3207_v1 = vpop.f32.mrf.mxu0 }
 0x162   : > { %v3254_v29 = vpop.permute.xlu0 %1819 }
 0x163   : > { %v3216_v18 = vpop.f32.mrf.mxu0 }
 0x165   : > { %v3224_v2 = vpop.f32.mrf.mxu0 }
 0x167   : > { %v3236_v56 = vpop.f32.mrf.mxu0 }
 0x169   : > { %v2639_v5 = vpop.f32.mrf.mxu0 }
 0x16b   : > { %v1710_v26 = vpop.f32.mrf.mxu0 }
 0x178   : > { %v2607_v12 = vpop.f32.mrf.mxu1 }
 0x179   : > { %v1022_v3 = vmul.f32 %v2607_v12, %v951_v63 }
 0x17a   : > { %v779_v6 = vpop.f32.mrf.mxu1 }
 0x17b   : > { %v1042_v11 = vsel %vm387_vm0, %v1022_v3, 0.0  ;;  %v1020_v32 = vmul.f32 %v943_v34, %v779_v6  ;;  %v1744_v34 = vmul.f32 %v2632_v54, %v955_v10  ;;  %v3243_v54 = vrot.slane %v936_v43, %v2919_v14  ;;  %v3246_v3 = vpop.permute.xlu1 %1196 }
 0x17c   : > { %v2608_v19 = vpop.f32.mrf.mxu1  ;;  %1043 = vadd.xlane.f32.xlu1 %v1042_v11  ;;  %v2779_v11 = vmov 0  }
 0x17d   : > { %v1023_v25 = vmul.f32 %v2608_v19, %v955_v10  ;;  %v1036_v51 = vsel %vm387_vm0, %v1020_v32, 0.0  ;;  %v1766_v8 = vsel %vm387_vm0, %v1744_v34, 0.0  ;;  %2691 = vset.pattern.permute.xlu1 %v2779_v11  ;;  %2692 = vset.pattern.permute.xlu0 %v2779_v11  ;;  %v1751_v32 = vmul.f32 %v2639_v5, %v3243_v54  ;;  %v2640_v11 = vpop.f32.mrf.mxu0 }
 0x17e   : > { %v782_v31 = vpop.f32.mrf.mxu1  ;;  %v891_v34 = vcombine.high %v2923_v15, %v2923_v15 }
 0x17f   : > { %v1021_v36 = vmul.f32 %v947_v24, %v782_v31  ;;  %v1045_v16 = vsel %vm387_vm0, %v1023_v25, 0.0  ;;  %v967_v25 = vrot.slane %v888_v61, %v2919_v14  ;;  %v938_v24 = vcombine.high %v928_v0, %v928_v0  ;;  %v3259_v31 = vpop.xlane.xlu1 %1235  ;;  %v3273_v61 = vpop.permute.xlu0 %1826 }
 0x180   : > { %v2611_v27 = vpop.f32.mrf.mxu1  ;;  %1764 = vadd.xlane.f32.xlu1 %v1763_v13  ;;  %1046 = vadd.xlane.f32.xlu0 %v1045_v16  ;;  %v1760_v13 = vsel %vm387_vm0, %v1742_v4, 0.0  ;;  %v959_v4 = vrot.slane %v872_v40, %v2919_v14 }
 0x181   : > { %v1039_v53 = vsel %vm387_vm0, %v1021_v36, 0.0  ;;  %v1026_v36 = vmul.f32 %v2611_v27, %v967_v25  ;;  %v987_v30 = vrot.slane %v938_v24, %v2919_v14 }
 0x182   : > { %v795_v33 = vpop.f32.mrf.mxu1  ;;  %v1745_v40 = vmul.f32 %v3216_v18, %v959_v4  ;;  %v1713_v18 = vpop.f32.mrf.mxu0 }
 0x183   : > { %v1054_v27 = vsel %vm387_vm0, %v1026_v36, 0.0  ;;  %v1752_v36 = vmul.f32 %v2640_v11, %v987_v30 }
 0x184   : > { %v2612_v57 = vpop.f32.mrf.mxu1  ;;  %1037 = vadd.xlane.f32.xlu1 %v1036_v51  ;;  %1040 = vadd.xlane.f32.xlu0 %v1039_v53  ;;  %v1747_v51 = vmul.f32 %v3207_v1, %v967_v25  ;;  %v1749_v53 = vmul.f32 %v1710_v26, %v3257_v59  ;;  %v3282_v25 = vpop.permute.xlu0 %1833 }
 0x185   : > { %v1027_v63 = vmul.f32 %v2612_v57, %v3232_v46  ;;  %v1787_v57 = vsel %vm387_vm0, %v1751_v32, 0.0 }
 0x186   : > { %v798_v12 = vpop.f32.mrf.mxu1  ;;  %v1775_v1 = vsel %vm387_vm0, %v1747_v51, 0.0  ;;  %v1748_v51 = vmul.f32 %v3224_v2, %v3232_v46 }
 0x187   : > { %v1025_v6 = vmul.f32 %v3239_v35, %v798_v12  ;;  %v1057_v10 = vsel %vm387_vm0, %v1027_v63, 0.0  ;;  %v3275_v12 = vpop.permute.xlu1 %1812 }
 0x188   : > { %1767 = vadd.xlane.f32.xlu1 %v1766_v8  ;;  %1058 = vadd.xlane.f32.xlu0 %v1057_v10  ;;  %v3251_v19 = vpop.f32.mrf.mxu1  ;;  %v1024_v8 = vmul.f32 %v959_v4, %v795_v33  ;;  %v1781_v10 = vsel %vm387_vm0, %v1749_v53, 0.0  ;;  %v1778_v46 = vsel %vm387_vm0, %v1748_v51, 0.0 }
 0x189   : > { %v1051_v16 = vsel %vm387_vm0, %v1025_v6, 0.0  ;;  %v905_v6 = vrot.slane %v891_v34, %v3171_v39 }
 0x18a   : > { %v3264_v43 = vpop.f32.mrf.mxu1  ;;  %v1048_v33 = vsel %vm387_vm0, %v1024_v8, 0.0  ;;  %v2643_v8 = vpop.f32.mrf.mxu0 }
 0x18b   : > { %v921_v24 = vrot.slane %v905_v6, %v3171_v39  ;;  %v3285_v32 = vpop.permute.xlu1 %1868  ;;  %v907_v34 = vcombine.high %v905_v6, %v905_v6 }
 0x18c   : > { %1761 = vadd.xlane.f32.xlu1 %v1760_v13  ;;  %1052 = vadd.xlane.f32.xlu0 %v1051_v16  ;;  %v2616_v63 = vpop.f32.mrf.mxu1  ;;  %v979_v16 = vrot.slane %v928_v0, %v2919_v14 }
 0x18d   : > { %v1031_v15 = vmul.f32 %v2616_v63, %v987_v30  ;;  %v937_v26 = vcombine.high %v921_v24, %v921_v24  ;;  %v3294_v63 = vpop.permute.xlu0 %1840  ;;  %v935_v0 = vrot.slane %v907_v34, %v3171_v39  ;;  %v991_v11 = vrot.slane %v921_v24, %v2919_v14 }
 0x18e   : > { %v814_v13 = vpop.f32.mrf.mxu1  ;;  %v1750_v2 = vmul.f32 %v1713_v18, %v979_v16  ;;  %v1030_v39 = vmul.f32 %v3251_v19, %v3243_v54  ;;  %v1028_v24 = vmul.f32 %v3257_v59, %v3264_v43 }
 0x18f   : > { %v1069_v5 = vsel %vm387_vm0, %v1031_v15, 0.0  ;;  %v1029_v53 = vmul.f32 %v979_v16, %v814_v13  ;;  %v3296_v30 = vpop.permute.xlu1 %1875  ;;  %v999_v4 = vrot.slane %v937_v26, %v2919_v14  ;;  %v1746_v15 = vmul.f32 %v3236_v56, %v3239_v35 }
 0x190   : > { %1055 = vadd.xlane.f32.xlu1 %v1054_v27  ;;  %1788 = vadd.xlane.f32.xlu0 %v1787_v57  ;;  %v1769_v27 = vsel %vm387_vm0, %v1745_v40, 0.0  ;;  %v1790_v57 = vsel %vm387_vm0, %v1752_v36, 0.0  ;;  %v1784_v35 = vsel %vm387_vm0, %v1750_v2, 0.0  ;;  %v1066_v51 = vsel %vm387_vm0, %v1030_v39, 0.0 }
 0x191   : > { %v1063_v6 = vsel %vm387_vm0, %v1029_v53, 0.0  ;;  %v1755_v36 = vmul.f32 %v2643_v8, %v999_v4  ;;  %v1772_v56 = vsel %vm387_vm0, %v1746_v15, 0.0 }
 0x193   : > { %v481_v40 = vpop.xlane.xlu1 %480  ;;  %v1799_v54 = vsel %vm387_vm0, %v1755_v36, 0.0 }
 0x194   : > { %1776 = vadd.xlane.f32.xlu1 %v1775_v1  ;;  %1782 = vadd.xlane.f32.xlu0 %v1781_v10  ;;  %v2619_v1 = vpop.f32.mrf.mxu1  ;;  %v3304_v10 = vpop.permute.xlu0 %1847  ;;  %v483_v16 = vsub.f32 %v3146_v20, %v481_v40  ;;  %v1060_v20 = vsel %vm387_vm0, %v1028_v24, 0.0 }
 0x196   : > { %v827_v13 = vpop.f32.mrf.mxu1  ;;  %v486_v18 = vmul.f32 1.442695, %v483_v16 }
 0x197   : > { %v1883_v16 = vpop.permute.xlu1 %1882 }
 0x198   : > { %1049 = vadd.xlane.f32.xlu1 %v1048_v33  ;;  %1070 = vadd.xlane.f32.xlu0 %v1069_v5  ;;  %v939_v5 = vcombine.high %v935_v0, %v935_v0  ;;  %v1726_v33 = vpop.f32.mrf.mxu0  ;;  %v478_v19 = vpop.xlane.xlu0 %477  ;;  %2695 = vpow2.f32 %v486_v18 }
 0x199   : > { %v1753_v34 = vmul.f32 %v1726_v33, %v991_v11  ;;  %v2620_v53 = vpop.f32.mrf.mxu1  ;;  %v482_v15 = vsub.f32 %v3150_v23, %v478_v19  ;;  %v995_v23 = vrot.slane %v935_v0, %v2919_v14 }
 0x19a   : > { %v1003_v26 = vrot.slane %v939_v5, %v2919_v14  ;;  %v1032_v5 = vmul.f32 %v991_v11, %v827_v13 }
 0x19b   : > { %v1793_v2 = vsel %vm387_vm0, %v1753_v34, 0.0 }
 0x19c   : > { %1770 = vadd.xlane.f32.xlu1 %v1769_v27  ;;  %1791 = vadd.xlane.f32.xlu0 %v1790_v57  ;;  %v1034_v27 = vmul.f32 %v2619_v1, %v999_v4  ;;  %v1035_v57 = vmul.f32 %v2620_v53, %v1003_v26  ;;  %v830_v4 = vpop.f32.mrf.mxu1  ;;  %v1072_v40 = vsel %vm387_vm0, %v1032_v5, 0.0 }
 0x19d   : > { %v1033_v1 = vmul.f32 %v995_v23, %v830_v4 }
 0x19e   : > { %v1078_v59 = vsel %vm387_vm0, %v1034_v27, 0.0  ;;  %v1081_v43 = vsel %vm387_vm0, %v1035_v57, 0.0 }
 0x1a0   : > { %1779 = vadd.xlane.f32.xlu1 %v1778_v46  ;;  %1064 = vadd.xlane.f32.xlu0 %v1063_v6  ;;  %v2644_v46 = vpop.f32.mrf.mxu0  ;;  %v484_v6 = vmul.f32 1.442695, %v482_v15 }
 0x1a1   : > { %v1756_v8 = vmul.f32 %v2644_v46, %v1003_v26  ;;  %v3335_v26 = vpop.permute.xlu1 %1889 }
 0x1a2   : > { %2697 = vpow2.f32 %v484_v6  ;;  %v1729_v39 = vpop.f32.mrf.mxu0 }
 0x1a3   : > { %v1802_v36 = vsel %vm387_vm0, %v1756_v8, 0.0 }
 0x1a4   : > { %1773 = vadd.xlane.f32.xlu1 %v1772_v56  ;;  %1785 = vadd.xlane.f32.xlu0 %v1784_v35  ;;  %v1754_v56 = vmul.f32 %v1729_v39, %v995_v23  ;;  %v1075_v35 = vsel %vm387_vm0, %v1033_v1, 0.0 }
 0x1a5   : > { %v3327_v33 = vpop.eup %2695  ;;  %v3337_v34 = vpop.permute.xlu1 %1896 }
 0x1a6   : > { %v1796_v11 = vsel %vm387_vm0, %v1754_v56, 0.0  ;;  %v491_v14 = vsel %vm475_vm10, %v3327_v33, 0.0  ;;  %vm1367_vm0 = vcmask 1041409  }
 0x1a8   : > { %1067 = vadd.xlane.f32.xlu1 %v1066_v51  ;;  %1800 = vadd.xlane.f32.xlu0 %v1799_v54  ;;  %v1855_v54 = vpop.permute.xlu0 %1854 }
 0x1a9   : > { %v3339_v24 = vpop.permute.xlu1 %1903 }
 0x1ac   : > { %1061 = vadd.xlane.f32.xlu1 %v1060_v20  ;;  %1794 = vadd.xlane.f32.xlu0 %v1793_v2  ;;  %v1862_v53 = vpop.permute.xlu0 %1861 }
 0x1ad   : > { %v3341_v51 = vpop.permute.xlu1 %1910 }
 0x1af   : > { %v3331_v0 = vpop.eup %2697 }
 0x1b0   : > { %1079 = vadd.xlane.f32.xlu1 %v1078_v59  ;;  %1082 = vadd.xlane.f32.xlu0 %v1081_v43  ;;  %v488_v13 = vsel %vm475_vm10, %v3331_v0, 0.0 }
 0x1b1   : > { %v3343_v19 = vpop.permute.xlu1 %1917 }
 0x1b4   : > { %1073 = vadd.xlane.f32.xlu1 %v1072_v40  ;;  %1803 = vadd.xlane.f32.xlu0 %v1802_v36 }
 0x1b8   : > { %1076 = vadd.xlane.f32.xlu0 %v1075_v35 }
 0x1bc   : > { %1797 = vadd.xlane.f32.xlu0 %v1796_v11 }
 0x1c0   : > { %492 = vadd.xlane.f32.xlu0 %v491_v14 }
 0x1c4   : > { %489 = vadd.xlane.f32.xlu0 %v488_v13 }
 0x1e8   : > { %v1759_v27 = vpop.xlane.xlu0 %1758 }
 0x205   : > { %v1044_v57 = vpop.xlane.xlu1 %1043 }
 0x206   : > { %v1216_v18 = vmul.f32 %v3181_v45, %v1044_v57  ;;  %v1935_v45 = vmul.f32 %v3275_v12, %v1759_v27 }
 0x208   : > { %1262 = vperm.xlu1 %2691, %v1216_v18  }
 0x209   : > { %v1765_v15 = vpop.xlane.xlu1 %1764  ;;  %v1047_v20 = vpop.xlane.xlu0 %1046 }
 0x20a   : > { %v1937_v2 = vmul.f32 %v3273_v61, %v1765_v15  ;;  %v1217_v46 = vmul.f32 %v3186_v17, %v1047_v20 }
 0x20c   : > { %1982 = vperm.xlu0 %2692, %v1937_v2   ;;  %1265 = vperm.xlu1 %2691, %v1217_v46  }
 0x20d   : > { %v1038_v59 = vpop.xlane.xlu1 %1037  ;;  %v1041_v43 = vpop.xlane.xlu0 %1040 }
 0x20e   : > { %v1214_v6 = vmul.f32 %v3176_v41, %v1038_v59  ;;  %v1215_v8 = vmul.f32 %v3179_v42, %v1041_v43 }
 0x210   : > { %1256 = vperm.xlu0 %2692, %v1214_v6   ;;  %1259 = vperm.xlu1 %2691, %v1215_v8  }
 0x211   : > { %v1768_v5 = vpop.xlane.xlu1 %1767  ;;  %v1059_v4 = vpop.xlane.xlu0 %1058 }
 0x212   : > { %v1938_v61 = vmul.f32 %v3282_v25, %v1768_v5 }
 0x214   : > { %1976 = vperm.xlu0 %2692, %v1935_v45  }
 0x215   : > { %v1762_v23 = vpop.xlane.xlu1 %1761  ;;  %v1053_v1 = vpop.xlane.xlu0 %1052 }
 0x216   : > { %v1936_v17 = vmul.f32 %v3254_v29, %v1762_v23  ;;  %v1221_v29 = vmul.f32 %v3194_v52, %v1059_v4  ;;  %v1219_v57 = vmul.f32 %v3190_v49, %v1053_v1 }
 0x218   : > { %1985 = vperm.xlu0 %2692, %v1938_v61   ;;  %1979 = vperm.xlu1 %2691, %v1936_v17  }
 0x219   : > { %v1056_v40 = vpop.xlane.xlu1 %1055  ;;  %v1789_v36 = vpop.xlane.xlu0 %1788 }
 0x21a   : > { %v1220_v41 = vmul.f32 %v3188_v48, %v1056_v40  ;;  %v1945_v20 = vmul.f32 %v1883_v16, %v1789_v36 }
 0x21c   : > { %1274 = vperm.xlu1 %2691, %v1220_v41  }
 0x21d   : > { %v1777_v42 = vpop.xlane.xlu1 %1776  ;;  %v1783_v39 = vpop.xlane.xlu0 %1782 }
 0x21e   : > { %v1941_v56 = vmul.f32 %v1855_v54, %v1777_v42  ;;  %v1943_v16 = vmul.f32 %v3285_v32, %v1783_v39  ;;  %v1951_v32 = vsel %vm1230_vm1, %v3069_v58, 0.0  ;;  %v2245_v39 = vadd.s32 4294967282, %v3033_v28 }
 0x220   : > { %1994 = vperm.xlu0 %2692, %v1941_v56  }
 0x221   : > { %v1050_v35 = vpop.xlane.xlu1 %1049  ;;  %v1071_v12 = vpop.xlane.xlu0 %1070 }
 0x222   : > { %v1218_v11 = vmul.f32 %v3184_v47, %v1050_v35  ;;  %v1225_v58 = vmul.f32 %v3212_v7, %v1071_v12 }
 0x224   : > { %1268 = vperm.xlu1 %2691, %v1218_v11  }
 0x225   : > { %v1771_v14 = vpop.xlane.xlu1 %1770  ;;  %v1792_v25 = vpop.xlane.xlu0 %1791 }
 0x226   : > { %v1939_v13 = vmul.f32 %v3294_v63, %v1771_v14  ;;  %v1946_v63 = vmul.f32 %v3335_v26, %v1792_v25  ;;  %v3398_v14 = vsub.s32 %v2245_v39, %v2896_v9 }
 0x228   : > { %1988 = vperm.xlu0 %2692, %v1939_v13   ;;  %1277 = vperm.xlu1 %2691, %v1221_v29  }
 0x229   : > { %v1780_v27 = vpop.xlane.xlu1 %1779  ;;  %v1065_v48 = vpop.xlane.xlu0 %1064 }
 0x22a   : > { %v1942_v18 = vmul.f32 %v1862_v53, %v1780_v27  ;;  %v1223_v43 = vmul.f32 %v3202_v60, %v1065_v48 }
 0x22c   : > { %1997 = vperm.xlu0 %2692, %v1942_v18   ;;  %1271 = vperm.xlu1 %2691, %v1219_v57  }
 0x22d   : > { %v1774_v54 = vpop.xlane.xlu1 %1773  ;;  %v1786_v15 = vpop.xlane.xlu0 %1785 }
 0x22e   : > { %v1940_v47 = vmul.f32 %v3304_v10, %v1774_v54  ;;  %v1944_v10 = vmul.f32 %v3296_v30, %v1786_v15 }
 0x230   : > { %1991 = vperm.xlu0 %2692, %v1940_v47   ;;  %2006 = vperm.xlu1 %2691, %v1945_v20   ;;  %v3409_v47 = vsub.s32 %v3033_v28, %v2896_v9 }
 0x231   : > { %v1068_v2 = vpop.xlane.xlu1 %1067  ;;  %v1801_v52 = vpop.xlane.xlu0 %1800 }
 0x232   : > { %v1949_v8 = vmul.f32 %v3341_v51, %v1801_v52  ;;  %v1954_v51 = vsel %vm1230_vm1, %v3095_v22, 0.0  ;;  %v1224_v45 = vmul.f32 %v3198_v55, %v1068_v2  ;;  %v2161_v55 = vadd.s32 4294967290, %v3033_v28 }
 0x234   : > { %2009 = vperm.xlu1 %2691, %v1946_v63  }
 0x235   : > { %v1062_v46 = vpop.xlane.xlu1 %1061  ;;  %v1795_v59 = vpop.xlane.xlu0 %1794 }
 0x236   : > { %v1222_v49 = vmul.f32 %v3192_v50, %v1062_v46  ;;  %v1947_v5 = vmul.f32 %v3337_v34, %v1795_v59 }
 0x238   : > { %1280 = vperm.xlu0 %2692, %v1222_v49   ;;  %1283 = vperm.xlu1 %2691, %v1223_v43  }
 0x239   : > { %v1083_v53 = vpop.xlane.xlu0 %1082  ;;  %v1080_v30 = vpop.xlane.xlu1 %1079 }
 0x23a   : > { %v1229_v1 = vmul.f32 %v3246_v3, %v1083_v53 }
 0x23c   : > { %2000 = vperm.xlu0 %2692, %v1943_v16   ;;  %2003 = vperm.xlu1 %2691, %v1944_v10  }
 0x23d   : > { %v1804_v6 = vpop.xlane.xlu0 %1803  ;;  %v1074_v23 = vpop.xlane.xlu1 %1073 }
 0x23e   : > { %v1950_v60 = vmul.f32 %v3343_v19, %v1804_v6  ;;  %v1226_v34 = vmul.f32 %v3204_v62, %v1074_v23  ;;  %v1228_v19 = vmul.f32 %v3218_v21, %v1080_v30  ;;  %v3386_v21 = vsub.s32 %v2161_v55, %v2896_v9 }
 0x240   : > { %2018 = vperm.xlu1 %2691, %v1949_v8  }
 0x241   : > { %v1077_v26 = vpop.xlane.xlu0 %1076 }
 0x242   : > { %v1227_v17 = vmul.f32 %v3226_v38, %v1077_v26 }
 0x244   : > { %2012 = vperm.xlu1 %2691, %v1947_v5  }
 0x245   : > { %v1798_v50 = vpop.xlane.xlu0 %1797 }
 0x246   : > { %v1948_v4 = vmul.f32 %v3339_v24, %v1798_v50 }
 0x248   : > { %2021 = vperm.xlu1 %2691, %v1950_v60  }
 0x249   : > { %v3375_v24 = vpop.xlane.xlu0 %492 }
 0x24a   : > { %2699 = vrcp.f32 %v3375_v24 }
 0x24c   : > { %2015 = vperm.xlu1 %2691, %v1948_v4  }
 0x24d   : > { %v3379_v61 = vpop.xlane.xlu0 %489 }
 0x24e   : > { %2701 = vrcp.f32 %v3379_v61 }
 0x25b   : > { %1952 = vadd.xlane.f32.xlu0 %v1951_v32 }
 0x270   : > { %1955 = vadd.xlane.f32.xlu1 %v1954_v51 }
 0x271   : > { %1286 = vperm.xlu0 %2692, %v1224_v45  }
 0x275   : > { %1292 = vperm.xlu0 %2692, %v1226_v34  }
 0x279   : > { %1298 = vperm.xlu0 %2692, %v1228_v19  }
 0x281   : > { %1289 = vperm.xlu1 %2691, %v1225_v58  }
 0x283   : > { %v1263_v22 = vpop.permute.xlu1 %1262 }
 0x284   : > { %v2173_v42 = vrot.slane %v1263_v22, %v3386_v21  ;;  %v1314_v6 = vrot.slane %v1263_v22, %v3409_v47 }
 0x285   : > { %1301 = vperm.xlu1 %2691, %v1229_v1  }
 0x287   : > { %v3383_v62 = vpop.permute.xlu1 %1265  ;;  %v1983_v40 = vpop.permute.xlu0 %1982 }
 0x288   : > { %v2177_v38 = vrot.slane %v3383_v62, %v3386_v21  ;;  %v2257_v48 = vrot.slane %v1983_v40, %v3398_v14  ;;  %v2034_v5 = vrot.slane %v1983_v40, %v3409_v47  ;;  %v1318_v30 = vrot.slane %v3383_v62, %v3409_v47 }
 0x289   : > { %1295 = vperm.xlu1 %2691, %v1227_v17  }
 0x28b   : > { %v1260_v36 = vpop.permute.xlu1 %1259  ;;  %v1257_v7 = vpop.permute.xlu0 %1256 }
 0x28c   : > { %v2169_v3 = vrot.slane %v1260_v36, %v3386_v21  ;;  %v2165_v41 = vrot.slane %v1257_v7, %v3386_v21  ;;  %v1310_v63 = vrot.slane %v1260_v36, %v3409_v47  ;;  %v1306_v46 = vrot.slane %v1257_v7, %v3409_v47 }
 0x28e   : > { %v2226_v56 = vsel %vm1367_vm0, %v2169_v3, %v2165_v41  ;;  %v1368_v10 = vsel %vm1367_vm0, %v1310_v63, %v1306_v46 }
 0x28f   : > { %v2227_v35 = vsel %vm1369_vm6, %v2173_v42, %v2226_v56  ;;  %v1977_v12 = vpop.permute.xlu0 %1976  ;;  %v1370_v60 = vsel %vm1369_vm6, %v1314_v6, %v1368_v10 }
 0x290   : > { %v2228_v11 = vsel %vm1371_vm12, %v2177_v38, %v2227_v35  ;;  %v2249_v13 = vrot.slane %v1977_v12, %v3398_v14  ;;  %v2026_v9 = vrot.slane %v1977_v12, %v3409_v47  ;;  %v1372_v1 = vsel %vm1371_vm12, %v1318_v30, %v1370_v60 }
 0x293   : > { %v1980_v25 = vpop.permute.xlu1 %1979  ;;  %v1986_v29 = vpop.permute.xlu0 %1985 }
 0x294   : > { %v2253_v27 = vrot.slane %v1980_v25, %v3398_v14  ;;  %v2261_v18 = vrot.slane %v1986_v29, %v3398_v14  ;;  %v2030_v43 = vrot.slane %v1980_v25, %v3409_v47  ;;  %v2038_v58 = vrot.slane %v1986_v29, %v3409_v47 }
 0x296   : > { %v2310_v57 = vsel %vm1367_vm0, %v2253_v27, %v2249_v13  ;;  %v2087_v8 = vsel %vm1367_vm0, %v2030_v43, %v2026_v9 }
 0x297   : > { %v2311_v54 = vsel %vm1369_vm6, %v2257_v48, %v2310_v57  ;;  %v1275_v20 = vpop.permute.xlu1 %1274  ;;  %v2088_v23 = vsel %vm1369_vm6, %v2034_v5, %v2087_v8 }
 0x298   : > { %v2312_v15 = vsel %vm1371_vm12, %v2261_v18, %v2311_v54  ;;  %v2189_v34 = vrot.slane %v1275_v20, %v3386_v21  ;;  %v2089_v7 = vsel %vm1371_vm12, %v2038_v58, %v2088_v23  ;;  %v1330_v39 = vrot.slane %v1275_v20, %v3409_v47 }
 0x29b   : > { %v1995_v2 = vpop.permute.xlu0 %1994 }
 0x29c   : > { %v2050_v38 = vrot.slane %v1995_v2, %v3409_v47  ;;  %v2273_v12 = vrot.slane %v1995_v2, %v3398_v14 }
 0x29f   : > { %v1269_v52 = vpop.permute.xlu1 %1268 }
 0x2a0   : > { %v2181_v59 = vrot.slane %v1269_v52, %v3386_v21  ;;  %v1322_v50 = vrot.slane %v1269_v52, %v3409_v47 }
 0x2a2   : > { %v2229_v49 = vsel %vm1373_vm13, %v2181_v59, %v2228_v11  ;;  %v1374_v17 = vsel %vm1373_vm13, %v1322_v50, %v1372_v1 }
 0x2a3   : > { %v1278_v53 = vpop.permute.xlu1 %1277  ;;  %v1989_v16 = vpop.permute.xlu0 %1988 }
 0x2a4   : > { %v2265_v28 = vrot.slane %v1989_v16, %v3398_v14  ;;  %v2042_v19 = vrot.slane %v1989_v16, %v3409_v47  ;;  %v2193_v22 = vrot.slane %v1278_v53, %v3386_v21  ;;  %v1334_v18 = vrot.slane %v1278_v53, %v3409_v47 }
 0x2a6   : > { %v2313_v26 = vsel %vm1373_vm13, %v2265_v28, %v2312_v15  ;;  %v2090_v56 = vsel %vm1373_vm13, %v2042_v19, %v2089_v7 }
 0x2a7   : > { %v1272_v4 = vpop.permute.xlu1 %1271  ;;  %v1998_v32 = vpop.permute.xlu0 %1997 }
 0x2a8   : > { %v1326_v51 = vrot.slane %v1272_v4, %v3409_v47  ;;  %v2185_v45 = vrot.slane %v1272_v4, %v3386_v21  ;;  %v2054_v11 = vrot.slane %v1998_v32, %v3409_v47  ;;  %v2277_v29 = vrot.slane %v1998_v32, %v3398_v14 }
 0x2aa   : > { %v2230_v55 = vsel %vm1375_vm14, %v2185_v45, %v2229_v49  ;;  %v1376_v3 = vsel %vm1375_vm14, %v1326_v51, %v1374_v17  ;;  %v2700_v17 = vpop.eup %2699 }
 0x2ab   : > { %v2231_v62 = vsel %vm1377_vm15, %v2189_v34, %v2230_v55  ;;  %v2007_v40 = vpop.permute.xlu1 %2006  ;;  %v1992_v36 = vpop.permute.xlu0 %1991  ;;  %v1378_v57 = vsel %vm1377_vm15, %v1330_v39, %v1376_v3 }
 0x2ac   : > { %v3441_v41 = vsel %vm1379_vm2, %v2193_v22, %v2231_v62  ;;  %v2046_v42 = vrot.slane %v1992_v36, %v3409_v47  ;;  %v2269_v35 = vrot.slane %v1992_v36, %v3398_v14  ;;  %v1380_v52 = vsel %vm1379_vm2, %v1334_v18, %v1378_v57 }
 0x2ad   : > { %v1390_v16 = vsel %vm1230_vm1, %v1380_v52, 0.0  ;;  %v2289_v5 = vrot.slane %v2007_v40, %v3398_v14  ;;  %v2066_v58 = vrot.slane %v2007_v40, %v3409_v47 }
 0x2ae   : > { %v2091_v25 = vsel %vm1375_vm14, %v2046_v42, %v2090_v56  ;;  %v2314_v13 = vsel %vm1375_vm14, %v2269_v35, %v2313_v26  ;;  %v3496_v56 = vmul.f32 %v2700_v17, %v3327_v33 }
 0x2af   : > { %v2010_v27 = vpop.permute.xlu1 %2009  ;;  %v2092_v48 = vsel %vm1377_vm15, %v2050_v38, %v2091_v25  ;;  %v2315_v54 = vsel %vm1377_vm15, %v2273_v12, %v2314_v13 }
 0x2b0   : > { %v2093_v15 = vsel %vm1379_vm2, %v2054_v11, %v2092_v48  ;;  %v3459_v20 = vsel %vm1379_vm2, %v2277_v29, %v2315_v54  ;;  %v2293_v60 = vrot.slane %v2010_v27, %v3398_v14  ;;  %v2070_v62 = vrot.slane %v2010_v27, %v3409_v47  ;;  %v2702_v48 = vpop.eup %2701 }
 0x2b1   : > { %v2103_v2 = vsel %vm1230_vm1, %v2093_v15, 0.0  ;;  %v3513_v57 = vmul.f32 %v2702_v48, %v3331_v0 }
 0x2b2   : > { %2104 = vadd.xlane.f32.xlu0 %v2103_v2 }
 0x2b3   : > { %v1284_v63 = vpop.permute.xlu1 %1283  ;;  %v1281_v46 = vpop.permute.xlu0 %1280 }
 0x2b4   : > { %v1342_v59 = vrot.slane %v1284_v63, %v3409_v47  ;;  %v2201_v43 = vrot.slane %v1284_v63, %v3386_v21  ;;  %v1338_v49 = vrot.slane %v1281_v46, %v3409_v47  ;;  %v2197_v53 = vrot.slane %v1281_v46, %v3386_v21 }
 0x2b6   : > { %v3469_v10 = vsel %vm1367_vm0, %v1342_v59, %v1338_v49  ;;  %v2233_v9 = vsel %vm1367_vm0, %v2201_v43, %v2197_v53  ;;  %1391 = vadd.xlane.f32.xlu0 %v1390_v16 }
 0x2b7   : > { %v2004_v28 = vpop.permute.xlu1 %2003  ;;  %v2001_v6 = vpop.permute.xlu0 %2000 }
 0x2b8   : > { %v2285_v8 = vrot.slane %v2004_v28, %v3398_v14  ;;  %v2281_v26 = vrot.slane %v2001_v6, %v3398_v14  ;;  %v2062_v51 = vrot.slane %v2004_v28, %v3409_v47  ;;  %v2058_v45 = vrot.slane %v2001_v6, %v3409_v47 }
 0x2ba   : > { %v2317_v50 = vsel %vm1367_vm0, %v2285_v8, %v2281_v26  ;;  %v2094_v24 = vsel %vm1367_vm0, %v2062_v51, %v2058_v45 }
 0x2bb   : > { %v2318_v4 = vsel %vm1369_vm6, %v2289_v5, %v2317_v50  ;;  %v2019_v32 = vpop.permute.xlu1 %2018  ;;  %v2095_v22 = vsel %vm1369_vm6, %v2066_v58, %v2094_v24 }
 0x2bc   : > { %v2319_v30 = vsel %vm1371_vm12, %v2293_v60, %v2318_v4  ;;  %v2096_v7 = vsel %vm1371_vm12, %v2070_v62, %v2095_v22  ;;  %v2082_v39 = vrot.slane %v2019_v32, %v3409_v47  ;;  %v2305_v38 = vrot.slane %v2019_v32, %v3398_v14 }
 0x2bf   : > { %v2013_v23 = vpop.permute.xlu1 %2012 }
 0x2c0   : > { %v2297_v34 = vrot.slane %v2013_v23, %v3398_v14  ;;  %v2074_v55 = vrot.slane %v2013_v23, %v3409_v47 }
 0x2c2   : > { %v2320_v19 = vsel %vm1373_vm13, %v2297_v34, %v2319_v30  ;;  %v2097_v40 = vsel %vm1373_vm13, %v2074_v55, %v2096_v7 }
 0x2c3   : > { %v2022_v1 = vpop.permute.xlu1 %2021 }
 0x2c4   : > { %v2086_v35 = vrot.slane %v2022_v1, %v3409_v47  ;;  %v2309_v12 = vrot.slane %v2022_v1, %v3398_v14 }
 0x2c7   : > { %v2016_v36 = vpop.permute.xlu1 %2015 }
 0x2c8   : > { %v2078_v3 = vrot.slane %v2016_v36, %v3409_v47  ;;  %v2301_v42 = vrot.slane %v2016_v36, %v3398_v14 }
 0x2ca   : > { %v2098_v11 = vsel %vm1375_vm14, %v2078_v3, %v2097_v40  ;;  %v2321_v25 = vsel %vm1375_vm14, %v2301_v42, %v2320_v19 }
 0x2cb   : > { %v2322_v29 = vsel %vm1377_vm15, %v2305_v38, %v2321_v25  ;;  %v2099_v13 = vsel %vm1377_vm15, %v2082_v39, %v2098_v11 }
 0x2cc   : > { %v3505_v27 = vsel %vm1379_vm2, %v2309_v12, %v2322_v29  ;;  %2131 = vrot.lane.b32.xlu0 %v3496_v56, %s2780_s16  ;;  %v2100_v33 = vsel %vm1379_vm2, %v2086_v35, %v2099_v13 }
 0x2cd   : > { %v2106_v14 = vsel %vm1230_vm1, %v2100_v33, 0.0 }
 0x2ce   : > { %2107 = vadd.xlane.f32.xlu1 %v2106_v14  ;;  %v1238_v14 = vmax.f32 %v3259_v31, 1.0 }
 0x2df   : > { %2129 = vrot.lane.b32.xlu1 %v3513_v57, %s2780_s16 }
 0x2e4   : > { %v1953_v18 = vpop.xlane.xlu0 %1952 }
 0x2ec   : > { %v1287_v54 = vpop.permute.xlu0 %1286 }
 0x2ed   : > { %v2205_v15 = vrot.slane %v1287_v54, %v3386_v21  ;;  %v1346_v59 = vrot.slane %v1287_v54, %v3409_v47 }
 0x2ef   : > { %v2234_v2 = vsel %vm1369_vm6, %v2205_v15, %v2233_v9  ;;  %v1382_v28 = vsel %vm1369_vm6, %v1346_v59, %v3469_v10 }
 0x2f0   : > { %v1293_v63 = vpop.permute.xlu0 %1292 }
 0x2f1   : > { %v2213_v43 = vrot.slane %v1293_v63, %v3386_v21  ;;  %v1354_v8 = vrot.slane %v1293_v63, %v3409_v47 }
 0x2f4   : > { %v1299_v9 = vpop.permute.xlu0 %1298 }
 0x2f5   : > { %v1362_v50 = vrot.slane %v1299_v9, %v3409_v47  ;;  %v2221_v4 = vrot.slane %v1299_v9, %v3386_v21 }
 0x2f9   : > { %v1956_v52 = vpop.xlane.xlu1 %1955 }
 0x2fa   : > { %v1958_v17 = vmax.f32 %v1956_v52, 1.0 }
 0x2fd   : > { %v1290_v46 = vpop.permute.xlu1 %1289 }
 0x2fe   : > { %v2209_v61 = vrot.slane %v1290_v46, %v3386_v21  ;;  %v1350_v0 = vrot.slane %v1290_v46, %v3409_v47 }
 0x300   : > { %v2235_v49 = vsel %vm1371_vm12, %v2209_v61, %v2234_v2  ;;  %v1383_v6 = vsel %vm1371_vm12, %v1350_v0, %v1382_v28 }
 0x301   : > { %v1302_v53 = vpop.permute.xlu1 %1301  ;;  %v2236_v16 = vsel %vm1373_vm13, %v2213_v43, %v2235_v49  ;;  %v1384_v32 = vsel %vm1373_vm13, %v1354_v8, %v1383_v6 }
 0x302   : > { %v1366_v10 = vrot.slane %v1302_v53, %v3409_v47  ;;  %v2225_v30 = vrot.slane %v1302_v53, %v3386_v21 }
 0x305   : > { %v1296_v26 = vpop.permute.xlu1 %1295 }
 0x306   : > { %v1358_v5 = vrot.slane %v1296_v26, %v3409_v47  ;;  %v2217_v60 = vrot.slane %v1296_v26, %v3386_v21  ;;  %v1957_v21 = vmax.f32 %v1953_v18, 1.0 }
 0x308   : > { %v1385_v51 = vsel %vm1375_vm14, %v1358_v5, %v1384_v32  ;;  %v2237_v45 = vsel %vm1375_vm14, %v2217_v60, %v2236_v16  ;;  %2703 = vrcp.f32 %v1957_v21 }
 0x309   : > { %v2238_v23 = vsel %vm1377_vm15, %v2221_v4, %v2237_v45  ;;  %v1386_v34 = vsel %vm1377_vm15, %v1362_v50, %v1385_v51  ;;  %2705 = vrcp.f32 %v1958_v17 }
 0x30a   : > { %v3541_v24 = vsel %vm1379_vm2, %v2225_v30, %v2238_v23  ;;  %v1387_v19 = vsel %vm1379_vm2, %v1366_v10, %v1386_v34  ;;  %2707 = vrcp.f32 %v1237_v37 }
 0x30b   : > { %v1393_v58 = vsel %vm1230_vm1, %v1387_v19, 0.0  ;;  %vm2143_vm1 = vcmask 7168  }
 0x30c   : > { %1394 = vadd.xlane.f32.xlu0 %v1393_v58 }
 0x315   : > { %v2704_v47 = vpop.eup %2703 }
 0x316   : > { %v2706_v62 = vpop.eup %2705 }
 0x317   : > { %v2708_v40 = vpop.eup %2707 }
 0x322   : > { %2152 = vrot.lane.b32.xlu0 %v3513_v57, %s2781_s13 }
 0x33b   : > { %v2105_v1 = vpop.xlane.xlu0 %2104 }
 0x33c   : > { %v2110_v22 = vmul.f32 %v2704_v47, %v2105_v1 }
 0x33e   : > { %v2115_v55 = vmul.f32 %v2110_v22, %v3513_v57 }
 0x33f   : > { %v1392_v38 = vpop.xlane.xlu0 %1391 }
 0x340   : > { %2119 = vrot.lane.b32.xlu1 %v2115_v55, %s2780_s16  ;;  %v1397_v35 = vmul.f32 %v2708_v40, %v1392_v38 }
 0x342   : > { %v2113_v11 = vmul.f32 %v1397_v35, %v3513_v57 }
 0x343   : > { %v2132_v12 = vpop.permute.xlu0 %2131 }
 0x344   : > { %v2136_v31 = vadd.f32 %v2132_v12, %v3496_v56 }
 0x357   : > { %v2108_v36 = vpop.xlane.xlu1 %2107 }
 0x358   : > { %v2112_v7 = vmul.f32 %v2706_v62, %v2108_v36 }
 0x35a   : > { %v2116_v3 = vmul.f32 %v2112_v7, %v3496_v56 }
 0x35b   : > { %v2130_v42 = vpop.permute.xlu1 %2129 }
 0x35c   : > { %2121 = vrot.lane.b32.xlu1 %v2116_v3, %s2780_s16  ;;  %v2135_v39 = vadd.f32 %v2130_v42, %v3513_v57 }
 0x35e   : > { %2709 = vrcp.f32 %v2135_v39 }
 0x35f   : > { %2711 = vrcp.f32 %v1238_v14 }
 0x360   : > { %2154 = vrot.lane.b32.xlu1 %v3496_v56, %s2781_s13  ;;  %2713 = vrcp.f32 %v2136_v31 }
 0x36b   : > { %v2710_v44 = vpop.eup %2709 }
 0x36c   : > { %v2712_v57 = vpop.eup %2711 }
 0x36d   : > { %v2714_v52 = vpop.eup %2713 }
 0x395   : > { %v1395_v29 = vpop.xlane.xlu0 %1394 }
 0x396   : > { %v1399_v18 = vmul.f32 %v2712_v57, %v1395_v29 }
 0x398   : > { %v2114_v54 = vmul.f32 %v1399_v18, %v3496_v56 }
 0x399   : > { %v2153_v48 = vpop.permute.xlu0 %2152 }
 0x3b2   : > { %v2120_v25 = vpop.permute.xlu1 %2119 }
 0x3b3   : > { %v2125_v13 = vadd.f32 %v2120_v25, %v2113_v11 }
 0x3b5   : > { %v2138_v33 = vmul.f32 %v2710_v44, %v2125_v13 }
 0x3b7   : > { %2144 = vst.msk [vmem:[%s3549_s18] sm:$0xff] %vm2143_vm1, %v2138_v33 }
 0x3b8   : > { %2147 = vst.msk [vmem:[%s3549_s18] sm:$0xff] %vm2146_vm3, %v1397_v35 }
 0x3b9   : > { %2150 = vst.msk [vmem:[%s3549_s18] sm:$0xff] %vm2149_vm4, %v2110_v22 }
 0x3ba   : > { %2159 = vst.msk [vmem:[%s3549_s18] sm:$0xff] %vm2158_vm5, %v2153_v48 }
 0x3bb   : > { %2243 = vst.msk [vmem:[%s3549_s18] sm:$0xff] %vm2242_vm7, %v3441_v41 }
 0x3bc   : > { %2327 = vst.msk [vmem:[%s3549_s18] sm:$0xff] %vm2326_vm8, %v3459_v20 }
 0x3ce   : > { %v2122_v15 = vpop.permute.xlu1 %2121 }
 0x3cf   : > { %v2126_v2 = vadd.f32 %v2122_v15, %v2114_v54 }
 0x3d1   : > { %v2140_v41 = vmul.f32 %v2714_v52, %v2126_v2 }
 0x3d2   : > { %v2155_v20 = vpop.permute.xlu1 %2154 }
 0x3d3   : > { %2145 = vst.msk [vmem:[%s3549_s18 + $0x8] sm:$0xff] %vm2143_vm1, %v2140_v41 }
 0x3d4   : > { %2148 = vst.msk [vmem:[%s3549_s18 + $0x8] sm:$0xff] %vm2146_vm3, %v1399_v18 }
 0x3d5   : > { %2151 = vst.msk [vmem:[%s3549_s18 + $0x8] sm:$0xff] %vm2149_vm4, %v2112_v7 }
 0x3d6   : > { %2160 = vst.msk [vmem:[%s3549_s18 + $0x8] sm:$0xff] %vm2158_vm5, %v2155_v20 }
 0x3d7   : > { %2244 = vst.msk [vmem:[%s3549_s18 + $0x8] sm:$0xff] %vm2242_vm7, %v3541_v24 }
 0x3d8   : > { %2328 = vst.msk [vmem:[%s3549_s18 + $0x8] sm:$0xff] %vm2326_vm8, %v3505_v27 }
 0x3d9   : > { %2728 = shalt.err (!%p2725_p3)
}
 0x3da   : > { %s2729_s16 = scalar_lea.hbm %s3591_s23, 256  ;;  %s2733_s15 = scalar_lea.hbm %s3652_s7, 1024 }
 0x3db   : > { %p2730_p4 = scmp.ne.s32.totalorder %s3591_s23, %s2729_s16  ;;  %p2734_p9 = scmp.lt.s32.totalorder %s3591_s23, %s3652_s7 }
 0x3dc   : > { %p2735_p10 = scmp.lt.s32.totalorder %s2733_s15, %s2729_s16 }
 0x3dd   : > { %p2731_p7 = pnand %p2730_p4, %p2863_p5 }
 0x3de   : > { %p2736_p11 = por %p2735_p10, %p2734_p9 }
 0x3df   : > { %p2732_p8 = pneg %p2731_p7 }
 0x3e1   : > { %p2737_p12 = pnand %p2736_p11, %p2732_p8 }
 0x3e3   : > { %2740 = shalt.err (!%p2737_p12)
}
 0x3e4   : > { %s2783_s21 = smov 128   ;;  %s2784_s22 = smov 8  }
 0x3e5   : > { %2645 = dma.vmem_to_hbm [thread:$0]  (%p2863_p5), %s3593_s20, 256, %s3591_s23, %s3605_s28, %s2783_s21, %s2783_s21, %s2784_s22  }
 0x3e6 PF: > { %p2651_p13 = scmp.ge.s32.totalorder %s2775_s27, 2  ;;  %s2358_s17 = sand.u32 1, %s2763_s24  }
 0x3e7   : > { %s2359_s29 = scalar_lea.sflag [#allocation3], %s2358_s17 }
 0x3e8   : > { %p2648_p0 = pnand %p2651_p13, %p2867_p6 }
 0x3ea   : > { %p2649_p1 = pneg %p2648_p0 }
 0x3ec   : > { %2758 = dma.done.wait (%p2649_p1), %s2359_s29, 256  }
 0x3ed   : > { %2760 = vsyncadd (%p2649_p1), %s2359_s29, 4294967040  ;;  %p17_p2 = scmp.ge.s32.totalorder %s2850_s30, 6   ;;  %s3655_s24 = smov %s2767_s25 }
 0x3ee   : > { %s3656_s25 = smov %s2771_s26  ;;  %s3657_s26 = smov %s2861_s10 }
 0x3ef   : > { %s3658_s27 = smov %s2850_s30  ;;  %19 = sbr.rel (!%p17_p2) target bundleno = 3 (0x3), region = 95 }
 0x3f4   :  { %2364 = vsyncpa [#allocation3], 1 }
 0x3f5   :  { %2366 = vsyncpa [#allocation3 + $0x1], 1 }

</bundles_post_ra>
